<compile_context>
chip_gen: v6e
topology: v6e:2x2x1
jax: 0.10.0
libtpu: 0.0.40
codegen_flags: <defaults>
</compile_context>

<pallas_src>
import jax
import jax.numpy as jnp
from jax import lax
from jax.experimental import pallas as pl
from jax.experimental.pallas import tpu as pltpu

# Fixed SokoNet geometry (from the PyTorch module).
H = W = 16          # board spatial size
CIN = 8             # input planes
CMID = 64           # conv output channels
NUM_CONV = 14
CP = 128            # padded channel lanes: [0:64]=y, [64:72]=x skip, rest 0
FC1 = 256           # fcconv1 width
HP = H + 2          # padded height (interior rows 1..16)
WOFF = 8            # interior column offset (multiple of 8 -> aligned)
WPAD = 32           # padded width buffer (interior cols 8..23, halo 7 / 24)


# ------------------------------ fused kernel --------------------------------

def sokonet_kernel(pos_ref, xint_ref, wconv_ref, bconv_ref,
                   w1_ref, b1_ref, w2_ref, b2_ref,
                   out_ref, pad_ref, acc_ref):
    b = pl.program_id(0)

    # Zero the resident padded buffer (halo + spare lanes), then land the
    # input planes (already embedded at lanes 64:72 by the wrapper) into the
    # aligned interior window with one dense 128-lane store.
    pad_ref[...] = jnp.zeros_like(pad_ref)
    pad_ref[1:H + 1, WOFF:WOFF + W, :] = xint_ref[0]

    # Epilogue lane mask: ReLU(conv + bias) on lanes 0:64, raw pass-through on
    # lanes 64:128 (identity skip copy of x / zeros).  Hoisted out of the loop.
    relu_mask = lax.broadcasted_iota(jnp.int32, (H * W, CP), 1) < CMID

    def layer_body(l, carry):
        # 3x3 conv as 9 accumulated MXU matmuls straight from the resident
        # buffer.  Tap lanes: [0:64]=previous-layer y, [64:72]=input x (skip),
        # rest zero.  Layer 1's packed weight has zero rows for the y lanes,
        # so any stale y lanes contribute nothing on the first iteration.
        for k in range(9):
            dy, dx = divmod(k, 3)
            tap = pad_ref[dy:dy + H, WOFF - 1 + dx:WOFF - 1 + dx + W, :]
            tap2d = tap.reshape(H * W, CP).astype(jnp.bfloat16)
            part = jnp.dot(tap2d, wconv_ref[l * 9 + k],
                           preferred_element_type=jnp.float32)
            if k == 0:
                acc_ref[...] = part
            else:
                acc_ref[...] += part

        biased = acc_ref[...] + bconv_ref[l]           # bias lanes 64:128 = 0
        y_full = jnp.where(relu_mask, jnp.maximum(biased, 0.0), biased)
        # Dense, fully aligned 128-lane write-back: keeps the skip planes and
        # the zero spare lanes intact for the next layer.
        pad_ref[1:H + 1, WOFF:WOFF + W, :] = y_full.reshape(H, W, CP)
        return carry

    lax.fori_loop(0, NUM_CONV, layer_body, 0)

    # robotPosWindow: pick the robot pixel's activations from the resident
    # buffer (dynamic row read + 32-row mask-reduce; no one-hot matmul).
    r = pos_ref[b, 0]
    c = pos_ref[b, 1]
    row = pad_ref[1 + r]                                          # (WPAD, CP)
    sel = lax.broadcasted_iota(jnp.int32, (WPAD, 1), 0) == (WOFF + c)
    g = jnp.sum(jnp.where(sel, row, 0.0), axis=0, keepdims=True)  # (1, CP)

    # fcconv1 (1x1) + ReLU, then fcconv2 (output padded to 128 lanes; lane 0
    # holds the result).  w1 rows 64:128 are zero, so the skip lanes of g
    # drop out of the head automatically.
    h = jnp.maximum(
        jnp.dot(g.astype(jnp.bfloat16), w1_ref[...],
                preferred_element_type=jnp.float32) + b1_ref[...], 0.0)
    o = jnp.dot(h.astype(jnp.bfloat16), w2_ref[...],
                preferred_element_type=jnp.float32) + b2_ref[...]
    out_ref[...] = o.reshape(1, 1, CP)


# ------------------------------ parameters ----------------------------------

def init_params(key):
    params = {}
    keys = jax.random.split(key, 32)
    k_iter = iter(keys)

    def conv_w(cin, cout):
        return (0.05 * jax.random.normal(next(k_iter), (3, 3, cin, cout))
                ).astype(jnp.float32)

    def bias(cout):
        return (0.01 * jax.random.normal(next(k_iter), (cout,))
                ).astype(jnp.float32)

    params["conv1_w"], params["conv1_b"] = conv_w(CIN, CMID), bias(CMID)
    for i in range(2, NUM_CONV + 1):
        params[f"conv{i}_w"] = conv_w(CIN + CMID, CMID)
        params[f"conv{i}_b"] = bias(CMID)
    params["fc1_w"] = (0.05 * jax.random.normal(next(k_iter), (CMID, FC1))
                       ).astype(jnp.float32)
    params["fc1_b"] = bias(FC1)
    params["fc2_w"] = (0.05 * jax.random.normal(next(k_iter), (FC1, 1))
                       ).astype(jnp.float32)
    params["fc2_b"] = bias(1)
    return params


def pack_params(params):
    """Pack weights to the kernel's 128-lane channel layout.

    Per-tap weight rows: [0:64]=prev-layer y, [64:72]=input x, rest zero.
    Output columns:      [0:64]=conv output, [64:72]=identity copy of x
    (centre tap only -> keeps the skip planes resident), [72:128]=zero.
    """
    eye = jnp.eye(CIN, dtype=jnp.float32)
    wlist, blist = [], []
    for i in range(1, NUM_CONV + 1):
        w = params[f"conv{i}_w"]                      # HWIO (3, 3, cin, 64)
        wp = jnp.zeros((3, 3, CP, CP), jnp.float32)
        if i == 1:                                    # conv1: input planes only
            wp = wp.at[:, :, CMID:CMID + CIN, 0:CMID].set(w)
        else:                                         # torch.cat([x, y]) order
            wp = wp.at[:, :, 0:CMID, 0:CMID].set(w[:, :, CIN:, :])           # y
            wp = wp.at[:, :, CMID:CMID + CIN, 0:CMID].set(w[:, :, :CIN, :])  # x
        # identity skip columns on the centre tap
        wp = wp.at[1, 1, CMID:CMID + CIN, CMID:CMID + CIN].set(eye)
        wlist.append(wp.reshape(9, CP, CP))
        bp = jnp.zeros((1, CP), jnp.float32).at[0, 0:CMID].set(
            params[f"conv{i}_b"])
        blist.append(bp)

    w1p = jnp.zeros((CP, FC1), jnp.float32).at[0:CMID, :].set(params["fc1_w"])
    w2p = jnp.zeros((FC1, CP), jnp.float32).at[:, 0:1].set(params["fc2_w"])
    b2p = jnp.zeros((1, CP), jnp.float32).at[0, 0].set(params["fc2_b"][0])
    return {
        "wconv": jnp.concatenate(wlist, axis=0).astype(jnp.bfloat16),  # (126,128,128)
        "bconv": jnp.stack(blist).astype(jnp.float32),                 # (14,1,128)
        "fc1_w": w1p.astype(jnp.bfloat16),                             # (128,256)
        "fc1_b": params["fc1_b"].reshape(1, FC1).astype(jnp.float32),  # (1,256)
        "fc2_w": w2p.astype(jnp.bfloat16),                             # (256,128)
        "fc2_b": b2p,                                                  # (1,128)
    }


# ------------------------------- forward ------------------------------------

@jax.jit
def sokonet_forward(x_nchw, packed):
    n = x_nchw.shape[0]
    x_nhwc = jnp.transpose(x_nchw, (0, 2, 3, 1)).astype(jnp.float32)

    # Input planes embedded at channel lanes 64:72 of the 128-lane working
    # layout; the per-sample BlockSpec lands this slab straight in VMEM.
    xint = jnp.zeros((n, H, W, CP), jnp.float32)
    xint = xint.at[:, :, :, CMID:CMID + CIN].set(x_nhwc)

    # robotPosWindow indices (row, col) per sample, delivered via SMEM scalar
    # prefetch.  torch.nonzero is data-dependent; the inputs carry exactly one
    # robot marker (channel 3) per sample, so P == batch here.
    # TODO(synk): a general torch.nonzero (variable row count) has no
    # static-shape Pallas equivalent; we assume one marker per sample.
    pos = jnp.argwhere(x_nchw[:, 3, :, :] != 0, size=n)           # (n, 3)
    pos_rc = pos[:, 1:3].astype(jnp.int32)                        # (n, 2)

    grid_spec = pltpu.PrefetchScalarGridSpec(
        num_scalar_prefetch=1,
        grid=(n,),
        in_specs=[
            pl.BlockSpec((1, H, W, CP), lambda b, pos: (b, 0, 0, 0)),      # x
            pl.BlockSpec((NUM_CONV * 9, CP, CP), lambda b, pos: (0, 0, 0)),
            pl.BlockSpec((NUM_CONV, 1, CP), lambda b, pos: (0, 0, 0)),
            pl.BlockSpec((CP, FC1), lambda b, pos: (0, 0)),
            pl.BlockSpec((1, FC1), lambda b, pos: (0, 0)),
            pl.BlockSpec((FC1, CP), lambda b, pos: (0, 0)),
            pl.BlockSpec((1, CP), lambda b, pos: (0, 0)),
        ],
        out_specs=pl.BlockSpec((1, 1, CP), lambda b, pos: (b, 0, 0)),
        scratch_shapes=[
            pltpu.VMEM((HP, WPAD, CP), jnp.float32),   # resident padded acts
            pltpu.VMEM((H * W, CP), jnp.float32),      # per-layer accumulator
        ],
    )
    out = pl.pallas_call(
        sokonet_kernel,
        out_shape=jax.ShapeDtypeStruct((n, 1, CP), jnp.float32),
        grid_spec=grid_spec,
        compiler_params=pltpu.CompilerParams(
            dimension_semantics=("parallel",),
            vmem_limit_bytes=32 * 1024 * 1024),
    )(pos_rc, xint, packed["wconv"], packed["bconv"],
      packed["fc1_w"], packed["fc1_b"], packed["fc2_w"], packed["fc2_b"])

    return out[:, 0, 0][:, None, None, None]            # (P, 1, 1, 1)


# --------------------------------- main --------------------------------------

if __name__ == "__main__":
    key = jax.random.PRNGKey(0)
    k_x, k_p = jax.random.split(key)

    # input: (batch=2, channels=8, H=16, W=16), NCHW like the PyTorch module
    x = jax.random.normal(k_x, (2, CIN, H, W), dtype=jnp.float32)
    # channel 3 = robot-position plane: exactly one nonzero per sample
    x = x.at[:, 3, :, :].set(0.0)
    x = x.at[0, 3, 3, 5].set(1.0)
    x = x.at[1, 3, 7, 2].set(1.0)

    params = init_params(k_p)
    packed = pack_params(params)

    out = sokonet_forward(x, packed)
    jax.block_until_ready(out)
    assert out.shape == (2, 1, 1, 1)
    print("KERNEL_OK")
</pallas_src>

<mosaic_0001>
module attributes {stable_mosaic.version = 11 : i64} {
  func.func private @main(%arg0: i32) attributes {dimension_semantics = [#tpu.dimension_semantics<core_parallel>], iteration_bounds = array<i64: 2>, tpu.core_type = #tpu.core_type<sc_scalar_subcore>, window_params = []} {
    return
  }
}

module attributes {stable_mosaic.version = 11 : i64} {
  func.func private @main(%arg0: i32) attributes {dimension_semantics = [#tpu.dimension_semantics<core_parallel>], iteration_bounds = array<i64: 2>, tpu.core_type = #tpu.core_type<sc_scalar_subcore>, window_params = []} {
    return
  }
}

module attributes {stable_mosaic.version = 11 : i64} {
  func.func @sokonet_kernel(%arg0: i32, %arg1: memref<2x2xi32, #tpu.memory_space<smem>>, %arg2: memref<1x16x16x128xf32, #tpu.memory_space<vmem>>, %arg3: memref<126x128x128xbf16, #tpu.memory_space<vmem>>, %arg4: memref<14x1x128xf32, #tpu.memory_space<vmem>>, %arg5: memref<128x256xbf16, #tpu.memory_space<vmem>>, %arg6: memref<1x256xf32, #tpu.memory_space<vmem>>, %arg7: memref<256x128xbf16, #tpu.memory_space<vmem>>, %arg8: memref<1x128xf32, #tpu.memory_space<vmem>>, %arg9: memref<1x1x128xf32, #tpu.memory_space<vmem>>, %arg10: memref<18x32x128xf32, #tpu.memory_space<vmem>>, %arg11: memref<256x128xf32, #tpu.memory_space<vmem>>) attributes {dimension_semantics = [#tpu.dimension_semantics<parallel>], iteration_bounds = array<i64: 2>, scalar_prefetch = 1 : i64, scratch_operands = 2 : i64, tpu.core_type = #tpu.core_type<tc>, window_params = [{transform_indices = @transform_0, window_bounds = array<i64: 1, 16, 16, 128>}, {pipeline_mode = #tpu.pipeline_mode<synchronous>, transform_indices = @transform_1, window_bounds = array<i64: 126, 128, 128>}, {pipeline_mode = #tpu.pipeline_mode<synchronous>, transform_indices = @transform_2, window_bounds = array<i64: 14, 1, 128>}, {pipeline_mode = #tpu.pipeline_mode<synchronous>, transform_indices = @transform_3, window_bounds = array<i64: 128, 256>}, {pipeline_mode = #tpu.pipeline_mode<synchronous>, transform_indices = @transform_4, window_bounds = array<i64: 1, 256>}, {pipeline_mode = #tpu.pipeline_mode<synchronous>, transform_indices = @transform_5, window_bounds = array<i64: 256, 128>}, {pipeline_mode = #tpu.pipeline_mode<synchronous>, transform_indices = @transform_6, window_bounds = array<i64: 1, 128>}, {transform_indices = @transform_7, window_bounds = array<i64: 1, 1, 128>}]} {
    %cst = arith.constant 0.000000e+00 : f32
    %0 = vector.broadcast %cst : f32 to vector<18x32x128xf32>
    %c0 = arith.constant 0 : index
    %c0_0 = arith.constant 0 : index
    %c0_1 = arith.constant 0 : index
    %1 = vector.load %arg10[%c0, %c0_0, %c0_1] : memref<18x32x128xf32, #tpu.memory_space<vmem>>, vector<18x32x128xf32>
    tpu.vector_store %arg10[%c0, %c0_0, %c0_1], %0 {strides = array<i32>} : memref<18x32x128xf32, #tpu.memory_space<vmem>>, vector<18x32x128xf32>,
    %c0_2 = arith.constant 0 : index
    %c0_3 = arith.constant 0 : index
    %c0_4 = arith.constant 0 : index
    %c0_5 = arith.constant 0 : index
    %2 = vector.load %arg2[%c0_2, %c0_3, %c0_4, %c0_5] : memref<1x16x16x128xf32, #tpu.memory_space<vmem>>, vector<1x16x16x128xf32>
    %3 = vector.shape_cast %2 : vector<1x16x16x128xf32> to vector<16x16x128xf32>
    %c1 = arith.constant 1 : index
    %c8 = arith.constant 8 : index
    %c0_6 = arith.constant 0 : index
    %4 = vector.load %arg10[%c1, %c8, %c0_6] : memref<18x32x128xf32, #tpu.memory_space<vmem>>, vector<16x16x128xf32>
    tpu.vector_store %arg10[%c1, %c8, %c0_6], %3 {strides = array<i32>} : memref<18x32x128xf32, #tpu.memory_space<vmem>>, vector<16x16x128xf32>,
    %5 = tpu.iota {dimensions = array<i32: 1>} : vector<256x128xi32>
    %c64_i32 = arith.constant 64 : i32
    %6 = vector.broadcast %c64_i32 : i32 to vector<256x128xi32>
    %7 = arith.cmpi slt, %5, %6 : vector<256x128xi32>
    %c0_i32 = arith.constant 0 : i32
    %c14_i32 = arith.constant 14 : i32
    %8 = arith.addi %c0_i32, %c14_i32 : i32
    %c1_i32 = arith.constant 1 : i32
    scf.for %arg12 = %c0_i32 to %8 step %c1_i32  : i32 {
      %c0_29 = arith.constant 0 : index
      %c7 = arith.constant 7 : index
      %c0_30 = arith.constant 0 : index
      %41 = vector.load %arg10[%c0_29, %c7, %c0_30] : memref<18x32x128xf32, #tpu.memory_space<vmem>>, vector<16x16x128xf32>
      %42 = vector.shape_cast %41 : vector<16x16x128xf32> to vector<256x128xf32>
      %43 = arith.truncf %42 : vector<256x128xf32> to vector<256x128xbf16>
      %c9_i32 = arith.constant 9 : i32
      %44 = arith.muli %arg12, %c9_i32 : i32
      %c0_i32_31 = arith.constant 0 : i32
      %45 = arith.addi %44, %c0_i32_31 : i32
      %46 = arith.index_cast %45 : i32 to index
      %c0_32 = arith.constant 0 : index
      %c0_33 = arith.constant 0 : index
      %47 = vector.load %arg3[%46, %c0_32, %c0_33] : memref<126x128x128xbf16, #tpu.memory_space<vmem>>, vector<1x128x128xbf16>
      %48 = vector.shape_cast %47 : vector<1x128x128xbf16> to vector<128x128xbf16>
      %cst_34 = arith.constant dense<0.000000e+00> : vector<256x128xf32>
      %49 = tpu.matmul %43, %48, %cst_34 {dimension_numbers = #tpu.dot_dimension_numbers<[1], [0], [0], [1], [0, 0, 1, 1], [], []>} : vector<256x128xbf16>, vector<128x128xbf16>, vector<256x128xf32> -> vector<256x128xf32>
      %c0_35 = arith.constant 0 : index
      %c0_36 = arith.constant 0 : index
      %50 = vector.load %arg11[%c0_35, %c0_36] : memref<256x128xf32, #tpu.memory_space<vmem>>, vector<256x128xf32>
      tpu.vector_store %arg11[%c0_35, %c0_36], %49 {strides = array<i32>} : memref<256x128xf32, #tpu.memory_space<vmem>>, vector<256x128xf32>,
      %c0_37 = arith.constant 0 : index
      %c8_38 = arith.constant 8 : index
      %c0_39 = arith.constant 0 : index
      %51 = vector.load %arg10[%c0_37, %c8_38, %c0_39] : memref<18x32x128xf32, #tpu.memory_space<vmem>>, vector<16x16x128xf32>
      %52 = vector.shape_cast %51 : vector<16x16x128xf32> to vector<256x128xf32>
      %53 = arith.truncf %52 : vector<256x128xf32> to vector<256x128xbf16>
      %c9_i32_40 = arith.constant 9 : i32
      %54 = arith.muli %arg12, %c9_i32_40 : i32
      %c1_i32_41 = arith.constant 1 : i32
      %55 = arith.addi %54, %c1_i32_41 : i32
      %56 = arith.index_cast %55 : i32 to index
      %c0_42 = arith.constant 0 : index
      %c0_43 = arith.constant 0 : index
      %57 = vector.load %arg3[%56, %c0_42, %c0_43] : memref<126x128x128xbf16, #tpu.memory_space<vmem>>, vector<1x128x128xbf16>
      %58 = vector.shape_cast %57 : vector<1x128x128xbf16> to vector<128x128xbf16>
      %cst_44 = arith.constant dense<0.000000e+00> : vector<256x128xf32>
      %59 = tpu.matmul %53, %58, %cst_44 {dimension_numbers = #tpu.dot_dimension_numbers<[1], [0], [0], [1], [0, 0, 1, 1], [], []>} : vector<256x128xbf16>, vector<128x128xbf16>, vector<256x128xf32> -> vector<256x128xf32>
      %c0_45 = arith.constant 0 : index
      %c0_46 = arith.constant 0 : index
      %60 = vector.load %arg11[%c0_45, %c0_46] : memref<256x128xf32, #tpu.memory_space<vmem>>, vector<256x128xf32>
      %61 = arith.addf %60, %59 : vector<256x128xf32>
      %c0_47 = arith.constant 0 : index
      %c0_48 = arith.constant 0 : index
      %62 = vector.load %arg11[%c0_47, %c0_48] : memref<256x128xf32, #tpu.memory_space<vmem>>, vector<256x128xf32>
      tpu.vector_store %arg11[%c0_47, %c0_48], %61 {strides = array<i32>} : memref<256x128xf32, #tpu.memory_space<vmem>>, vector<256x128xf32>,
      %c0_49 = arith.constant 0 : index
      %c9 = arith.constant 9 : index
      %c0_50 = arith.constant 0 : index
      %63 = vector.load %arg10[%c0_49, %c9, %c0_50] : memref<18x32x128xf32, #tpu.memory_space<vmem>>, vector<16x16x128xf32>
      %64 = vector.shape_cast %63 : vector<16x16x128xf32> to vector<256x128xf32>
      %65 = arith.truncf %64 : vector<256x128xf32> to vector<256x128xbf16>
      %c9_i32_51 = arith.constant 9 : i32
      %66 = arith.muli %arg12, %c9_i32_51 : i32
      %c2_i32 = arith.constant 2 : i32
      %67 = arith.addi %66, %c2_i32 : i32
      %68 = arith.index_cast %67 : i32 to index
      %c0_52 = arith.constant 0 : index
      %c0_53 = arith.constant 0 : index
      %69 = vector.load %arg3[%68, %c0_52, %c0_53] : memref<126x128x128xbf16, #tpu.memory_space<vmem>>, vector<1x128x128xbf16>
      %70 = vector.shape_cast %69 : vector<1x128x128xbf16> to vector<128x128xbf16>
      %cst_54 = arith.constant dense<0.000000e+00> : vector<256x128xf32>
      %71 = tpu.matmul %65, %70, %cst_54 {dimension_numbers = #tpu.dot_dimension_numbers<[1], [0], [0], [1], [0, 0, 1, 1], [], []>} : vector<256x128xbf16>, vector<128x128xbf16>, vector<256x128xf32> -> vector<256x128xf32>
      %c0_55 = arith.constant 0 : index
      %c0_56 = arith.constant 0 : index
      %72 = vector.load %arg11[%c0_55, %c0_56] : memref<256x128xf32, #tpu.memory_space<vmem>>, vector<256x128xf32>
      %73 = arith.addf %72, %71 : vector<256x128xf32>
      %c0_57 = arith.constant 0 : index
      %c0_58 = arith.constant 0 : index
      %74 = vector.load %arg11[%c0_57, %c0_58] : memref<256x128xf32, #tpu.memory_space<vmem>>, vector<256x128xf32>
      tpu.vector_store %arg11[%c0_57, %c0_58], %73 {strides = array<i32>} : memref<256x128xf32, #tpu.memory_space<vmem>>, vector<256x128xf32>,
      %c1_59 = arith.constant 1 : index
      %c7_60 = arith.constant 7 : index
      %c0_61 = arith.constant 0 : index
      %75 = vector.load %arg10[%c1_59, %c7_60, %c0_61] : memref<18x32x128xf32, #tpu.memory_space<vmem>>, vector<16x16x128xf32>
      %76 = vector.shape_cast %75 : vector<16x16x128xf32> to vector<256x128xf32>
      %77 = arith.truncf %76 : vector<256x128xf32> to vector<256x128xbf16>
      %c9_i32_62 = arith.constant 9 : i32
      %78 = arith.muli %arg12, %c9_i32_62 : i32
      %c3_i32 = arith.constant 3 : i32
      %79 = arith.addi %78, %c3_i32 : i32
      %80 = arith.index_cast %79 : i32 to index
      %c0_63 = arith.constant 0 : index
      %c0_64 = arith.constant 0 : index
      %81 = vector.load %arg3[%80, %c0_63, %c0_64] : memref<126x128x128xbf16, #tpu.memory_space<vmem>>, vector<1x128x128xbf16>
      %82 = vector.shape_cast %81 : vector<1x128x128xbf16> to vector<128x128xbf16>
      %cst_65 = arith.constant dense<0.000000e+00> : vector<256x128xf32>
      %83 = tpu.matmul %77, %82, %cst_65 {dimension_numbers = #tpu.dot_dimension_numbers<[1], [0], [0], [1], [0, 0, 1, 1], [], []>} : vector<256x128xbf16>, vector<128x128xbf16>, vector<256x128xf32> -> vector<256x128xf32>
      %c0_66 = arith.constant 0 : index
      %c0_67 = arith.constant 0 : index
      %84 = vector.load %arg11[%c0_66, %c0_67] : memref<256x128xf32, #tpu.memory_space<vmem>>, vector<256x128xf32>
      %85 = arith.addf %84, %83 : vector<256x128xf32>
      %c0_68 = arith.constant 0 : index
      %c0_69 = arith.constant 0 : index
      %86 = vector.load %arg11[%c0_68, %c0_69] : memref<256x128xf32, #tpu.memory_space<vmem>>, vector<256x128xf32>
      tpu.vector_store %arg11[%c0_68, %c0_69], %85 {strides = array<i32>} : memref<256x128xf32, #tpu.memory_space<vmem>>, vector<256x128xf32>,
      %c1_70 = arith.constant 1 : index
      %c8_71 = arith.constant 8 : index
      %c0_72 = arith.constant 0 : index
      %87 = vector.load %arg10[%c1_70, %c8_71, %c0_72] : memref<18x32x128xf32, #tpu.memory_space<vmem>>, vector<16x16x128xf32>
      %88 = vector.shape_cast %87 : vector<16x16x128xf32> to vector<256x128xf32>
      %89 = arith.truncf %88 : vector<256x128xf32> to vector<256x128xbf16>
      %c9_i32_73 = arith.constant 9 : i32
      %90 = arith.muli %arg12, %c9_i32_73 : i32
      %c4_i32 = arith.constant 4 : i32
      %91 = arith.addi %90, %c4_i32 : i32
      %92 = arith.index_cast %91 : i32 to index
      %c0_74 = arith.constant 0 : index
      %c0_75 = arith.constant 0 : index
      %93 = vector.load %arg3[%92, %c0_74, %c0_75] : memref<126x128x128xbf16, #tpu.memory_space<vmem>>, vector<1x128x128xbf16>
      %94 = vector.shape_cast %93 : vector<1x128x128xbf16> to vector<128x128xbf16>
      %cst_76 = arith.constant dense<0.000000e+00> : vector<256x128xf32>
      %95 = tpu.matmul %89, %94, %cst_76 {dimension_numbers = #tpu.dot_dimension_numbers<[1], [0], [0], [1], [0, 0, 1, 1], [], []>} : vector<256x128xbf16>, vector<128x128xbf16>, vector<256x128xf32> -> vector<256x128xf32>
      %c0_77 = arith.constant 0 : index
      %c0_78 = arith.constant 0 : index
      %96 = vector.load %arg11[%c0_77, %c0_78] : memref<256x128xf32, #tpu.memory_space<vmem>>, vector<256x128xf32>
      %97 = arith.addf %96, %95 : vector<256x128xf32>
      %c0_79 = arith.constant 0 : index
      %c0_80 = arith.constant 0 : index
      %98 = vector.load %arg11[%c0_79, %c0_80] : memref<256x128xf32, #tpu.memory_space<vmem>>, vector<256x128xf32>
      tpu.vector_store %arg11[%c0_79, %c0_80], %97 {strides = array<i32>} : memref<256x128xf32, #tpu.memory_space<vmem>>, vector<256x128xf32>,
      %c1_81 = arith.constant 1 : index
      %c9_82 = arith.constant 9 : index
      %c0_83 = arith.constant 0 : index
      %99 = vector.load %arg10[%c1_81, %c9_82, %c0_83] : memref<18x32x128xf32, #tpu.memory_space<vmem>>, vector<16x16x128xf32>
      %100 = vector.shape_cast %99 : vector<16x16x128xf32> to vector<256x128xf32>
      %101 = arith.truncf %100 : vector<256x128xf32> to vector<256x128xbf16>
      %c9_i32_84 = arith.constant 9 : i32
      %102 = arith.muli %arg12, %c9_i32_84 : i32
      %c5_i32 = arith.constant 5 : i32
      %103 = arith.addi %102, %c5_i32 : i32
      %104 = arith.index_cast %103 : i32 to index
      %c0_85 = arith.constant 0 : index
      %c0_86 = arith.constant 0 : index
      %105 = vector.load %arg3[%104, %c0_85, %c0_86] : memref<126x128x128xbf16, #tpu.memory_space<vmem>>, vector<1x128x128xbf16>
      %106 = vector.shape_cast %105 : vector<1x128x128xbf16> to vector<128x128xbf16>
      %cst_87 = arith.constant dense<0.000000e+00> : vector<256x128xf32>
      %107 = tpu.matmul %101, %106, %cst_87 {dimension_numbers = #tpu.dot_dimension_numbers<[1], [0], [0], [1], [0, 0, 1, 1], [], []>} : vector<256x128xbf16>, vector<128x128xbf16>, vector<256x128xf32> -> vector<256x128xf32>
      %c0_88 = arith.constant 0 : index
      %c0_89 = arith.constant 0 : index
      %108 = vector.load %arg11[%c0_88, %c0_89] : memref<256x128xf32, #tpu.memory_space<vmem>>, vector<256x128xf32>
      %109 = arith.addf %108, %107 : vector<256x128xf32>
      %c0_90 = arith.constant 0 : index
      %c0_91 = arith.constant 0 : index
      %110 = vector.load %arg11[%c0_90, %c0_91] : memref<256x128xf32, #tpu.memory_space<vmem>>, vector<256x128xf32>
      tpu.vector_store %arg11[%c0_90, %c0_91], %109 {strides = array<i32>} : memref<256x128xf32, #tpu.memory_space<vmem>>, vector<256x128xf32>,
      %c2 = arith.constant 2 : index
      %c7_92 = arith.constant 7 : index
      %c0_93 = arith.constant 0 : index
      %111 = vector.load %arg10[%c2, %c7_92, %c0_93] : memref<18x32x128xf32, #tpu.memory_space<vmem>>, vector<16x16x128xf32>
      %112 = vector.shape_cast %111 : vector<16x16x128xf32> to vector<256x128xf32>
      %113 = arith.truncf %112 : vector<256x128xf32> to vector<256x128xbf16>
      %c9_i32_94 = arith.constant 9 : i32
      %114 = arith.muli %arg12, %c9_i32_94 : i32
      %c6_i32 = arith.constant 6 : i32
      %115 = arith.addi %114, %c6_i32 : i32
      %116 = arith.index_cast %115 : i32 to index
      %c0_95 = arith.constant 0 : index
      %c0_96 = arith.constant 0 : index
      %117 = vector.load %arg3[%116, %c0_95, %c0_96] : memref<126x128x128xbf16, #tpu.memory_space<vmem>>, vector<1x128x128xbf16>
      %118 = vector.shape_cast %117 : vector<1x128x128xbf16> to vector<128x128xbf16>
      %cst_97 = arith.constant dense<0.000000e+00> : vector<256x128xf32>
      %119 = tpu.matmul %113, %118, %cst_97 {dimension_numbers = #tpu.dot_dimension_numbers<[1], [0], [0], [1], [0, 0, 1, 1], [], []>} : vector<256x128xbf16>, vector<128x128xbf16>, vector<256x128xf32> -> vector<256x128xf32>
      %c0_98 = arith.constant 0 : index
      %c0_99 = arith.constant 0 : index
      %120 = vector.load %arg11[%c0_98, %c0_99] : memref<256x128xf32, #tpu.memory_space<vmem>>, vector<256x128xf32>
      %121 = arith.addf %120, %119 : vector<256x128xf32>
      %c0_100 = arith.constant 0 : index
      %c0_101 = arith.constant 0 : index
      %122 = vector.load %arg11[%c0_100, %c0_101] : memref<256x128xf32, #tpu.memory_space<vmem>>, vector<256x128xf32>
      tpu.vector_store %arg11[%c0_100, %c0_101], %121 {strides = array<i32>} : memref<256x128xf32, #tpu.memory_space<vmem>>, vector<256x128xf32>,
      %c2_102 = arith.constant 2 : index
      %c8_103 = arith.constant 8 : index
      %c0_104 = arith.constant 0 : index
      %123 = vector.load %arg10[%c2_102, %c8_103, %c0_104] : memref<18x32x128xf32, #tpu.memory_space<vmem>>, vector<16x16x128xf32>
      %124 = vector.shape_cast %123 : vector<16x16x128xf32> to vector<256x128xf32>
      %125 = arith.truncf %124 : vector<256x128xf32> to vector<256x128xbf16>
      %c9_i32_105 = arith.constant 9 : i32
      %126 = arith.muli %arg12, %c9_i32_105 : i32
      %c7_i32 = arith.constant 7 : i32
      %127 = arith.addi %126, %c7_i32 : i32
      %128 = arith.index_cast %127 : i32 to index
      %c0_106 = arith.constant 0 : index
      %c0_107 = arith.constant 0 : index
      %129 = vector.load %arg3[%128, %c0_106, %c0_107] : memref<126x128x128xbf16, #tpu.memory_space<vmem>>, vector<1x128x128xbf16>
      %130 = vector.shape_cast %129 : vector<1x128x128xbf16> to vector<128x128xbf16>
      %cst_108 = arith.constant dense<0.000000e+00> : vector<256x128xf32>
      %131 = tpu.matmul %125, %130, %cst_108 {dimension_numbers = #tpu.dot_dimension_numbers<[1], [0], [0], [1], [0, 0, 1, 1], [], []>} : vector<256x128xbf16>, vector<128x128xbf16>, vector<256x128xf32> -> vector<256x128xf32>
      %c0_109 = arith.constant 0 : index
      %c0_110 = arith.constant 0 : index
      %132 = vector.load %arg11[%c0_109, %c0_110] : memref<256x128xf32, #tpu.memory_space<vmem>>, vector<256x128xf32>
      %133 = arith.addf %132, %131 : vector<256x128xf32>
      %c0_111 = arith.constant 0 : index
      %c0_112 = arith.constant 0 : index
      %134 = vector.load %arg11[%c0_111, %c0_112] : memref<256x128xf32, #tpu.memory_space<vmem>>, vector<256x128xf32>
      tpu.vector_store %arg11[%c0_111, %c0_112], %133 {strides = array<i32>} : memref<256x128xf32, #tpu.memory_space<vmem>>, vector<256x128xf32>,
      %c2_113 = arith.constant 2 : index
      %c9_114 = arith.constant 9 : index
      %c0_115 = arith.constant 0 : index
      %135 = vector.load %arg10[%c2_113, %c9_114, %c0_115] : memref<18x32x128xf32, #tpu.memory_space<vmem>>, vector<16x16x128xf32>
      %136 = vector.shape_cast %135 : vector<16x16x128xf32> to vector<256x128xf32>
      %137 = arith.truncf %136 : vector<256x128xf32> to vector<256x128xbf16>
      %c9_i32_116 = arith.constant 9 : i32
      %138 = arith.muli %arg12, %c9_i32_116 : i32
      %c8_i32_117 = arith.constant 8 : i32
      %139 = arith.addi %138, %c8_i32_117 : i32
      %140 = arith.index_cast %139 : i32 to index
      %c0_118 = arith.constant 0 : index
      %c0_119 = arith.constant 0 : index
      %141 = vector.load %arg3[%140, %c0_118, %c0_119] : memref<126x128x128xbf16, #tpu.memory_space<vmem>>, vector<1x128x128xbf16>
      %142 = vector.shape_cast %141 : vector<1x128x128xbf16> to vector<128x128xbf16>
      %cst_120 = arith.constant dense<0.000000e+00> : vector<256x128xf32>
      %143 = tpu.matmul %137, %142, %cst_120 {dimension_numbers = #tpu.dot_dimension_numbers<[1], [0], [0], [1], [0, 0, 1, 1], [], []>} : vector<256x128xbf16>, vector<128x128xbf16>, vector<256x128xf32> -> vector<256x128xf32>
      %c0_121 = arith.constant 0 : index
      %c0_122 = arith.constant 0 : index
      %144 = vector.load %arg11[%c0_121, %c0_122] : memref<256x128xf32, #tpu.memory_space<vmem>>, vector<256x128xf32>
      %145 = arith.addf %144, %143 : vector<256x128xf32>
      %c0_123 = arith.constant 0 : index
      %c0_124 = arith.constant 0 : index
      %146 = vector.load %arg11[%c0_123, %c0_124] : memref<256x128xf32, #tpu.memory_space<vmem>>, vector<256x128xf32>
      tpu.vector_store %arg11[%c0_123, %c0_124], %145 {strides = array<i32>} : memref<256x128xf32, #tpu.memory_space<vmem>>, vector<256x128xf32>,
      %c0_125 = arith.constant 0 : index
      %c0_126 = arith.constant 0 : index
      %147 = vector.load %arg11[%c0_125, %c0_126] : memref<256x128xf32, #tpu.memory_space<vmem>>, vector<256x128xf32>
      %148 = arith.index_cast %arg12 : i32 to index
      %c0_127 = arith.constant 0 : index
      %c0_128 = arith.constant 0 : index
      %149 = vector.load %arg4[%148, %c0_127, %c0_128] : memref<14x1x128xf32, #tpu.memory_space<vmem>>, vector<1x1x128xf32>
      %150 = vector.shape_cast %149 : vector<1x1x128xf32> to vector<1x128xf32>
      %151 = vector.broadcast %150 : vector<1x128xf32> to vector<256x128xf32>
      %152 = arith.addf %147, %151 : vector<256x128xf32>
      %cst_129 = arith.constant 0.000000e+00 : f32
      %153 = vector.broadcast %cst_129 : f32 to vector<256x128xf32>
      %154 = arith.maximumf %152, %153 : vector<256x128xf32>
      %155 = arith.select %7, %154, %152 : vector<256x128xi1>, vector<256x128xf32>
      %156 = vector.shape_cast %155 : vector<256x128xf32> to vector<16x16x128xf32>
      %c1_130 = arith.constant 1 : index
      %c8_131 = arith.constant 8 : index
      %c0_132 = arith.constant 0 : index
      %157 = vector.load %arg10[%c1_130, %c8_131, %c0_132] : memref<18x32x128xf32, #tpu.memory_space<vmem>>, vector<16x16x128xf32>
      tpu.vector_store %arg10[%c1_130, %c8_131, %c0_132], %156 {strides = array<i32>} : memref<18x32x128xf32, #tpu.memory_space<vmem>>, vector<16x16x128xf32>,
    }
    %c14_i32_7 = arith.constant 14 : i32
    %9 = arith.index_cast %arg0 : i32 to index
    %c0_8 = arith.constant 0 : index
    %10 = memref.load %arg1[%9, %c0_8] : memref<2x2xi32, #tpu.memory_space<smem>>
    %11 = arith.index_cast %arg0 : i32 to index
    %c1_9 = arith.constant 1 : index
    %12 = memref.load %arg1[%11, %c1_9] : memref<2x2xi32, #tpu.memory_space<smem>>
    %c1_i32_10 = arith.constant 1 : i32
    %13 = arith.addi %c1_i32_10, %10 : i32
    %14 = arith.index_cast %13 : i32 to index
    %c0_11 = arith.constant 0 : index
    %c0_12 = arith.constant 0 : index
    %15 = vector.load %arg10[%14, %c0_11, %c0_12] : memref<18x32x128xf32, #tpu.memory_space<vmem>>, vector<1x32x128xf32>
    %16 = vector.shape_cast %15 : vector<1x32x128xf32> to vector<32x128xf32>
    %17 = tpu.iota {dimensions = array<i32: 0>} : vector<32x1xi32>
    %c8_i32 = arith.constant 8 : i32
    %18 = arith.addi %c8_i32, %12 : i32
    %19 = vector.broadcast %18 : i32 to vector<32x1xi32>
    %20 = arith.cmpi eq, %17, %19 : vector<32x1xi32>
    %cst_13 = arith.constant 0.000000e+00 : f32
    %21 = vector.shape_cast %20 : vector<32x1xi1> to vector<32x1xi1>
    %22 = vector.broadcast %21 : vector<32x1xi1> to vector<32x128xi1>
    %23 = vector.broadcast %cst_13 : f32 to vector<32x128xf32>
    %24 = arith.select %22, %16, %23 : vector<32x128xi1>, vector<32x128xf32>
    %cst_14 = arith.constant dense<0.000000e+00> : vector<128xf32>
    %25 = vector.multi_reduction <add>, %24, %cst_14 [0] : vector<32x128xf32> to vector<128xf32>
    %26 = vector.shape_cast %25 : vector<128xf32> to vector<1x128xf32>
    %27 = arith.truncf %26 : vector<1x128xf32> to vector<1x128xbf16>
    %c0_15 = arith.constant 0 : index
    %c0_16 = arith.constant 0 : index
    %28 = vector.load %arg5[%c0_15, %c0_16] : memref<128x256xbf16, #tpu.memory_space<vmem>>, vector<128x256xbf16>
    %cst_17 = arith.constant dense<0.000000e+00> : vector<1x256xf32>
    %29 = tpu.matmul %27, %28, %cst_17 {dimension_numbers = #tpu.dot_dimension_numbers<[1], [0], [0], [1], [0, 0, 1, 1], [], []>} : vector<1x128xbf16>, vector<128x256xbf16>, vector<1x256xf32> -> vector<1x256xf32>
    %c0_18 = arith.constant 0 : index
    %c0_19 = arith.constant 0 : index
    %30 = vector.load %arg6[%c0_18, %c0_19] : memref<1x256xf32, #tpu.memory_space<vmem>>, vector<1x256xf32>
    %31 = arith.addf %29, %30 : vector<1x256xf32>
    %cst_20 = arith.constant 0.000000e+00 : f32
    %32 = vector.broadcast %cst_20 : f32 to vector<1x256xf32>
    %33 = arith.maximumf %31, %32 : vector<1x256xf32>
    %34 = arith.truncf %33 : vector<1x256xf32> to vector<1x256xbf16>
    %c0_21 = arith.constant 0 : index
    %c0_22 = arith.constant 0 : index
    %35 = vector.load %arg7[%c0_21, %c0_22] : memref<256x128xbf16, #tpu.memory_space<vmem>>, vector<256x128xbf16>
    %cst_23 = arith.constant dense<0.000000e+00> : vector<1x128xf32>
    %36 = tpu.matmul %34, %35, %cst_23 {dimension_numbers = #tpu.dot_dimension_numbers<[1], [0], [0], [1], [0, 0, 1, 1], [], []>} : vector<1x256xbf16>, vector<256x128xbf16>, vector<1x128xf32> -> vector<1x128xf32>
    %c0_24 = arith.constant 0 : index
    %c0_25 = arith.constant 0 : index
    %37 = vector.load %arg8[%c0_24, %c0_25] : memref<1x128xf32, #tpu.memory_space<vmem>>, vector<1x128xf32>
    %38 = arith.addf %36, %37 : vector<1x128xf32>
    %39 = vector.shape_cast %38 : vector<1x128xf32> to vector<1x1x128xf32>
    %c0_26 = arith.constant 0 : index
    %c0_27 = arith.constant 0 : index
    %c0_28 = arith.constant 0 : index
    %40 = vector.load %arg9[%c0_26, %c0_27, %c0_28] : memref<1x1x128xf32, #tpu.memory_space<vmem>>, vector<1x1x128xf32>
    tpu.vector_store %arg9[%c0_26, %c0_27, %c0_28], %39 {strides = array<i32>} : memref<1x1x128xf32, #tpu.memory_space<vmem>>, vector<1x1x128xf32>,
    return
  }
  func.func @transform_0(%arg0: i32, %arg1: memref<2x2xi32, #tpu.memory_space<smem>>) -> (i32, i32, i32, i32) {
    %c0_i32 = arith.constant 0 : i32
    %c0_i32_0 = arith.constant 0 : i32
    %c0_i32_1 = arith.constant 0 : i32
    %c0_i32_2 = arith.constant 0 : i32
    return %arg0, %c0_i32, %c0_i32_0, %c0_i32_1 : i32, i32, i32, i32
  }
  func.func @transform_1(%arg0: i32, %arg1: memref<2x2xi32, #tpu.memory_space<smem>>) -> (i32, i32, i32) {
    %c0_i32 = arith.constant 0 : i32
    %c0_i32_0 = arith.constant 0 : i32
    %c0_i32_1 = arith.constant 0 : i32
    %c0_i32_2 = arith.constant 0 : i32
    return %c0_i32, %c0_i32_0, %c0_i32_1 : i32, i32, i32
  }
  func.func @transform_2(%arg0: i32, %arg1: memref<2x2xi32, #tpu.memory_space<smem>>) -> (i32, i32, i32) {
    %c0_i32 = arith.constant 0 : i32
    %c0_i32_0 = arith.constant 0 : i32
    %c0_i32_1 = arith.constant 0 : i32
    %c0_i32_2 = arith.constant 0 : i32
    return %c0_i32, %c0_i32_0, %c0_i32_1 : i32, i32, i32
  }
  func.func @transform_3(%arg0: i32, %arg1: memref<2x2xi32, #tpu.memory_space<smem>>) -> (i32, i32) {
    %c0_i32 = arith.constant 0 : i32
    %c0_i32_0 = arith.constant 0 : i32
    %c0_i32_1 = arith.constant 0 : i32
    return %c0_i32, %c0_i32_0 : i32, i32
  }
  func.func @transform_4(%arg0: i32, %arg1: memref<2x2xi32, #tpu.memory_space<smem>>) -> (i32, i32) {
    %c0_i32 = arith.constant 0 : i32
    %c0_i32_0 = arith.constant 0 : i32
    %c0_i32_1 = arith.constant 0 : i32
    return %c0_i32, %c0_i32_0 : i32, i32
  }
  func.func @transform_5(%arg0: i32, %arg1: memref<2x2xi32, #tpu.memory_space<smem>>) -> (i32, i32) {
    %c0_i32 = arith.constant 0 : i32
    %c0_i32_0 = arith.constant 0 : i32
    %c0_i32_1 = arith.constant 0 : i32
    return %c0_i32, %c0_i32_0 : i32, i32
  }
  func.func @transform_6(%arg0: i32, %arg1: memref<2x2xi32, #tpu.memory_space<smem>>) -> (i32, i32) {
    %c0_i32 = arith.constant 0 : i32
    %c0_i32_0 = arith.constant 0 : i32
    %c0_i32_1 = arith.constant 0 : i32
    return %c0_i32, %c0_i32_0 : i32, i32
  }
  func.func @transform_7(%arg0: i32, %arg1: memref<2x2xi32, #tpu.memory_space<smem>>) -> (i32, i32, i32) {
    %c0_i32 = arith.constant 0 : i32
    %c0_i32_0 = arith.constant 0 : i32
    %c0_i32_1 = arith.constant 0 : i32
    return %arg0, %c0_i32, %c0_i32_0 : i32, i32, i32
  }
}

</mosaic_0001>

<bundles_post_ra>
// kernel: sokonet_forward.1
= control target key start
LH: loop header
LB: loop body
LE: loop exit
PB: predicated region body
PF: predicated region fallthrough
CT: control target
= control target key end

     0   :  { %s6544_s0 = inlined_call_operand.vmem [shape: s32[2,2], index: 0, kind: input, shape index: {}]   ;;  %s6545_s1 = inlined_call_operand.vmem [shape: f32[2,16,16,128], index: 1, kind: input, shape index: {}]   ;;  %s6546_s2 = inlined_call_operand.vmem [shape: bf16[126,128,128], index: 2, kind: input, shape index: {}]   ;;  %s6547_s3 = inlined_call_operand.vmem [shape: f32[14,1,128], index: 3, kind: input, shape index: {}]   ;;  %s6548_s4 = inlined_call_operand.vmem [shape: bf16[128,256], index: 4, kind: input, shape index: {}]   ;;  %s6549_s5 = inlined_call_operand.vmem [shape: f32[1,256], index: 5, kind: input, shape index: {}]   ;;  %s6550_s6 = inlined_call_operand.vmem [shape: bf16[256,128], index: 6, kind: input, shape index: {}]   ;;  %s6551_s7 = inlined_call_operand.vmem [shape: f32[1,128], index: 7, kind: input, shape index: {}]   ;;  %s6552_s8 = inlined_call_operand.vmem [shape: f32[2,1,128], index: 8, kind: output, shape index: {}]  }
   0x1   :  { %s13_s29 = sshll.u32 %s6544_s0, 4  ;;  %s14_s29 = int_to_ptr.vmem [resolvable:$true] %s13_s29 }
   0x2   :  { %s5425_s30 = scalar_lea.vmem %s14_s29, 32  ;;  %p5430_p1 = scmp.lt.s32.totalorder %s14_s29, %s14_s29 }
   0x3   :  { %p5426_p0 = scmp.ne.s32.totalorder %s14_s29, %s5425_s30  ;;  %p5431_p2 = scmp.lt.s32.totalorder %s5425_s30, %s5425_s30 }
   0x5   :  { %p5432_p3 = por %p5431_p2, %p5430_p1 }
   0x7   :  { %p5433_p4 = pnand %p5432_p3, %p5426_p0 }
   0x9   :  { %5436 = shalt.err (!%p5433_p4)  }
   0xa   :  { %s5455_s9 = smov [#allocation5]  }
   0xb   :  { %16 = dma.vmem_to_smem %s14_s29, 32, %s5455_s9, [#allocation4] }
   0xc   :  { %5445 = dma.done.wait [#allocation4], 32 }
   0xd   :  { %5446 = vsyncadd [#allocation4], 4294967264 }
   0xe   :  { %18 = sfence }
   0xf   :  { %s5506_s10 = smov 0  }
  0x10 LB: > { %s5512_s0 = sadd.s32 4294967295, %s5449_s10   ;;  %p4352_p5 = scmp.ge.s32.totalorder %s5449_s10, 1  ;;  %s5449_s10 = sphi %s5506_s10, %s24_s10  }
  0x11   : > { %p244_p6 = scmp.lt.s32.totalorder %s5449_s10, 3 }
  0x13   : > { %p245_p7 = pnand %p4352_p5, %p244_p6 }
  0x14   : > { %p274_p8 = scmp.lt.s32.totalorder (!%p245_p7), %s5512_s0, 1  ;;  %s5568_s19 = smov (!%p245_p7), 0  }
  0x15   : > { %248 = sbr.rel (%p245_p7) target bundleno = 1019 (0x3fb), region = 48 }
  0x1a   : > { %v6553_v0 = vlaneseq  ;;  %v5456_v1 = vmov 0.0   ;;  %s5523_s11 = scalar_select %p274_p8, %s5512_s0, 1 }
  0x1b   : > { %283 = vst [vmem:[#allocation2] sm:$0xff] %v5456_v1  ;;  %284 = vst [vmem:[#allocation2 + $0x8] sm:$0xff] %v5456_v1 }
  0x1c   : > { %285 = vst [vmem:[#allocation2 + $0x10] sm:$0xff] %v5456_v1  ;;  %286 = vst [vmem:[#allocation2 + $0x18] sm:$0xff] %v5456_v1  ;;  %v5518_v2 = vand.u32 127, %v6553_v0  ;;  %s4606_s12 = sshll.u32 %s5523_s11, 8  ;;  %s281_s15 = scalar_lea.vmem %s6552_s8, %s5523_s11 }
  0x1d   : > { %287 = vst [vmem:[#allocation2 + $0x20] sm:$0xff] %v5456_v1  ;;  %290 = vst [vmem:[#allocation2 + $0x38] sm:$0xff] %v5456_v1  ;;  %s5534_s18 = scalar_lea.vmem %s6545_s1, %s4606_s12 }
  0x1e   : > { %291 = vst [vmem:[#allocation2 + $0x40] sm:$0xff] %v5456_v1  ;;  %294 = vst [vmem:[#allocation2 + $0x58] sm:$0xff] %v5456_v1  ;;  %vm422_vm0 = vcmp.lt.s32.totalorder %v5518_v2, 64  ;;  %v355_v3 = vld [vmem:[%s5534_s18] sm:$0xff]  ;;  %v356_v4 = vld [vmem:[%s5534_s18 + $0x8] sm:$0xff] }
  0x1f   : > { %295 = vst [vmem:[#allocation2 + $0x60] sm:$0xff] %v5456_v1  ;;  %298 = vst [vmem:[#allocation2 + $0x78] sm:$0xff] %v5456_v1  ;;  %v357_v5 = vld [vmem:[%s5534_s18 + $0x10] sm:$0xff]  ;;  %v358_v6 = vld [vmem:[%s5534_s18 + $0x18] sm:$0xff] }
  0x20   : > { %299 = vst [vmem:[#allocation2 + $0x80] sm:$0xff] %v5456_v1  ;;  %302 = vst [vmem:[#allocation2 + $0x98] sm:$0xff] %v5456_v1  ;;  %v359_v7 = vld [vmem:[%s5534_s18 + $0x20] sm:$0xff]  ;;  %v360_v8 = vld [vmem:[%s5534_s18 + $0x28] sm:$0xff] }
  0x21   : > { %303 = vst [vmem:[#allocation2 + $0xa0] sm:$0xff] %v5456_v1  ;;  %306 = vst [vmem:[#allocation2 + $0xb8] sm:$0xff] %v5456_v1  ;;  %v361_v9 = vld [vmem:[%s5534_s18 + $0x30] sm:$0xff]  ;;  %v362_v10 = vld [vmem:[%s5534_s18 + $0x38] sm:$0xff] }
  0x22   : > { %307 = vst [vmem:[#allocation2 + $0xc0] sm:$0xff] %v5456_v1  ;;  %310 = vst [vmem:[#allocation2 + $0xd8] sm:$0xff] %v5456_v1  ;;  %v363_v11 = vld [vmem:[%s5534_s18 + $0x40] sm:$0xff]  ;;  %v364_v12 = vld [vmem:[%s5534_s18 + $0x48] sm:$0xff] }
  0x23   : > { %311 = vst [vmem:[#allocation2 + $0xe0] sm:$0xff] %v5456_v1  ;;  %314 = vst [vmem:[#allocation2 + $0xf8] sm:$0xff] %v5456_v1  ;;  %v365_v13 = vld [vmem:[%s5534_s18 + $0x50] sm:$0xff]  ;;  %v366_v14 = vld [vmem:[%s5534_s18 + $0x58] sm:$0xff] }
  0x24   : > { %315 = vst [vmem:[#allocation2 + $0x100] sm:$0xff] %v5456_v1  ;;  %318 = vst [vmem:[#allocation2 + $0x118] sm:$0xff] %v5456_v1  ;;  %v367_v15 = vld [vmem:[%s5534_s18 + $0x60] sm:$0xff]  ;;  %v368_v16 = vld [vmem:[%s5534_s18 + $0x68] sm:$0xff] }
  0x25   : > { %319 = vst [vmem:[#allocation2 + $0x120] sm:$0xff] %v5456_v1  ;;  %322 = vst [vmem:[#allocation2 + $0x138] sm:$0xff] %v5456_v1  ;;  %v369_v17 = vld [vmem:[%s5534_s18 + $0x70] sm:$0xff]  ;;  %v370_v18 = vld [vmem:[%s5534_s18 + $0x78] sm:$0xff] }
  0x26   : > { %323 = vst [vmem:[#allocation2 + $0x140] sm:$0xff] %v5456_v1  ;;  %326 = vst [vmem:[#allocation2 + $0x158] sm:$0xff] %v5456_v1  ;;  %v371_v19 = vld [vmem:[%s5534_s18 + $0x80] sm:$0xff]  ;;  %v372_v20 = vld [vmem:[%s5534_s18 + $0x88] sm:$0xff] }
  0x27   : > { %327 = vst [vmem:[#allocation2 + $0x160] sm:$0xff] %v5456_v1  ;;  %330 = vst [vmem:[#allocation2 + $0x178] sm:$0xff] %v5456_v1  ;;  %v373_v21 = vld [vmem:[%s5534_s18 + $0x90] sm:$0xff]  ;;  %v374_v22 = vld [vmem:[%s5534_s18 + $0x98] sm:$0xff] }
  0x28   : > { %331 = vst [vmem:[#allocation2 + $0x180] sm:$0xff] %v5456_v1  ;;  %334 = vst [vmem:[#allocation2 + $0x198] sm:$0xff] %v5456_v1  ;;  %v375_v23 = vld [vmem:[%s5534_s18 + $0xa0] sm:$0xff]  ;;  %v376_v24 = vld [vmem:[%s5534_s18 + $0xa8] sm:$0xff] }
  0x29   : > { %335 = vst [vmem:[#allocation2 + $0x1a0] sm:$0xff] %v5456_v1  ;;  %338 = vst [vmem:[#allocation2 + $0x1b8] sm:$0xff] %v5456_v1  ;;  %v377_v25 = vld [vmem:[%s5534_s18 + $0xb0] sm:$0xff]  ;;  %v378_v26 = vld [vmem:[%s5534_s18 + $0xb8] sm:$0xff] }
  0x2a   : > { %339 = vst [vmem:[#allocation2 + $0x1c0] sm:$0xff] %v5456_v1  ;;  %342 = vst [vmem:[#allocation2 + $0x1d8] sm:$0xff] %v5456_v1  ;;  %v379_v27 = vld [vmem:[%s5534_s18 + $0xc0] sm:$0xff]  ;;  %v380_v28 = vld [vmem:[%s5534_s18 + $0xc8] sm:$0xff] }
  0x2b   : > { %343 = vst [vmem:[#allocation2 + $0x1e0] sm:$0xff] %v5456_v1  ;;  %346 = vst [vmem:[#allocation2 + $0x1f8] sm:$0xff] %v5456_v1  ;;  %v381_v29 = vld [vmem:[%s5534_s18 + $0xd0] sm:$0xff]  ;;  %v382_v30 = vld [vmem:[%s5534_s18 + $0xd8] sm:$0xff] }
  0x2c   : > { %347 = vst [vmem:[#allocation2 + $0x200] sm:$0xff] %v5456_v1  ;;  %350 = vst [vmem:[#allocation2 + $0x218] sm:$0xff] %v5456_v1  ;;  %v383_v31 = vld [vmem:[%s5534_s18 + $0xe0] sm:$0xff]  ;;  %v384_v32 = vld [vmem:[%s5534_s18 + $0xe8] sm:$0xff] }
  0x2d   : > { %351 = vst [vmem:[#allocation2 + $0x220] sm:$0xff] %v5456_v1  ;;  %352 = vst [vmem:[#allocation2 + $0x228] sm:$0xff] %v5456_v1  ;;  %v385_v33 = vld [vmem:[%s5534_s18 + $0xf0] sm:$0xff]  ;;  %v386_v34 = vld [vmem:[%s5534_s18 + $0xf8] sm:$0xff] }
  0x2e   : > { %353 = vst [vmem:[#allocation2 + $0x230] sm:$0xff] %v5456_v1  ;;  %354 = vst [vmem:[#allocation2 + $0x238] sm:$0xff] %v5456_v1 }
  0x2f   : > { %388 = vst [vmem:[#allocation2 + $0x28] sm:$0xff] %v355_v3  ;;  %389 = vst [vmem:[#allocation2 + $0x30] sm:$0xff] %v356_v4 }
  0x30   : > { %390 = vst [vmem:[#allocation2 + $0x48] sm:$0xff] %v357_v5  ;;  %391 = vst [vmem:[#allocation2 + $0x50] sm:$0xff] %v358_v6 }
  0x31   : > { %392 = vst [vmem:[#allocation2 + $0x68] sm:$0xff] %v359_v7  ;;  %393 = vst [vmem:[#allocation2 + $0x70] sm:$0xff] %v360_v8 }
  0x32   : > { %394 = vst [vmem:[#allocation2 + $0x88] sm:$0xff] %v361_v9  ;;  %395 = vst [vmem:[#allocation2 + $0x90] sm:$0xff] %v362_v10 }
  0x33   : > { %396 = vst [vmem:[#allocation2 + $0xa8] sm:$0xff] %v363_v11  ;;  %397 = vst [vmem:[#allocation2 + $0xb0] sm:$0xff] %v364_v12 }
  0x34   : > { %398 = vst [vmem:[#allocation2 + $0xc8] sm:$0xff] %v365_v13  ;;  %399 = vst [vmem:[#allocation2 + $0xd0] sm:$0xff] %v366_v14 }
  0x35   : > { %400 = vst [vmem:[#allocation2 + $0xe8] sm:$0xff] %v367_v15  ;;  %401 = vst [vmem:[#allocation2 + $0xf0] sm:$0xff] %v368_v16 }
  0x36   : > { %402 = vst [vmem:[#allocation2 + $0x108] sm:$0xff] %v369_v17  ;;  %403 = vst [vmem:[#allocation2 + $0x110] sm:$0xff] %v370_v18 }
  0x37   : > { %404 = vst [vmem:[#allocation2 + $0x128] sm:$0xff] %v371_v19  ;;  %405 = vst [vmem:[#allocation2 + $0x130] sm:$0xff] %v372_v20 }
  0x38   : > { %406 = vst [vmem:[#allocation2 + $0x148] sm:$0xff] %v373_v21  ;;  %407 = vst [vmem:[#allocation2 + $0x150] sm:$0xff] %v374_v22 }
  0x39   : > { %408 = vst [vmem:[#allocation2 + $0x168] sm:$0xff] %v375_v23  ;;  %409 = vst [vmem:[#allocation2 + $0x170] sm:$0xff] %v376_v24 }
  0x3a   : > { %410 = vst [vmem:[#allocation2 + $0x188] sm:$0xff] %v377_v25  ;;  %411 = vst [vmem:[#allocation2 + $0x190] sm:$0xff] %v378_v26 }
  0x3b   : > { %412 = vst [vmem:[#allocation2 + $0x1a8] sm:$0xff] %v379_v27  ;;  %413 = vst [vmem:[#allocation2 + $0x1b0] sm:$0xff] %v380_v28 }
  0x3c   : > { %414 = vst [vmem:[#allocation2 + $0x1c8] sm:$0xff] %v381_v29  ;;  %415 = vst [vmem:[#allocation2 + $0x1d0] sm:$0xff] %v382_v30 }
  0x3d   : > { %416 = vst [vmem:[#allocation2 + $0x1e8] sm:$0xff] %v383_v31  ;;  %417 = vst [vmem:[#allocation2 + $0x1f0] sm:$0xff] %v384_v32 }
  0x3e   : > { %418 = vst [vmem:[#allocation2 + $0x208] sm:$0xff] %v385_v33  ;;  %419 = vst [vmem:[#allocation2 + $0x210] sm:$0xff] %v386_v34 }
  0x3f LB: >> { %v429_v35 = vld [vmem:[#allocation2 + $0x7] sm:$0xff]  ;;  %v430_v36 = vld [vmem:[#allocation2 + $0xf] sm:$0xff]  ;;  %s4607_s20 = smul.u32 576, %s5453_s19  ;;  %s3755_s26 = scalar_lea.vmem %s6547_s3, %s5453_s19  ;;  %s5453_s19 = sphi %s5568_s19, %s428_s19  }
  0x40   : >> { %v445_v37 = vld [vmem:[#allocation2 + $0x107] sm:$0xff]  ;;  %v461_v38 = vpack.c.bf16 %v430_v36, %v429_v35  ;;  %v446_v39 = vld [vmem:[#allocation2 + $0x10f] sm:$0xff]  ;;  %s428_s19 = sadd.s32 1, %s5453_s19  }
  0x41   : >> { %v5574_v40 = vpack.c.bf16 %v446_v39, %v445_v37  ;;  %s5579_s23 = scalar_lea.vmem %s6546_s2, %s4607_s20  ;;  %v431_v49 = vld [vmem:[#allocation2 + $0x27] sm:$0xff]  ;;  %v432_v50 = vld [vmem:[#allocation2 + $0x2f] sm:$0xff]  ;;  %p425_p9 = scmp.ge.s32.totalorder %s428_s19, 14  }
  0x42   : >> { %4862 = vmatprep.mubr.bf16.mxu0 %v461_v38  ;;  %v5313_v41 = vld [vmem:[%s5579_s23 + $0x38] sm:$0xff]   ;;  %v5314_v42 = vld [vmem:[%s5579_s23 + $0x30] sm:$0xff]   ;;  %v5315_v43 = vld [vmem:[%s5579_s23 + $0x28] sm:$0xff]   ;;  %v5592_v56 = vpack.c.bf16 %v432_v50, %v431_v49  ;;  %s4566_s29 = sshll.u32 (%p425_p9), %s5512_s0, 7 }
  0x43   : >> { %4878 = vmatprep.mubr.bf16.mxu1 %v5574_v40  ;;  %4846 = vmatprep.subr.bf16.mxu0 %v5313_v41  ;;  %v5316_v44 = vld [vmem:[%s5579_s23 + $0x20] sm:$0xff]   ;;  %v5317_v45 = vld [vmem:[%s5579_s23 + $0x18] sm:$0xff]   ;;  %v5318_v46 = vld [vmem:[%s5579_s23 + $0x10] sm:$0xff]   ;;  %s3892_s12 = sld [smem:[#allocation5 + %s4566_s29]] (%p425_p9)  ;;  %s3893_s13 = sadd.s32 (%p425_p9), 1, %s4566_s29 }
  0x44   : >> { %5278 = vmatprep.subr.bf16.mxu1 %v5313_v41  ;;  %4847 = vmatpush3.bf16.msra.mxu0 %v5313_v41  ;;  %v5319_v47 = vld [vmem:[%s5579_s23 + $0x8] sm:$0xff]   ;;  %v5320_v48 = vld [vmem:[%s5579_s23] sm:$0xff]   ;;  %v5321_v53 = vld [vmem:[%s5579_s23 + $0x78] sm:$0xff]   ;;  %s3894_s17 = sld [smem:[#allocation5 + %s3893_s13]] (%p425_p9) }
  0x45   : >> { %5286 = vmatpush3.bf16.msra.mxu1 %v5313_v41  ;;  %4848 = vmatprep.subr.bf16.mxu0 %v5314_v42  ;;  %v447_v51 = vld [vmem:[#allocation2 + $0x127] sm:$0xff]  ;;  %v448_v52 = vld [vmem:[#allocation2 + $0x12f] sm:$0xff]  ;;  %v5322_v54 = vld [vmem:[%s5579_s23 + $0xb8] sm:$0xff]  }
  0x46   : >> { %5279 = vmatprep.subr.bf16.mxu1 %v5314_v42  ;;  %v433_v55 = vld [vmem:[#allocation2 + $0x47] sm:$0xff]  ;;  %v5594_v57 = vpack.c.bf16 %v448_v52, %v447_v51  ;;  %v434_v58 = vld [vmem:[#allocation2 + $0x4f] sm:$0xff]  ;;  %v5329_v23 = vld [vmem:[%s5579_s23 + $0x58] sm:$0xff]  }
  0x47   : >> { %v449_v59 = vld [vmem:[#allocation2 + $0x147] sm:$0xff]  ;;  %v450_v60 = vld [vmem:[#allocation2 + $0x14f] sm:$0xff]  ;;  %v5598_v63 = vpack.c.bf16 %v434_v58, %v433_v55  ;;  %v5330_v24 = vld [vmem:[%s5579_s23 + $0x98] sm:$0xff]  }
  0x48   : >> { %4849 = vmatpush3.bf16.msra.mxu0 %v5314_v42  ;;  %v5323_v61 = vld [vmem:[%s5579_s23 + $0x70] sm:$0xff]   ;;  %v5600_v1 = vpack.c.bf16 %v450_v60, %v449_v59  ;;  %v435_v3 = vld [vmem:[#allocation2 + $0x67] sm:$0xff]  ;;  %v5337_v58 = vld [vmem:[%s5579_s23 + $0xf8] sm:$0xff]  }
  0x49   : >> { %5287 = vmatpush3.bf16.msra.mxu1 %v5314_v42  ;;  %4850 = vmatprep.subr.bf16.mxu0 %v5315_v43  ;;  %v5324_v62 = vld [vmem:[%s5579_s23 + $0xb0] sm:$0xff]   ;;  %v451_v5 = vld [vmem:[#allocation2 + $0x167] sm:$0xff]  ;;  %v5338_v59 = vld [vmem:[%s5579_s23 + $0x138] sm:$0xff]  }
  0x4a   : >> { %5280 = vmatprep.subr.bf16.mxu1 %v5315_v43  ;;  %v436_v4 = vld [vmem:[#allocation2 + $0x6f] sm:$0xff]  ;;  %v437_v9 = vld [vmem:[#allocation2 + $0x87] sm:$0xff] }
  0x4b   : >> { %v452_v6 = vld [vmem:[#allocation2 + $0x16f] sm:$0xff]  ;;  %v453_v11 = vld [vmem:[#allocation2 + $0x187] sm:$0xff]  ;;  %v5608_v12 = vpack.c.bf16 %v436_v4, %v435_v3 }
  0x4c   : >> { %4851 = vmatpush3.bf16.msra.mxu0 %v5315_v43  ;;  %v5325_v7 = vld [vmem:[%s5579_s23 + $0x68] sm:$0xff]   ;;  %v5610_v13 = vpack.c.bf16 %v452_v6, %v451_v5  ;;  %v5327_v15 = vld [vmem:[%s5579_s23 + $0x60] sm:$0xff]   ;;  %v5331_v31 = vld [vmem:[%s5579_s23 + $0x50] sm:$0xff]  }
  0x4d   : >> { %5288 = vmatpush3.bf16.msra.mxu1 %v5315_v43  ;;  %4852 = vmatprep.subr.bf16.mxu0 %v5316_v44  ;;  %v5326_v8 = vld [vmem:[%s5579_s23 + $0xa8] sm:$0xff]   ;;  %v5328_v16 = vld [vmem:[%s5579_s23 + $0xa0] sm:$0xff]   ;;  %v5332_v32 = vld [vmem:[%s5579_s23 + $0x90] sm:$0xff]  }
  0x4e   : >> { %5281 = vmatprep.subr.bf16.mxu1 %v5316_v44  ;;  %v438_v10 = vld [vmem:[#allocation2 + $0x8f] sm:$0xff]  ;;  %v439_v19 = vld [vmem:[#allocation2 + $0xa7] sm:$0xff] }
  0x4f   : >> { %v454_v14 = vld [vmem:[#allocation2 + $0x18f] sm:$0xff]  ;;  %v5614_v17 = vpack.c.bf16 %v438_v10, %v437_v9  ;;  %v455_v21 = vld [vmem:[#allocation2 + $0x1a7] sm:$0xff] }
  0x50   : >> { %4853 = vmatpush3.bf16.msra.mxu0 %v5316_v44  ;;  %v5616_v18 = vpack.c.bf16 %v454_v14, %v453_v11  ;;  %v440_v20 = vld [vmem:[#allocation2 + $0xaf] sm:$0xff]  ;;  %v441_v25 = vld [vmem:[#allocation2 + $0xc7] sm:$0xff] }
  0x51   : >> { %5289 = vmatpush3.bf16.msra.mxu1 %v5316_v44  ;;  %4854 = vmatprep.subr.bf16.mxu0 %v5317_v45  ;;  %v456_v22 = vld [vmem:[#allocation2 + $0x1af] sm:$0xff]  ;;  %v457_v27 = vld [vmem:[#allocation2 + $0x1c7] sm:$0xff]  ;;  %v5624_v28 = vpack.c.bf16 %v440_v20, %v439_v19 }
  0x52   : >> { %5282 = vmatprep.subr.bf16.mxu1 %v5317_v45  ;;  %v442_v26 = vld [vmem:[#allocation2 + $0xcf] sm:$0xff]  ;;  %v5626_v29 = vpack.c.bf16 %v456_v22, %v455_v21  ;;  %v443_v35 = vld [vmem:[#allocation2 + $0xe7] sm:$0xff] }
  0x53   : >> { %v458_v30 = vld [vmem:[#allocation2 + $0x1cf] sm:$0xff]  ;;  %v5630_v33 = vpack.c.bf16 %v442_v26, %v441_v25  ;;  %v459_v37 = vld [vmem:[#allocation2 + $0x1e7] sm:$0xff] }
  0x54   : >> { %4855 = vmatpush3.bf16.msra.mxu0 %v5317_v45  ;;  %v5632_v34 = vpack.c.bf16 %v458_v30, %v457_v27  ;;  %v444_v36 = vld [vmem:[#allocation2 + $0xef] sm:$0xff]  ;;  %v5336_v49 = vld [vmem:[%s5579_s23 + $0x80] sm:$0xff]  }
  0x55   : >> { %5290 = vmatpush3.bf16.msra.mxu1 %v5317_v45  ;;  %4856 = vmatprep.subr.bf16.mxu0 %v5318_v46  ;;  %v460_v38 = vld [vmem:[#allocation2 + $0x1ef] sm:$0xff]  ;;  %v5640_v43 = vpack.c.bf16 %v444_v36, %v443_v35  ;;  %v5343_v30 = vld [vmem:[%s5579_s23 + $0xe0] sm:$0xff]  }
  0x56   : >> { %5283 = vmatprep.subr.bf16.mxu1 %v5318_v46  ;;  %v5333_v39 = vld [vmem:[%s5579_s23 + $0x48] sm:$0xff]   ;;  %v5642_v44 = vpack.c.bf16 %v460_v38, %v459_v37  ;;  %v739_v45 = vld [vmem:[#allocation2 + $0x10] sm:$0xff]  ;;  %v5344_v37 = vld [vmem:[%s5579_s23 + $0x120] sm:$0xff]  }
  0x57   : >> { %v5334_v41 = vld [vmem:[%s5579_s23 + $0x88] sm:$0xff]   ;;  %v1114_v55 = vld [vmem:[#allocation2 + $0x31] sm:$0xff] }
  0x58   : >> { %4857 = vmatpush3.bf16.msra.mxu0 %v5318_v46  ;;  %v738_v42 = vld [vmem:[#allocation2 + $0x8] sm:$0xff]  ;;  %v1116_v3 = vld [vmem:[#allocation2 + $0x51] sm:$0xff] }
  0x59   : >> { %5291 = vmatpush3.bf16.msra.mxu1 %v5318_v46  ;;  %4858 = vmatprep.subr.bf16.mxu0 %v5319_v47  ;;  %v1111_v46 = vld [vmem:[#allocation2 + $0x9] sm:$0xff]  ;;  %v770_v50 = vpack.c.bf16 %v739_v45, %v738_v42  ;;  %v1118_v14 = vld [vmem:[#allocation2 + $0x71] sm:$0xff] }
  0x5a   : >> { %5284 = vmatprep.subr.bf16.mxu1 %v5319_v47  ;;  %v740_v52 = vld [vmem:[#allocation2 + $0x28] sm:$0xff]  ;;  %v745_v10 = vld [vmem:[#allocation2 + $0x70] sm:$0xff]  ;;  %v5345_v45 = vld [vmem:[%s5579_s23 + $0xd8] sm:$0xff]  }
  0x5b   : >> { %v742_v60 = vld [vmem:[#allocation2 + $0x48] sm:$0xff]  ;;  %v747_v19 = vld [vmem:[#allocation2 + $0x90] sm:$0xff] }
  0x5c   : >> { %4859 = vmatpush3.bf16.msra.mxu0 %v5319_v47  ;;  %v744_v9 = vld [vmem:[#allocation2 + $0x68] sm:$0xff]  ;;  %v1120_v21 = vld [vmem:[#allocation2 + $0x91] sm:$0xff] }
  0x5d   : >> { %5292 = vmatpush3.bf16.msra.mxu1 %v5319_v47  ;;  %4860 = vmatprep.subr.bf16.mxu0 %v5320_v48  ;;  %v1112_v47 = vld [vmem:[#allocation2 + $0x11] sm:$0xff]  ;;  %v1117_v11 = vld [vmem:[#allocation2 + $0x69] sm:$0xff] }
  0x5e   : >> { %5285 = vmatprep.subr.bf16.mxu1 %v5320_v48  ;;  %v1143_v51 = vpack.c.bf16 %v1112_v47, %v1111_v46  ;;  %v1119_v20 = vld [vmem:[#allocation2 + $0x89] sm:$0xff]  ;;  %v5668_v25 = vpack.c.bf16 %v1118_v14, %v1117_v11  ;;  %v1122_v36 = vld [vmem:[#allocation2 + $0xb1] sm:$0xff] }
  0x5f   : >> { %v5341_v22 = vld [vmem:[%s5579_s23 + $0xe8] sm:$0xff]   ;;  %v5672_v27 = vpack.c.bf16 %v1120_v21, %v1119_v20  ;;  %v1124_v42 = vld [vmem:[#allocation2 + $0xd1] sm:$0xff] }
  0x60   : >> { %4861 = vmatpush3.bf16.msra.mxu0 %v5320_v48  ;;  %v1121_v35 = vld [vmem:[#allocation2 + $0xa9] sm:$0xff]  ;;  %v5346_v46 = vld [vmem:[%s5579_s23 + $0x118] sm:$0xff]  }
  0x61   : >> { %5293 = vmatpush3.bf16.msra.mxu1 %v5320_v48  ;;  %4942 = vmatprep.subr.bf16.mxu0 %v5322_v54  ;;  %v5335_v48 = vld [vmem:[%s5579_s23 + $0x40] sm:$0xff]   ;;  %v750_v38 = vld [vmem:[#allocation2 + $0xc8] sm:$0xff]  ;;  %v1130_v21 = vld [vmem:[#allocation2 + $0x131] sm:$0xff] }
  0x62   : >> { %4894 = vmatprep.subr.bf16.mxu1 %v5321_v53  ;;  %v1129_v20 = vld [vmem:[#allocation2 + $0x129] sm:$0xff] }
  0x63   : >> { %4863 = vmatmul.mubr.bf16.vlgmr.msra.gmra.mxu0 %v5592_v56  ;;  %v5390_v2 = vld [vmem:[%s6548_s4 + $0x60] ss:$8 sps:$4 sm:$0xff] (%p425_p9)  }
  0x64   : >> { %4879 = vmatmul.mubr.bf16.vlgmr.msra.gmra.mxu1 %v5594_v57  ;;  %4943 = vmatpush3.bf16.msra.mxu0 %v5322_v54  ;;  %v1113_v54 = vld [vmem:[#allocation2 + $0x29] sm:$0xff] }
  0x65   : >> { %4895 = vmatpush3.bf16.msra.mxu1 %v5321_v53  ;;  %4944 = vmatprep.subr.bf16.mxu0 %v5324_v62  ;;  %v741_v53 = vld [vmem:[#allocation2 + $0x30] sm:$0xff]  ;;  %v5652_v5 = vpack.c.bf16 %v1114_v55, %v1113_v54 }
  0x66   : >> { %4896 = vmatprep.subr.bf16.mxu1 %v5323_v61  ;;  %4866 = vmatprep.mubr.bf16.mxu0 %v5598_v63  ;;  %v5650_v4 = vpack.c.bf16 %v741_v53, %v740_v52  ;;  %v753_v52 = vld [vmem:[#allocation2 + $0xf0] sm:$0xff] }
  0x67   : >> { %4882 = vmatprep.mubr.bf16.mxu1 %v5600_v1  ;;  %v1125_v53 = vld [vmem:[#allocation2 + $0xe9] sm:$0xff] }
  0x68   : >> { %4945 = vmatpush3.bf16.msra.mxu0 %v5324_v62  ;;  %v1115_v62 = vld [vmem:[#allocation2 + $0x49] sm:$0xff] }
  0x69   : >> { %4897 = vmatpush3.bf16.msra.mxu1 %v5323_v61  ;;  %4946 = vmatprep.subr.bf16.mxu0 %v5326_v8  ;;  %v743_v61 = vld [vmem:[#allocation2 + $0x50] sm:$0xff] }
  0x6a   : >> { %4898 = vmatprep.subr.bf16.mxu1 %v5325_v7  ;;  %v5654_v6 = vpack.c.bf16 %v743_v61, %v742_v60  ;;  %v5347_v54 = vld [vmem:[%s5579_s23 + $0xd0] sm:$0xff]  }
  0x6b   : >> { %4867 = vmatmul.mubr.bf16.gmra.mxu0 %v5608_v12  ;;  %v5348_v55 = vld [vmem:[%s5579_s23 + $0x110] sm:$0xff]  }
  0x6c   : >> { %4883 = vmatmul.mubr.bf16.gmra.mxu1 %v5610_v13  ;;  %4947 = vmatpush3.bf16.msra.mxu0 %v5326_v8  ;;  %v5339_v8 = vld [vmem:[%s5579_s23 + $0xf0] sm:$0xff]  }
  0x6d   : >> { %4899 = vmatpush3.bf16.msra.mxu1 %v5325_v7  ;;  %4948 = vmatprep.subr.bf16.mxu0 %v5328_v16  ;;  %v5656_v7 = vpack.c.bf16 %v1116_v3, %v1115_v62  ;;  %v755_v60 = vld [vmem:[#allocation2 + $0x110] sm:$0xff]  ;;  %v5349_v3 = vld [vmem:[%s5579_s23 + $0xc8] sm:$0xff]  }
  0x6e   : >> { %4900 = vmatprep.subr.bf16.mxu1 %v5327_v15  ;;  %4870 = vmatprep.mubr.bf16.mxu0 %v5614_v17  ;;  %v1127_v61 = vld [vmem:[#allocation2 + $0x109] sm:$0xff]  ;;  %v1128_v62 = vld [vmem:[#allocation2 + $0x111] sm:$0xff] }
  0x6f   : >> { %4886 = vmatprep.mubr.bf16.mxu1 %v5616_v18  ;;  %v5704_v14 = vpack.c.bf16 %v1128_v62, %v1127_v61  ;;  %v764_v62 = vld [vmem:[#allocation2 + $0x1a8] sm:$0xff] }
  0x70   : >> { %4949 = vmatpush3.bf16.msra.mxu0 %v5328_v16  ;;  %v746_v16 = vld [vmem:[#allocation2 + $0x88] sm:$0xff] }
  0x71   : >> { %4901 = vmatpush3.bf16.msra.mxu1 %v5327_v15  ;;  %4950 = vmatprep.subr.bf16.mxu0 %v5330_v24  ;;  %v5340_v15 = vld [vmem:[%s5579_s23 + $0x130] sm:$0xff]   ;;  %v5670_v26 = vpack.c.bf16 %v747_v19, %v746_v16  ;;  %v756_v16 = vld [vmem:[#allocation2 + $0x128] sm:$0xff] }
  0x72   : >> { %4902 = vmatprep.subr.bf16.mxu1 %v5329_v23  ;;  %v757_v19 = vld [vmem:[#allocation2 + $0x130] sm:$0xff] }
  0x73   : >> { %4871 = vmatmul.mubr.bf16.gmra.mxu0 %v5624_v28 }
  0x74   : >> { %4887 = vmatmul.mubr.bf16.gmra.mxu1 %v5626_v29  ;;  %4951 = vmatpush3.bf16.msra.mxu0 %v5330_v24  ;;  %v5666_v24 = vpack.c.bf16 %v745_v10, %v744_v9 }
  0x75   : >> { %4903 = vmatpush3.bf16.msra.mxu1 %v5329_v23  ;;  %4952 = vmatprep.subr.bf16.mxu0 %v5332_v32  ;;  %v5342_v23 = vld [vmem:[%s5579_s23 + $0x128] sm:$0xff]  }
  0x76   : >> { %4904 = vmatprep.subr.bf16.mxu1 %v5331_v31  ;;  %4874 = vmatprep.mubr.bf16.mxu0 %v5630_v33 }
  0x77   : >> { %4890 = vmatprep.mubr.bf16.mxu1 %v5632_v34 }
  0x78   : >> { %4953 = vmatpush3.bf16.msra.mxu0 %v5332_v32  ;;  %v749_v32 = vld [vmem:[#allocation2 + $0xb0] sm:$0xff] }
  0x79   : >> { %4905 = vmatpush3.bf16.msra.mxu1 %v5331_v31  ;;  %4954 = vmatprep.subr.bf16.mxu0 %v5334_v41  ;;  %v748_v31 = vld [vmem:[#allocation2 + $0xa8] sm:$0xff] }
  0x7a   : >> { %4906 = vmatprep.subr.bf16.mxu1 %v5333_v39  ;;  %v5682_v47 = vpack.c.bf16 %v749_v32, %v748_v31  ;;  %v1131_v31 = vld [vmem:[#allocation2 + $0x149] sm:$0xff]  ;;  %v1132_v32 = vld [vmem:[#allocation2 + $0x151] sm:$0xff] }
  0x7b   : >> { %4875 = vmatmul.mubr.bf16.gmra.mxu0 %v5640_v43 }
  0x7c   : >> { %4891 = vmatmul.mubr.bf16.gmra.mxu1 %v5642_v44  ;;  %4955 = vmatpush3.bf16.msra.mxu0 %v5334_v41  ;;  %v1123_v41 = vld [vmem:[#allocation2 + $0xc9] sm:$0xff] }
  0x7d   : >> { %4907 = vmatpush3.bf16.msra.mxu1 %v5333_v39  ;;  %4956 = vmatprep.subr.bf16.mxu0 %v5336_v49  ;;  %v751_v39 = vld [vmem:[#allocation2 + $0xd0] sm:$0xff] }
  0x7e   : >> { %4908 = vmatprep.subr.bf16.mxu1 %v5335_v48  ;;  %4910 = vmatprep.mubr.bf16.mxu1 %v770_v50  ;;  %v5688_v50 = vpack.c.bf16 %v1124_v42, %v1123_v41  ;;  %v5720_v41 = vpack.c.bf16 %v1132_v32, %v1131_v31  ;;  %v760_v42 = vld [vmem:[#allocation2 + $0x168] sm:$0xff] }
  0x7f   : >> { %4958 = vmatprep.mubr.bf16.mxu0 %v1143_v51  ;;  %v752_v51 = vld [vmem:[#allocation2 + $0xe8] sm:$0xff] }
  0x80   : >> { %4957 = vmatpush3.bf16.msra.mxu0 %v5336_v49  ;;  %v5686_v49 = vpack.c.bf16 %v751_v39, %v750_v38  ;;  %v5698_v9 = vpack.c.bf16 %v753_v52, %v752_v51  ;;  %v5716_v38 = vpack.c.bf16 %v1130_v21, %v1129_v20  ;;  %v1134_v51 = vld [vmem:[#allocation2 + $0x171] sm:$0xff]  ;;  %v762_v52 = vld [vmem:[#allocation2 + $0x188] sm:$0xff] }
  0x81   : >> { %4909 = vmatpush3.bf16.msra.mxu1 %v5335_v48  ;;  %5038 = vmatprep.subr.bf16.mxu0 %v5338_v59  ;;  %v5684_v48 = vpack.c.bf16 %v1122_v36, %v1121_v35  ;;  %v5353_v35 = vld [vmem:[%s5579_s23 + $0x178] sm:$0xff]   ;;  %v1139_v20 = vld [vmem:[#allocation2 + $0x1c9] sm:$0xff] }
  0x82   : >> { %4990 = vmatprep.subr.bf16.mxu1 %v5337_v58  ;;  %v5354_v36 = vld [vmem:[%s5579_s23 + $0x1b8] sm:$0xff]   ;;  %v768_v32 = vld [vmem:[#allocation2 + $0x1e8] sm:$0xff] }
  0x83   : >> { %4959 = vmatmul.mubr.bf16.vlgmr.msra.gmra.mxu0 %v5652_v5  ;;  %v1140_v21 = vld [vmem:[#allocation2 + $0x1d1] sm:$0xff] }
  0x84   : >> { %4911 = vmatmul.mubr.bf16.vlgmr.msra.gmra.mxu1 %v5650_v4  ;;  %5039 = vmatpush3.bf16.msra.mxu0 %v5338_v59  ;;  %v754_v59 = vld [vmem:[#allocation2 + $0x108] sm:$0xff]  ;;  %v5744_v31 = vpack.c.bf16 %v1140_v21, %v1139_v20  ;;  %v5376_v21 = vld [vmem:[%s5579_s23 + $0x220] sm:$0xff]  }
  0x85   : >> { %4991 = vmatpush3.bf16.msra.mxu1 %v5337_v58  ;;  %4914 = vmatprep.mubr.bf16.mxu1 %v5654_v6  ;;  %v1126_v58 = vld [vmem:[#allocation2 + $0xf1] sm:$0xff]  ;;  %v5702_v11 = vpack.c.bf16 %v755_v60, %v754_v59 }
  0x86   : >> { %4962 = vmatprep.mubr.bf16.mxu0 %v5656_v7  ;;  %4992 = vmatprep.subr.bf16.mxu1 %v5339_v8  ;;  %v5700_v10 = vpack.c.bf16 %v1126_v58, %v1125_v53  ;;  %v763_v53 = vld [vmem:[#allocation2 + $0x190] sm:$0xff] }
  0x87   : >> { %5040 = vmatprep.subr.bf16.mxu0 %v5340_v15  ;;  %v5730_v60 = vpack.c.bf16 %v763_v53, %v762_v52  ;;  %v5355_v53 = vld [vmem:[%s5579_s23 + $0x170] sm:$0xff]  }
  0x88   : >> { %5041 = vmatpush3.bf16.msra.mxu0 %v5340_v15  ;;  %v5351_v15 = vld [vmem:[%s5579_s23 + $0xc0] sm:$0xff]  }
  0x89   : >> { %4993 = vmatpush3.bf16.msra.mxu1 %v5339_v8  ;;  %5042 = vmatprep.subr.bf16.mxu0 %v5342_v23  ;;  %v5350_v8 = vld [vmem:[%s5579_s23 + $0x108] sm:$0xff]  }
  0x8a   : >> { %4994 = vmatprep.subr.bf16.mxu1 %v5341_v22 }
  0x8b   : >> { %4963 = vmatmul.mubr.bf16.gmra.mxu0 %v5668_v25 }
  0x8c   : >> { %4915 = vmatmul.mubr.bf16.gmra.mxu1 %v5666_v24  ;;  %4966 = vmatprep.mubr.bf16.mxu0 %v5672_v27 }
  0x8d   : >> { %4918 = vmatprep.mubr.bf16.mxu1 %v5670_v26  ;;  %4995 = vmatpush3.bf16.msra.mxu1 %v5341_v22  ;;  %v5352_v22 = vld [vmem:[%s5579_s23 + $0x100] sm:$0xff]  }
  0x8e   : >> { %5043 = vmatpush3.bf16.msra.mxu0 %v5342_v23  ;;  %4996 = vmatprep.subr.bf16.mxu1 %v5343_v30  ;;  %v758_v23 = vld [vmem:[#allocation2 + $0x148] sm:$0xff] }
  0x8f   : >> { %5044 = vmatprep.subr.bf16.mxu0 %v5344_v37 }
  0x91   : >> { %4997 = vmatpush3.bf16.msra.mxu1 %v5343_v30  ;;  %v759_v30 = vld [vmem:[#allocation2 + $0x150] sm:$0xff] }
  0x92   : >> { %5045 = vmatpush3.bf16.msra.mxu0 %v5344_v37  ;;  %4998 = vmatprep.subr.bf16.mxu1 %v5345_v45  ;;  %v5714_v37 = vpack.c.bf16 %v757_v19, %v756_v16  ;;  %v5718_v39 = vpack.c.bf16 %v759_v30, %v758_v23  ;;  %v766_v16 = vld [vmem:[#allocation2 + $0x1c8] sm:$0xff]  ;;  %v767_v19 = vld [vmem:[#allocation2 + $0x1d0] sm:$0xff] }
  0x93   : >> { %5046 = vmatprep.subr.bf16.mxu0 %v5346_v46  ;;  %4967 = vmatmul.mubr.bf16.gmra.mxu0 %v5684_v48  ;;  %v5742_v30 = vpack.c.bf16 %v767_v19, %v766_v16  ;;  %v5373_v16 = vld [vmem:[%s5579_s23 + $0x1e8] sm:$0xff]  }
  0x94   : >> { %4919 = vmatmul.mubr.bf16.gmra.mxu1 %v5682_v47  ;;  %4970 = vmatprep.mubr.bf16.mxu0 %v5688_v50  ;;  %v5374_v19 = vld [vmem:[%s5579_s23 + $0x228] sm:$0xff]  }
  0x95   : >> { %4922 = vmatprep.mubr.bf16.mxu1 %v5686_v49  ;;  %4999 = vmatpush3.bf16.msra.mxu1 %v5345_v45  ;;  %v761_v45 = vld [vmem:[#allocation2 + $0x170] sm:$0xff] }
  0x96   : >> { %5047 = vmatpush3.bf16.msra.mxu0 %v5346_v46  ;;  %5000 = vmatprep.subr.bf16.mxu1 %v5347_v54  ;;  %v1133_v46 = vld [vmem:[#allocation2 + $0x169] sm:$0xff]  ;;  %v5726_v58 = vpack.c.bf16 %v761_v45, %v760_v42 }
  0x97   : >> { %5048 = vmatprep.subr.bf16.mxu0 %v5348_v55  ;;  %v5728_v59 = vpack.c.bf16 %v1134_v51, %v1133_v46  ;;  %v769_v42 = vld [vmem:[#allocation2 + $0x1f0] sm:$0xff] }
  0x98   : >> { %v1141_v45 = vld [vmem:[#allocation2 + $0x1e9] sm:$0xff]  ;;  %v1142_v46 = vld [vmem:[#allocation2 + $0x1f1] sm:$0xff]  ;;  %v5750_v51 = vpack.c.bf16 %v769_v42, %v768_v32 }
  0x99   : >> { %5001 = vmatpush3.bf16.msra.mxu1 %v5347_v54  ;;  %v1135_v54 = vld [vmem:[#allocation2 + $0x189] sm:$0xff]  ;;  %v5752_v52 = vpack.c.bf16 %v1142_v46, %v1141_v45  ;;  %v5378_v32 = vld [vmem:[%s5579_s23 + $0x218] sm:$0xff]  }
  0x9a   : >> { %5049 = vmatpush3.bf16.msra.mxu0 %v5348_v55  ;;  %5002 = vmatprep.subr.bf16.mxu1 %v5349_v3  ;;  %v1136_v55 = vld [vmem:[#allocation2 + $0x191] sm:$0xff]  ;;  %v2620_v46 = vld [vmem:[#allocation2 + $0x147] sm:$0xff] }
  0x9b   : >> { %5050 = vmatprep.subr.bf16.mxu0 %v5350_v8  ;;  %4971 = vmatmul.mubr.bf16.gmra.mxu0 %v5700_v10  ;;  %v5732_v61 = vpack.c.bf16 %v1136_v55, %v1135_v54  ;;  %v5356_v54 = vld [vmem:[%s5579_s23 + $0x1b0] sm:$0xff]   ;;  %v5357_v55 = vld [vmem:[%s5579_s23 + $0x168] sm:$0xff]  }
  0x9c   : >> { %4923 = vmatmul.mubr.bf16.gmra.mxu1 %v5698_v9  ;;  %4974 = vmatprep.mubr.bf16.mxu0 %v5704_v14  ;;  %v2619_v45 = vld [vmem:[#allocation2 + $0x12f] sm:$0xff] }
  0x9d   : >> { %4926 = vmatprep.mubr.bf16.mxu1 %v5702_v11  ;;  %5003 = vmatpush3.bf16.msra.mxu1 %v5349_v3  ;;  %v765_v3 = vld [vmem:[#allocation2 + $0x1b0] sm:$0xff] }
  0x9e   : >> { %5051 = vmatpush3.bf16.msra.mxu0 %v5350_v8  ;;  %5004 = vmatprep.subr.bf16.mxu1 %v5351_v15  ;;  %v1137_v8 = vld [vmem:[#allocation2 + $0x1a9] sm:$0xff] }
  0x9f   : >> { %5052 = vmatprep.subr.bf16.mxu0 %v5352_v22 }
  0xa1   : >> { %5005 = vmatpush3.bf16.msra.mxu1 %v5351_v15  ;;  %v1138_v15 = vld [vmem:[#allocation2 + $0x1b1] sm:$0xff] }
  0xa2   : >> { %5053 = vmatpush3.bf16.msra.mxu0 %v5352_v22  ;;  %5086 = vmatprep.subr.bf16.mxu1 %v5353_v35  ;;  %v5738_v22 = vpack.c.bf16 %v765_v3, %v764_v62  ;;  %v5740_v23 = vpack.c.bf16 %v1138_v15, %v1137_v8  ;;  %v5358_v62 = vld [vmem:[%s5579_s23 + $0x1a8] sm:$0xff]   ;;  %v5371_v3 = vld [vmem:[%s5579_s23 + $0x1f0] sm:$0xff]  }
  0xa3   : >> { %5134 = vmatprep.subr.bf16.mxu0 %v5354_v36  ;;  %4975 = vmatmul.mubr.bf16.gmra.mxu0 %v5716_v38  ;;  %v5372_v8 = vld [vmem:[%s5579_s23 + $0x230] sm:$0xff]   ;;  %v2610_v15 = vld [vmem:[#allocation2 + $0xa7] sm:$0xff] }
  0xa4   : >> { %4927 = vmatmul.mubr.bf16.gmra.mxu1 %v5714_v37  ;;  %4978 = vmatprep.mubr.bf16.mxu0 %v5720_v41 }
  0xa5   : >> { %4930 = vmatprep.mubr.bf16.mxu1 %v5718_v39 }
  0xab   : >> { %4979 = vmatmul.mubr.bf16.gmra.mxu0 %v5728_v59 }
  0xac   : >> { %4931 = vmatmul.mubr.bf16.gmra.mxu1 %v5726_v58  ;;  %4982 = vmatprep.mubr.bf16.mxu0 %v5732_v61 }
  0xad   : >> { %4934 = vmatprep.mubr.bf16.mxu1 %v5730_v60 }
  0xb3   : >> { %4983 = vmatmul.mubr.bf16.gmra.mxu0 %v5740_v23 }
  0xb4   : >> { %4935 = vmatmul.mubr.bf16.gmra.mxu1 %v5738_v22  ;;  %4986 = vmatprep.mubr.bf16.mxu0 %v5744_v31 }
  0xb5   : >> { %4938 = vmatprep.mubr.bf16.mxu1 %v5742_v30 }
  0xbb   : >> { %4987 = vmatmul.mubr.bf16.gmra.mxu0 %v5752_v52 }
  0xbc   : >> { %4939 = vmatmul.mubr.bf16.gmra.mxu1 %v5750_v51  ;;  %5054 = vmatprep.mubr.bf16.mxu0 %v5650_v4  ;;  %v5362_v4 = vld [vmem:[%s5579_s23 + $0x198] sm:$0xff]  }
  0xbd   : >> { %5006 = vmatprep.mubr.bf16.mxu1 %v5592_v56  ;;  %v5359_v56 = vld [vmem:[%s5579_s23 + $0x160] sm:$0xff]  }
  0xc3   : >> { %5055 = vmatmul.mubr.bf16.vlgmr.msra.gmra.mxu0 %v5654_v6  ;;  %v5363_v6 = vld [vmem:[%s5579_s23 + $0x150] sm:$0xff]  }
  0xc4   : >> { %5007 = vmatmul.mubr.bf16.vlgmr.msra.gmra.mxu1 %v5598_v63  ;;  %5135 = vmatpush3.bf16.msra.mxu0 %v5354_v36  ;;  %v5360_v63 = vld [vmem:[%s5579_s23 + $0x1a0] sm:$0xff]  }
  0xc5   : >> { %5087 = vmatpush3.bf16.msra.mxu1 %v5353_v35  ;;  %5010 = vmatprep.mubr.bf16.mxu1 %v5608_v12  ;;  %v5361_v12 = vld [vmem:[%s5579_s23 + $0x158] sm:$0xff]  }
  0xc6   : >> { %5058 = vmatprep.mubr.bf16.mxu0 %v5666_v24  ;;  %5088 = vmatprep.subr.bf16.mxu1 %v5355_v53  ;;  %v5366_v24 = vld [vmem:[%s5579_s23 + $0x188] sm:$0xff]  }
  0xc7   : >> { %5136 = vmatprep.subr.bf16.mxu0 %v5356_v54 }
  0xc8   : >> { %5137 = vmatpush3.bf16.msra.mxu0 %v5356_v54  ;;  %v5382_v54 = vld [vmem:[%s5579_s23 + $0x208] sm:$0xff]  }
  0xc9   : >> { %5089 = vmatpush3.bf16.msra.mxu1 %v5355_v53  ;;  %5138 = vmatprep.subr.bf16.mxu0 %v5358_v62  ;;  %v5381_v53 = vld [vmem:[%s5579_s23 + $0x1c8] sm:$0xff]  }
  0xca   : >> { %5090 = vmatprep.subr.bf16.mxu1 %v5357_v55 }
  0xcb   : >> { %5059 = vmatmul.mubr.bf16.gmra.mxu0 %v5670_v26  ;;  %v5367_v26 = vld [vmem:[%s5579_s23 + $0x140] sm:$0xff]  }
  0xcc   : >> { %5011 = vmatmul.mubr.bf16.gmra.mxu1 %v5614_v17  ;;  %5062 = vmatprep.mubr.bf16.mxu0 %v5682_v47  ;;  %v5364_v17 = vld [vmem:[%s5579_s23 + $0x190] sm:$0xff]   ;;  %v5368_v47 = vld [vmem:[%s5579_s23 + $0x180] sm:$0xff]  }
  0xcd   : >> { %5014 = vmatprep.mubr.bf16.mxu1 %v5624_v28  ;;  %5091 = vmatpush3.bf16.msra.mxu1 %v5357_v55  ;;  %v5365_v28 = vld [vmem:[%s5579_s23 + $0x148] sm:$0xff]  }
  0xce   : >> { %5139 = vmatpush3.bf16.msra.mxu0 %v5358_v62  ;;  %5092 = vmatprep.subr.bf16.mxu1 %v5359_v56 }
  0xcf   : >> { %5140 = vmatprep.subr.bf16.mxu0 %v5360_v63 }
  0xd1   : >> { %5093 = vmatpush3.bf16.msra.mxu1 %v5359_v56  ;;  %v2623_v56 = vld [vmem:[#allocation2 + $0x16f] sm:$0xff] }
  0xd2   : >> { %5141 = vmatpush3.bf16.msra.mxu0 %v5360_v63  ;;  %5094 = vmatprep.subr.bf16.mxu1 %v5361_v12  ;;  %v2624_v63 = vld [vmem:[#allocation2 + $0x187] sm:$0xff] }
  0xd3   : >> { %5142 = vmatprep.subr.bf16.mxu0 %v5362_v4  ;;  %5063 = vmatmul.mubr.bf16.gmra.mxu0 %v5686_v49  ;;  %v5369_v49 = vld [vmem:[%s5579_s23 + $0x1f8] sm:$0xff]  }
  0xd4   : >> { %5015 = vmatmul.mubr.bf16.gmra.mxu1 %v5630_v33  ;;  %5066 = vmatprep.mubr.bf16.mxu0 %v5698_v9  ;;  %v5370_v9 = vld [vmem:[%s5579_s23 + $0x238] sm:$0xff]  }
  0xd5   : >> { %5018 = vmatprep.mubr.bf16.mxu1 %v5640_v43  ;;  %5095 = vmatpush3.bf16.msra.mxu1 %v5361_v12  ;;  %v2625_v12 = vld [vmem:[#allocation2 + $0x18f] sm:$0xff] }
  0xd6   : >> { %5143 = vmatpush3.bf16.msra.mxu0 %v5362_v4  ;;  %5096 = vmatprep.subr.bf16.mxu1 %v5363_v6 }
  0xd7   : >> { %5144 = vmatprep.subr.bf16.mxu0 %v5364_v17 }
  0xd9   : >> { %5097 = vmatpush3.bf16.msra.mxu1 %v5363_v6  ;;  %v2646_v6 = vpack.c.bf16 %v2625_v12, %v2624_v63 }
  0xda   : >> { %5145 = vmatpush3.bf16.msra.mxu0 %v5364_v17  ;;  %5098 = vmatprep.subr.bf16.mxu1 %v5365_v28 }
  0xdb   : >> { %5146 = vmatprep.subr.bf16.mxu0 %v5366_v24  ;;  %5067 = vmatmul.mubr.bf16.gmra.mxu0 %v5702_v11  ;;  %v2605_v11 = vld [vmem:[#allocation2 + $0x4f] sm:$0xff] }
  0xdc   : >> { %5019 = vmatmul.mubr.bf16.gmra.mxu1 %v5574_v40  ;;  %5070 = vmatprep.mubr.bf16.mxu0 %v5714_v37  ;;  %v1514_v40 = vld [vmem:[#allocation2 + $0x207] sm:$0xff] }
  0xdd   : >> { %5022 = vmatprep.mubr.bf16.mxu1 %v5594_v57  ;;  %5099 = vmatpush3.bf16.msra.mxu1 %v5365_v28  ;;  %v1515_v57 = vld [vmem:[#allocation2 + $0x20f] sm:$0xff]  ;;  %v2608_v37 = vld [vmem:[#allocation2 + $0x87] sm:$0xff] }
  0xde   : >> { %5147 = vmatpush3.bf16.msra.mxu0 %v5366_v24  ;;  %5100 = vmatprep.subr.bf16.mxu1 %v5367_v26  ;;  %v5802_v35 = vpack.c.bf16 %v1515_v57, %v1514_v40 }
  0xdf   : >> { %5148 = vmatprep.subr.bf16.mxu0 %v5368_v47 }
  0xe1   : >> { %5101 = vmatpush3.bf16.msra.mxu1 %v5367_v26 }
  0xe2   : >> { %5149 = vmatpush3.bf16.msra.mxu0 %v5368_v47  ;;  %5182 = vmatprep.subr.bf16.mxu1 %v5369_v49  ;;  %v2628_v47 = vld [vmem:[#allocation2 + $0x1c7] sm:$0xff] }
  0xe3   : >> { %5230 = vmatprep.subr.bf16.mxu0 %v5370_v9  ;;  %5071 = vmatmul.mubr.bf16.gmra.mxu0 %v5718_v39  ;;  %v2609_v39 = vld [vmem:[#allocation2 + $0x8f] sm:$0xff] }
  0xe4   : >> { %5023 = vmatmul.mubr.bf16.gmra.mxu1 %v5600_v1  ;;  %5074 = vmatprep.mubr.bf16.mxu0 %v5726_v58  ;;  %v1887_v1 = vld [vmem:[#allocation2 + $0x208] sm:$0xff] }
  0xe5   : >> { %5026 = vmatprep.mubr.bf16.mxu1 %v5610_v13  ;;  %v1888_v13 = vld [vmem:[#allocation2 + $0x210] sm:$0xff] }
  0xeb   : >> { %5075 = vmatmul.mubr.bf16.gmra.mxu0 %v5730_v60  ;;  %v2638_v60 = vpack.c.bf16 %v2609_v39, %v2608_v37 }
  0xec   : >> { %5027 = vmatmul.mubr.bf16.gmra.mxu1 %v5616_v18  ;;  %5078 = vmatprep.mubr.bf16.mxu0 %v5738_v22  ;;  %v2604_v18 = vld [vmem:[#allocation2 + $0x47] sm:$0xff]  ;;  %v2617_v22 = vld [vmem:[#allocation2 + $0x10f] sm:$0xff] }
  0xed   : >> { %5030 = vmatprep.mubr.bf16.mxu1 %v5626_v29  ;;  %v5804_v29 = vpack.c.bf16 %v1888_v13, %v1887_v1  ;;  %v2636_v36 = vpack.c.bf16 %v2605_v11, %v2604_v18  ;;  %v2630_v11 = vld [vmem:[#allocation2 + $0x1e7] sm:$0xff] }
  0xf3   : >> { %5079 = vmatmul.mubr.bf16.gmra.mxu0 %v5742_v30  ;;  %v5377_v30 = vld [vmem:[%s5579_s23 + $0x1d8] sm:$0xff]  }
  0xf4   : >> { %5031 = vmatmul.mubr.bf16.gmra.mxu1 %v5632_v34  ;;  %5082 = vmatprep.mubr.bf16.mxu0 %v5750_v51  ;;  %v2606_v34 = vld [vmem:[#allocation2 + $0x67] sm:$0xff]  ;;  %v2621_v51 = vld [vmem:[#allocation2 + $0x14f] sm:$0xff] }
  0xf5   : >> { %5034 = vmatprep.mubr.bf16.mxu1 %v5642_v44  ;;  %v2607_v44 = vld [vmem:[#allocation2 + $0x6f] sm:$0xff]  ;;  %v2644_v62 = vpack.c.bf16 %v2621_v51, %v2620_v46 }
  0xf6   : >> { %v2637_v58 = vpack.c.bf16 %v2607_v44, %v2606_v34  ;;  %v2979_v46 = vld [vmem:[#allocation2 + $0x68] sm:$0xff]  ;;  %v2980_v51 = vld [vmem:[#allocation2 + $0x70] sm:$0xff] }
  0xfb   : >> { %5083 = vmatmul.mubr.bf16.gmra.mxu0 %v5804_v29 }
  0xfc   : >> { %5035 = vmatmul.mubr.bf16.gmra.mxu1 %v5802_v35  ;;  %5150 = vmatprep.mubr.bf16.mxu0 %v2636_v36  ;;  %v2631_v36 = vld [vmem:[#allocation2 + $0x1ef] sm:$0xff] }
  0xfd   : >> { %5102 = vmatprep.mubr.bf16.mxu1 %v5652_v5  ;;  %v2611_v5 = vld [vmem:[#allocation2 + $0xaf] sm:$0xff] }
  0xfe   : >> { %v2639_v20 = vpack.c.bf16 %v2611_v5, %v2610_v15  ;;  %v2261_v15 = vld [vmem:[#allocation2 + $0x211] sm:$0xff]  ;;  %v2634_v5 = vld [vmem:[#allocation2 + $0x227] sm:$0xff] }
 0x103   : >> { %5151 = vmatmul.mubr.bf16.vlgmr.msra.gmra.mxu0 %v2637_v58  ;;  %v2649_v58 = vpack.c.bf16 %v2631_v36, %v2630_v11  ;;  %v2983_v11 = vld [vmem:[#allocation2 + $0xa8] sm:$0xff]  ;;  %v2984_v36 = vld [vmem:[#allocation2 + $0xb0] sm:$0xff] }
 0x104   : >> { %5103 = vmatmul.mubr.bf16.vlgmr.msra.gmra.mxu1 %v5656_v7  ;;  %5231 = vmatpush3.bf16.msra.mxu0 %v5370_v9  ;;  %v5375_v7 = vld [vmem:[%s5579_s23 + $0x1e0] sm:$0xff]  }
 0x105   : >> { %5183 = vmatpush3.bf16.msra.mxu1 %v5369_v49  ;;  %5106 = vmatprep.mubr.bf16.mxu1 %v5668_v25  ;;  %v2616_v25 = vld [vmem:[#allocation2 + $0x107] sm:$0xff]  ;;  %v2629_v49 = vld [vmem:[#allocation2 + $0x1cf] sm:$0xff] }
 0x106   : >> { %5154 = vmatprep.mubr.bf16.mxu0 %v2638_v60  ;;  %5184 = vmatprep.subr.bf16.mxu1 %v5371_v3  ;;  %v2642_v42 = vpack.c.bf16 %v2617_v22, %v2616_v25  ;;  %v2648_v1 = vpack.c.bf16 %v2629_v49, %v2628_v47  ;;  %v3350_v25 = vld [vmem:[#allocation2 + $0x49] sm:$0xff]  ;;  %v3351_v22 = vld [vmem:[#allocation2 + $0x51] sm:$0xff] }
 0x107   : >> { %5232 = vmatprep.subr.bf16.mxu0 %v5372_v8 }
 0x108   : >> { %5233 = vmatpush3.bf16.msra.mxu0 %v5372_v8 }
 0x109   : >> { %5185 = vmatpush3.bf16.msra.mxu1 %v5371_v3  ;;  %5234 = vmatprep.subr.bf16.mxu0 %v5374_v19 }
 0x10a   : >> { %5186 = vmatprep.subr.bf16.mxu1 %v5373_v16 }
 0x10b   : >> { %5155 = vmatmul.mubr.bf16.gmra.mxu0 %v2639_v20 }
 0x10c   : >> { %5107 = vmatmul.mubr.bf16.gmra.mxu1 %v5672_v27  ;;  %5158 = vmatprep.mubr.bf16.mxu0 %v5630_v33  ;;  %v5379_v27 = vld [vmem:[%s5579_s23 + $0x1d0] sm:$0xff]   ;;  %v2618_v33 = vld [vmem:[#allocation2 + $0x127] sm:$0xff] }
 0x10d   : >> { %5110 = vmatprep.mubr.bf16.mxu1 %v5684_v48  ;;  %5187 = vmatpush3.bf16.msra.mxu1 %v5373_v16  ;;  %v5380_v48 = vld [vmem:[%s5579_s23 + $0x210] sm:$0xff]   ;;  %v2643_v55 = vpack.c.bf16 %v2619_v45, %v2618_v33 }
 0x10e   : >> { %5235 = vmatpush3.bf16.msra.mxu0 %v5374_v19  ;;  %5188 = vmatprep.subr.bf16.mxu1 %v5375_v7  ;;  %v2635_v16 = vld [vmem:[#allocation2 + $0x22f] sm:$0xff] }
 0x10f   : >> { %5236 = vmatprep.subr.bf16.mxu0 %v5376_v21  ;;  %v2977_v19 = vld [vmem:[#allocation2 + $0x48] sm:$0xff] }
 0x111   : >> { %5189 = vmatpush3.bf16.msra.mxu1 %v5375_v7 }
 0x112   : >> { %5237 = vmatpush3.bf16.msra.mxu0 %v5376_v21  ;;  %5190 = vmatprep.subr.bf16.mxu1 %v5377_v30  ;;  %v2978_v21 = vld [vmem:[#allocation2 + $0x50] sm:$0xff] }
 0x113   : >> { %5238 = vmatprep.subr.bf16.mxu0 %v5378_v32  ;;  %5159 = vmatmul.mubr.bf16.gmra.mxu0 %v5640_v43  ;;  %v5383_v43 = vld [vmem:[%s5579_s23 + $0x1c0] sm:$0xff]  }
 0x114   : >> { %5111 = vmatmul.mubr.bf16.gmra.mxu1 %v5688_v50  ;;  %5162 = vmatprep.mubr.bf16.mxu0 %v2642_v42  ;;  %v5384_v50 = vld [vmem:[%s5579_s23 + $0x200] sm:$0xff]   ;;  %v2651_v42 = vpack.c.bf16 %v2635_v16, %v2634_v5  ;;  %v2985_v5 = vld [vmem:[#allocation2 + $0xc8] sm:$0xff]  ;;  %s4567_s23 = sshll.u32 (%p425_p9), %s3892_s12, 5 }
 0x115   : >> { %5114 = vmatprep.mubr.bf16.mxu1 %v5700_v10  ;;  %5191 = vmatpush3.bf16.msra.mxu1 %v5377_v30  ;;  %v2622_v10 = vld [vmem:[#allocation2 + $0x167] sm:$0xff]  ;;  %s4319_s9 = scalar_lea.vmem (%p425_p9), [#allocation2], %s4567_s23 }
 0x116   : >> { %5239 = vmatpush3.bf16.msra.mxu0 %v5378_v32  ;;  %5192 = vmatprep.subr.bf16.mxu1 %v5379_v27  ;;  %v2645_v4 = vpack.c.bf16 %v2623_v56, %v2622_v10  ;;  %v3354_v10 = vld [vmem:[#allocation2 + $0x89] sm:$0xff]  ;;  %v3355_v56 = vld [vmem:[#allocation2 + $0x91] sm:$0xff] }
 0x117   : >> { %5240 = vmatprep.subr.bf16.mxu0 %v5380_v48 }
 0x119   : >> { %5193 = vmatpush3.bf16.msra.mxu1 %v5379_v27  ;;  %v3382_v27 = vpack.c.bf16 %v3351_v22, %v3350_v25  ;;  %v3358_v25 = vld [vmem:[#allocation2 + $0xc9] sm:$0xff]  ;;  %v3359_v22 = vld [vmem:[#allocation2 + $0xd1] sm:$0xff] }
 0x11a   : >> { %5241 = vmatpush3.bf16.msra.mxu0 %v5380_v48  ;;  %5194 = vmatprep.subr.bf16.mxu1 %v5381_v53 }
 0x11b   : >> { %5242 = vmatprep.subr.bf16.mxu0 %v5382_v54  ;;  %5163 = vmatmul.mubr.bf16.gmra.mxu0 %v2643_v55  ;;  %v2981_v55 = vld [vmem:[#allocation2 + $0x88] sm:$0xff] }
 0x11c   : >> { %5115 = vmatmul.mubr.bf16.gmra.mxu1 %v5704_v14  ;;  %5166 = vmatprep.mubr.bf16.mxu0 %v2644_v62  ;;  %v2626_v14 = vld [vmem:[#allocation2 + $0x1a7] sm:$0xff] }
 0x11d   : >> { %5118 = vmatprep.mubr.bf16.mxu1 %v5716_v38  ;;  %5195 = vmatpush3.bf16.msra.mxu1 %v5381_v53  ;;  %v2627_v38 = vld [vmem:[#allocation2 + $0x1af] sm:$0xff] }
 0x11e   : >> { %5243 = vmatpush3.bf16.msra.mxu0 %v5382_v54  ;;  %5196 = vmatprep.subr.bf16.mxu1 %v5383_v43  ;;  %v2647_v57 = vpack.c.bf16 %v2627_v38, %v2626_v14  ;;  %v3352_v53 = vld [vmem:[#allocation2 + $0x69] sm:$0xff]  ;;  %v3353_v54 = vld [vmem:[#allocation2 + $0x71] sm:$0xff]  ;;  %v3384_v38 = vpack.c.bf16 %v3355_v56, %v3354_v10 }
 0x11f   : >> { %5244 = vmatprep.subr.bf16.mxu0 %v5384_v50 }
 0x121   : >> { %5197 = vmatpush3.bf16.msra.mxu1 %v5383_v43 }
 0x122   : >> { %5245 = vmatpush3.bf16.msra.mxu0 %v5384_v50  ;;  %v2982_v50 = vld [vmem:[#allocation2 + $0x90] sm:$0xff] }
 0x123   : >> { %v5833_v17 = vpop.f32.mrf.mxu0  ;;  %5167 = vmatmul.mubr.bf16.gmra.mxu0 %v2645_v4  ;;  %v3010_v4 = vpack.c.bf16 %v2980_v51, %v2979_v46  ;;  %v3011_v14 = vpack.c.bf16 %v2982_v50, %v2981_v55  ;;  %v3012_v51 = vpack.c.bf16 %v2984_v36, %v2983_v11  ;;  %v3386_v50 = vpack.c.bf16 %v3359_v22, %v3358_v25  ;;  %v3361_v36 = vld [vmem:[#allocation2 + $0xf1] sm:$0xff] }
 0x124   : >> { %v5835_v28 = vpop.f32.mrf.mxu1  ;;  %5119 = vmatmul.mubr.bf16.gmra.mxu1 %v5720_v41  ;;  %5170 = vmatprep.mubr.bf16.mxu0 %v2646_v6  ;;  %v3383_v6 = vpack.c.bf16 %v3353_v54, %v3352_v53 }
 0x125   : >> { %5122 = vmatprep.mubr.bf16.mxu1 %v5728_v59  ;;  %v5839_v24 = vpop.f32.mrf.mxu0 }
 0x126   : >> { %v5841_v26 = vpop.f32.mrf.mxu1 }
 0x127   : >> { %v5843_v9 = vpop.f32.mrf.mxu0 }
 0x128   : >> { %v5845_v40 = vpop.f32.mrf.mxu1 }
 0x129   : >> { %v5847_v13 = vpop.f32.mrf.mxu0 }
 0x12a   : >> { %v5849_v41 = vpop.f32.mrf.mxu1 }
 0x12b   : >> { %v5851_v59 = vpop.f32.mrf.mxu0  ;;  %5171 = vmatmul.mubr.bf16.gmra.mxu0 %v2647_v57 }
 0x12c   : >> { %v5853_v18 = vpop.f32.mrf.mxu1  ;;  %5123 = vmatmul.mubr.bf16.gmra.mxu1 %v5732_v61  ;;  %5174 = vmatprep.mubr.bf16.mxu0 %v2648_v1 }
 0x12d   : >> { %5126 = vmatprep.mubr.bf16.mxu1 %v5740_v23  ;;  %v5857_v34 = vpop.f32.mrf.mxu0  ;;  %v2260_v23 = vld [vmem:[#allocation2 + $0x209] sm:$0xff] }
 0x12e   : >> { %v5859_v44 = vpop.f32.mrf.mxu1  ;;  %v5884_v32 = vpack.c.bf16 %v2261_v15, %v2260_v23  ;;  %v3356_v23 = vld [vmem:[#allocation2 + $0xa9] sm:$0xff]  ;;  %v3357_v15 = vld [vmem:[#allocation2 + $0xb1] sm:$0xff] }
 0x12f   : >> { %v5861_v37 = vpop.f32.mrf.mxu0  ;;  %v3385_v53 = vpack.c.bf16 %v3357_v15, %v3356_v23 }
 0x130   : >> { %v5863_v39 = vpop.f32.mrf.mxu1 }
 0x131   : >> { %v5865_v60 = vpop.f32.mrf.mxu0 }
 0x132   : >> { %v5867_v3 = vpop.f32.mrf.mxu1 }
 0x133   : >> { %v5869_v61 = vpop.f32.mrf.mxu0  ;;  %5175 = vmatmul.mubr.bf16.gmra.mxu0 %v2649_v58 }
 0x134   : >> { %v5871_v8 = vpop.f32.mrf.mxu1  ;;  %5127 = vmatmul.mubr.bf16.gmra.mxu1 %v5744_v31  ;;  %5178 = vmatprep.mubr.bf16.mxu0 %v5802_v35 }
 0x135   : >> { %5130 = vmatprep.mubr.bf16.mxu1 %v5752_v52  ;;  %v5876_v20 = vpop.f32.mrf.mxu0  ;;  %v3009_v52 = vpack.c.bf16 %v2978_v21, %v2977_v19  ;;  %v2986_v21 = vld [vmem:[#allocation2 + $0xd0] sm:$0xff] }
 0x136   : >> { %v5878_v7 = vpop.f32.mrf.mxu1  ;;  %v3013_v55 = vpack.c.bf16 %v2986_v21, %v2985_v5  ;;  %v2990_v5 = vld [vmem:[#allocation2 + $0x110] sm:$0xff] }
 0x137   : >> { %v5880_v30 = vpop.f32.mrf.mxu0 }
 0x138   : >> { %v5882_v31 = vpop.f32.mrf.mxu1 }
 0x139   : >> { %v5886_v35 = vpop.f32.mrf.mxu0 }
 0x13a   : >> { %v5888_v48 = vpop.f32.mrf.mxu1 }
 0x13b   : >> { %v5890_v33 = vpop.f32.mrf.mxu0  ;;  %5179 = vmatmul.mubr.bf16.gmra.mxu0 %v2651_v42 }
 0x13c   : >> { %v5892_v45 = vpop.f32.mrf.mxu1  ;;  %5131 = vmatmul.mubr.bf16.gmra.mxu1 %v5884_v32  ;;  %5246 = vmatprep.mubr.bf16.mxu0 %v3382_v27 }
 0x13d   : >> { %5198 = vmatprep.mubr.bf16.mxu1 %v3009_v52  ;;  %v5895_v62 = vpop.f32.mrf.mxu0 }
 0x13e   : >> { %v5897_v43 = vpop.f32.mrf.mxu1 }
 0x13f   : >> { %v5899_v63 = vpop.f32.mrf.mxu0 }
 0x140   : >> { %v5901_v12 = vpop.f32.mrf.mxu1 }
 0x141   : >> { %v5903_v47 = vpop.f32.mrf.mxu0 }
 0x142   : >> { %v5905_v49 = vpop.f32.mrf.mxu1 }
 0x143   : >> { %v4960_v1 = vpop.f32.mrf.mxu0  ;;  %5247 = vmatmul.mubr.bf16.vlgmr.msra.gmra.mxu0 %v3383_v6 }
 0x144   : >> { %v4912_v57 = vpop.f32.mrf.mxu1  ;;  %5199 = vmatmul.mubr.bf16.vlgmr.msra.gmra.mxu1 %v3010_v4  ;;  %5250 = vmatprep.mubr.bf16.mxu0 %v3384_v38 }
 0x145   : >> { %v1049_v58 = vadd.f32 %v4912_v57, %v5833_v17  ;;  %5202 = vmatprep.mubr.bf16.mxu1 %v3011_v14  ;;  %v1261_v19 = vpop.f32.mrf.mxu0  ;;  %v2988_v57 = vld [vmem:[#allocation2 + $0xf0] sm:$0xff] }
 0x146   : >> { %v888_v16 = vpop.f32.mrf.mxu1 }
 0x147   : >> { %v5908_v42 = vadd.f32 %v4960_v1, %v1049_v58  ;;  %v1047_v52 = vadd.f32 %v888_v16, %v5839_v24  ;;  %v4961_v46 = vpop.f32.mrf.mxu0  ;;  %v2987_v24 = vld [vmem:[#allocation2 + $0xe8] sm:$0xff] }
 0x148   : >> { %v4913_v27 = vpop.f32.mrf.mxu1  ;;  %v2989_v58 = vld [vmem:[#allocation2 + $0x108] sm:$0xff] }
 0x149   : >> { %v5911_v54 = vadd.f32 %v1261_v19, %v1047_v52  ;;  %v1050_v17 = vadd.f32 %v4913_v27, %v5843_v9  ;;  %v1264_v56 = vpop.f32.mrf.mxu0  ;;  %v3360_v9 = vld [vmem:[#allocation2 + $0xe9] sm:$0xff]  ;;  %v3014_v52 = vpack.c.bf16 %v2988_v57, %v2987_v24  ;;  %v3365_v57 = vld [vmem:[#allocation2 + $0x131] sm:$0xff] }
 0x14a   : >> { %v891_v10 = vpop.f32.mrf.mxu1  ;;  %v3362_v16 = vld [vmem:[#allocation2 + $0x109] sm:$0xff]  ;;  %v3387_v27 = vpack.c.bf16 %v3361_v36, %v3360_v9 }
 0x14b   : >> { %v5914_v4 = vadd.f32 %v4961_v46, %v1050_v17  ;;  %v1048_v6 = vadd.f32 %v891_v10, %v5847_v13  ;;  %v4964_v38 = vpop.f32.mrf.mxu0  ;;  %5251 = vmatmul.mubr.bf16.gmra.mxu0 %v3385_v53  ;;  %v3363_v13 = vld [vmem:[#allocation2 + $0x111] sm:$0xff] }
 0x14c   : >> { %v4916_v14 = vpop.f32.mrf.mxu1  ;;  %5203 = vmatmul.mubr.bf16.gmra.mxu1 %v3012_v51  ;;  %5254 = vmatprep.mubr.bf16.mxu0 %v3386_v50  ;;  %v3015_v51 = vpack.c.bf16 %v2990_v5, %v2989_v58  ;;  %v3388_v53 = vpack.c.bf16 %v3363_v13, %v3362_v16  ;;  %v2994_v58 = vld [vmem:[#allocation2 + $0x150] sm:$0xff] }
 0x14d   : >> { %v5917_v1 = vadd.f32 %v1264_v56, %v1048_v6  ;;  %v1053_v11 = vadd.f32 %v4916_v14, %v5851_v59  ;;  %5206 = vmatprep.mubr.bf16.mxu1 %v3013_v55  ;;  %v1277_v15 = vpop.f32.mrf.mxu0  ;;  %v2992_v14 = vld [vmem:[#allocation2 + $0x130] sm:$0xff] }
 0x14e   : >> { %v904_v23 = vpop.f32.mrf.mxu1 }
 0x14f   : >> { %v5920_v19 = vadd.f32 %v4964_v38, %v1053_v11  ;;  %v1051_v21 = vadd.f32 %v904_v23, %v5857_v34  ;;  %v4965_v22 = vpop.f32.mrf.mxu0  ;;  %v2991_v34 = vld [vmem:[#allocation2 + $0x128] sm:$0xff] }
 0x150   : >> { %v4917_v25 = vpop.f32.mrf.mxu1  ;;  %v2993_v11 = vld [vmem:[#allocation2 + $0x148] sm:$0xff] }
 0x151   : >> { %v5923_v46 = vadd.f32 %v1277_v15, %v1051_v21  ;;  %v1054_v59 = vadd.f32 %v4917_v25, %v5861_v37  ;;  %v1280_v55 = vpop.f32.mrf.mxu0  ;;  %v3364_v37 = vld [vmem:[#allocation2 + $0x129] sm:$0xff]  ;;  %v3016_v21 = vpack.c.bf16 %v2992_v14, %v2991_v34  ;;  %v3369_v14 = vld [vmem:[#allocation2 + $0x171] sm:$0xff] }
 0x152   : >> { %v907_v17 = vpop.f32.mrf.mxu1  ;;  %v3366_v23 = vld [vmem:[#allocation2 + $0x149] sm:$0xff]  ;;  %v3389_v25 = vpack.c.bf16 %v3365_v57, %v3364_v37 }
 0x153   : >> { %v5926_v50 = vadd.f32 %v4965_v22, %v1054_v59  ;;  %v1052_v10 = vadd.f32 %v907_v17, %v5865_v60  ;;  %v4968_v6 = vpop.f32.mrf.mxu0  ;;  %5255 = vmatmul.mubr.bf16.gmra.mxu0 %v3387_v27  ;;  %v3367_v60 = vld [vmem:[#allocation2 + $0x151] sm:$0xff] }
 0x154   : >> { %v4920_v56 = vpop.f32.mrf.mxu1  ;;  %5207 = vmatmul.mubr.bf16.gmra.mxu1 %v3014_v52  ;;  %5258 = vmatprep.mubr.bf16.mxu0 %v3388_v53  ;;  %v3017_v52 = vpack.c.bf16 %v2994_v58, %v2993_v11  ;;  %v3390_v27 = vpack.c.bf16 %v3367_v60, %v3366_v23  ;;  %v2998_v11 = vld [vmem:[#allocation2 + $0x190] sm:$0xff] }
 0x155   : >> { %v5929_v38 = vadd.f32 %v1280_v55, %v1052_v10  ;;  %v1057_v24 = vadd.f32 %v4920_v56, %v5869_v61  ;;  %5210 = vmatprep.mubr.bf16.mxu1 %v3015_v51  ;;  %v1293_v36 = vpop.f32.mrf.mxu0  ;;  %v2996_v56 = vld [vmem:[#allocation2 + $0x170] sm:$0xff] }
 0x156   : >> { %v920_v9 = vpop.f32.mrf.mxu1 }
 0x157   : >> { %v5932_v15 = vadd.f32 %v4968_v6, %v1057_v24  ;;  %v1055_v5 = vadd.f32 %v920_v9, %v5876_v20  ;;  %v4969_v13 = vpop.f32.mrf.mxu0  ;;  %v2995_v20 = vld [vmem:[#allocation2 + $0x168] sm:$0xff] }
 0x158   : >> { %v4921_v16 = vpop.f32.mrf.mxu1  ;;  %v2997_v24 = vld [vmem:[#allocation2 + $0x188] sm:$0xff] }
 0x159   : >> { %v5935_v22 = vadd.f32 %v1293_v36, %v1055_v5  ;;  %v1058_v61 = vadd.f32 %v4921_v16, %v5880_v30  ;;  %v1296_v51 = vpop.f32.mrf.mxu0  ;;  %v3368_v30 = vld [vmem:[#allocation2 + $0x169] sm:$0xff]  ;;  %v3018_v5 = vpack.c.bf16 %v2996_v56, %v2995_v20  ;;  %v3373_v56 = vld [vmem:[#allocation2 + $0x1b1] sm:$0xff] }
 0x15a   : >> { %v923_v59 = vpop.f32.mrf.mxu1  ;;  %v3370_v9 = vld [vmem:[#allocation2 + $0x189] sm:$0xff]  ;;  %v3391_v16 = vpack.c.bf16 %v3369_v14, %v3368_v30 }
 0x15b   : >> { %v5938_v53 = vadd.f32 %v4969_v13, %v1058_v61  ;;  %v1056_v17 = vadd.f32 %v923_v59, %v5886_v35  ;;  %v4972_v10 = vpop.f32.mrf.mxu0  ;;  %5259 = vmatmul.mubr.bf16.gmra.mxu0 %v3389_v25  ;;  %v3371_v35 = vld [vmem:[#allocation2 + $0x191] sm:$0xff] }
 0x15c   : >> { %v4924_v55 = vpop.f32.mrf.mxu1  ;;  %5211 = vmatmul.mubr.bf16.gmra.mxu1 %v3016_v21  ;;  %5262 = vmatprep.mubr.bf16.mxu0 %v3390_v27  ;;  %v3019_v21 = vpack.c.bf16 %v2998_v11, %v2997_v24  ;;  %v3392_v25 = vpack.c.bf16 %v3371_v35, %v3370_v9  ;;  %v3002_v24 = vld [vmem:[#allocation2 + $0x1d0] sm:$0xff] }
 0x15d   : >> { %v5941_v6 = vadd.f32 %v1296_v51, %v1056_v17  ;;  %v1061_v34 = vadd.f32 %v4924_v55, %v5890_v33  ;;  %5214 = vmatprep.mubr.bf16.mxu1 %v3017_v52  ;;  %v1309_v57 = vpop.f32.mrf.mxu0  ;;  %v3000_v55 = vld [vmem:[#allocation2 + $0x1b0] sm:$0xff] }
 0x15e   : >> { %v936_v37 = vpop.f32.mrf.mxu1 }
 0x15f   : >> { %v5944_v36 = vadd.f32 %v4972_v10, %v1061_v34  ;;  %v1059_v58 = vadd.f32 %v936_v37, %v5895_v62  ;;  %v4973_v60 = vpop.f32.mrf.mxu0  ;;  %v2999_v62 = vld [vmem:[#allocation2 + $0x1a8] sm:$0xff] }
 0x160   : >> { %v4925_v23 = vpop.f32.mrf.mxu1  ;;  %v3001_v34 = vld [vmem:[#allocation2 + $0x1c8] sm:$0xff] }
 0x161   : >> { %v5947_v13 = vadd.f32 %v1309_v57, %v1059_v58  ;;  %v1062_v33 = vadd.f32 %v4925_v23, %v5899_v63  ;;  %v1312_v52 = vpop.f32.mrf.mxu0  ;;  %v3372_v63 = vld [vmem:[#allocation2 + $0x1a9] sm:$0xff]  ;;  %v3020_v58 = vpack.c.bf16 %v3000_v55, %v2999_v62  ;;  %v3377_v55 = vld [vmem:[#allocation2 + $0x1f1] sm:$0xff] }
 0x162   : >> { %v939_v61 = vpop.f32.mrf.mxu1  ;;  %v3374_v37 = vld [vmem:[#allocation2 + $0x1c9] sm:$0xff]  ;;  %v3393_v23 = vpack.c.bf16 %v3373_v56, %v3372_v63 }
 0x163   : >> { %v5950_v27 = vadd.f32 %v4973_v60, %v1062_v33  ;;  %v1060_v59 = vadd.f32 %v939_v61, %v5903_v47  ;;  %v4976_v17 = vpop.f32.mrf.mxu0  ;;  %5263 = vmatmul.mubr.bf16.gmra.mxu0 %v3391_v16  ;;  %v3375_v47 = vld [vmem:[#allocation2 + $0x1d1] sm:$0xff]  ;;  %v3376_v62 = vld [vmem:[#allocation2 + $0x1e9] sm:$0xff] }
 0x164   : >> { %v4928_v51 = vpop.f32.mrf.mxu1  ;;  %5215 = vmatmul.mubr.bf16.gmra.mxu1 %v3018_v5  ;;  %5266 = vmatprep.mubr.bf16.mxu0 %v3392_v25  ;;  %v3021_v5 = vpack.c.bf16 %v3002_v24, %v3001_v34  ;;  %v3394_v16 = vpack.c.bf16 %v3375_v47, %v3374_v37  ;;  %v3395_v24 = vpack.c.bf16 %v3377_v55, %v3376_v62 }
 0x165   : >> { %v5953_v10 = vadd.f32 %v1312_v52, %v1060_v59  ;;  %v1065_v20 = vadd.f32 %v4928_v51, %v5835_v28  ;;  %5218 = vmatprep.mubr.bf16.mxu1 %v3019_v21  ;;  %v1325_v14 = vpop.f32.mrf.mxu0 }
 0x166   : >> { %v952_v30 = vpop.f32.mrf.mxu1 }
 0x167   : >> { %v5956_v57 = vadd.f32 %v4976_v17, %v1065_v20  ;;  %v1063_v11 = vadd.f32 %v952_v30, %v5841_v26  ;;  %v4977_v35 = vpop.f32.mrf.mxu0  ;;  %v3003_v26 = vld [vmem:[#allocation2 + $0x1e8] sm:$0xff] }
 0x168   : >> { %v4929_v9 = vpop.f32.mrf.mxu1 }
 0x169   : >> { %v5959_v60 = vadd.f32 %v1325_v14, %v1063_v11  ;;  %v1066_v28 = vadd.f32 %v4929_v9, %v5845_v40  ;;  %v1328_v21 = vpop.f32.mrf.mxu0  ;;  %v3004_v40 = vld [vmem:[#allocation2 + $0x1f0] sm:$0xff] }
 0x16a   : >> { %v955_v33 = vpop.f32.mrf.mxu1  ;;  %v3022_v14 = vpack.c.bf16 %v3004_v40, %v3003_v26 }
 0x16b   : >> { %v5962_v25 = vadd.f32 %v4977_v35, %v1066_v28  ;;  %v1064_v61 = vadd.f32 %v955_v33, %v5849_v41  ;;  %v4980_v59 = vpop.f32.mrf.mxu0  ;;  %5267 = vmatmul.mubr.bf16.gmra.mxu0 %v3393_v23  ;;  %v3007_v28 = vld [vmem:[#allocation2 + $0x228] sm:$0xff]  ;;  %v3381_v33 = vld [vmem:[#allocation2 + $0x231] sm:$0xff] }
 0x16c   : >> { %v4932_v52 = vpop.f32.mrf.mxu1  ;;  %5219 = vmatmul.mubr.bf16.gmra.mxu1 %v3020_v58  ;;  %5270 = vmatprep.mubr.bf16.mxu0 %v3394_v16  ;;  %v3380_v16 = vld [vmem:[#allocation2 + $0x229] sm:$0xff] }
 0x16d   : >> { %v5965_v51 = vadd.f32 %v1328_v21, %v1064_v61  ;;  %v1069_v17 = vadd.f32 %v4932_v52, %v5853_v18  ;;  %5222 = vmatprep.mubr.bf16.mxu1 %v3021_v5  ;;  %v1341_v63 = vpop.f32.mrf.mxu0  ;;  %v3397_v40 = vpack.c.bf16 %v3381_v33, %v3380_v16 }
 0x16e   : >> { %v968_v20 = vpop.f32.mrf.mxu1 }
 0x16f   : >> { %v5968_v56 = vadd.f32 %v4980_v59, %v1069_v17  ;;  %v1067_v41 = vadd.f32 %v968_v20, %v5859_v44  ;;  %v4981_v30 = vpop.f32.mrf.mxu0 }
 0x170   : >> { %v4933_v34 = vpop.f32.mrf.mxu1 }
 0x171   : >> { %v5971_v37 = vadd.f32 %v1341_v63, %v1067_v41  ;;  %v1070_v47 = vadd.f32 %v4933_v34, %v5863_v39  ;;  %v1344_v11 = vpop.f32.mrf.mxu0  ;;  %v3008_v39 = vld [vmem:[#allocation2 + $0x230] sm:$0xff] }
 0x172   : >> { %v971_v18 = vpop.f32.mrf.mxu1  ;;  %v3024_v17 = vpack.c.bf16 %v3008_v39, %v3007_v28 }
 0x173   : >> { %v5974_v9 = vadd.f32 %v4981_v30, %v1070_v47  ;;  %v1068_v35 = vadd.f32 %v971_v18, %v5867_v3  ;;  %v4984_v23 = vpop.f32.mrf.mxu0  ;;  %5271 = vmatmul.mubr.bf16.gmra.mxu0 %v3395_v24 }
 0x174   : >> { %v4936_v58 = vpop.f32.mrf.mxu1  ;;  %5223 = vmatmul.mubr.bf16.gmra.mxu1 %v3022_v14  ;;  %5274 = vmatprep.mubr.bf16.mxu0 %v5884_v32 }
 0x175   : >> { %v5977_v44 = vadd.f32 %v1344_v11, %v1068_v35  ;;  %v1073_v5 = vadd.f32 %v4936_v58, %v5871_v8  ;;  %5226 = vmatprep.mubr.bf16.mxu1 %v5804_v29  ;;  %v1357_v61 = vpop.f32.mrf.mxu0 }
 0x176   : >> { %v984_v21 = vpop.f32.mrf.mxu1 }
 0x177   : >> { %v5982_v52 = vadd.f32 %v4984_v23, %v1073_v5  ;;  %v1071_v3 = vadd.f32 %v984_v21, %v5878_v7  ;;  %v4985_v26 = vpop.f32.mrf.mxu0 }
 0x178   : >> { %v4937_v59 = vpop.f32.mrf.mxu1 }
 0x179   : >> { %v5985_v62 = vadd.f32 %v1357_v61, %v1071_v3  ;;  %v1074_v8 = vadd.f32 %v4937_v59, %v5882_v31  ;;  %v1360_v55 = vpop.f32.mrf.mxu0 }
 0x17a   : >> { %v987_v29 = vpop.f32.mrf.mxu1 }
 0x17b   : >> { %v5988_v32 = vadd.f32 %v4985_v26, %v1074_v8  ;;  %v1072_v20 = vadd.f32 %v987_v29, %v5888_v48  ;;  %v4988_v41 = vpop.f32.mrf.mxu0  ;;  %5275 = vmatmul.mubr.bf16.gmra.mxu0 %v3397_v40 }
 0x17c   : >> { %v4940_v63 = vpop.f32.mrf.mxu1  ;;  %5227 = vmatmul.mubr.bf16.gmra.mxu1 %v3024_v17 }
 0x17d   : >> { %v5991_v34 = vadd.f32 %v1360_v55, %v1072_v20  ;;  %v1077_v7 = vadd.f32 %v4940_v63, %v5892_v45  ;;  %v1373_v14 = vpop.f32.mrf.mxu0 }
 0x17e   : >> { %v1000_v30 = vpop.f32.mrf.mxu1 }
 0x17f   : >> { %v5994_v24 = vadd.f32 %v4988_v41, %v1077_v7  ;;  %v1075_v31 = vadd.f32 %v1000_v30, %v5897_v43  ;;  %v4989_v18 = vpop.f32.mrf.mxu0 }
 0x180   : >> { %v4941_v47 = vpop.f32.mrf.mxu1 }
 0x181   : >> { %v5997_v11 = vadd.f32 %v1373_v14, %v1075_v31  ;;  %v1078_v48 = vadd.f32 %v4941_v47, %v5901_v12  ;;  %v1376_v58 = vpop.f32.mrf.mxu0 }
 0x182   : >> { %v1003_v35 = vpop.f32.mrf.mxu1 }
 0x183   : >> { %v6000_v23 = vadd.f32 %v4989_v18, %v1078_v48  ;;  %v1076_v28 = vadd.f32 %v1003_v35, %v5905_v49  ;;  %v5056_v45 = vpop.f32.mrf.mxu0 }
 0x184   : >> { %v5008_v5 = vpop.f32.mrf.mxu1 }
 0x185   : >> { %v6003_v39 = vadd.f32 %v1376_v58, %v1076_v28  ;;  %v1795_v16 = vadd.f32 %v5008_v5, %v5908_v42  ;;  %v2007_v43 = vpop.f32.mrf.mxu0 }
 0x186   : >> { %v1634_v33 = vpop.f32.mrf.mxu1 }
 0x187   : >> { %v6006_v21 = vadd.f32 %v5056_v45, %v1795_v16  ;;  %v1793_v61 = vadd.f32 %v1634_v33, %v5911_v54  ;;  %v5057_v12 = vpop.f32.mrf.mxu0 }
 0x188   : >> { %v5009_v3 = vpop.f32.mrf.mxu1 }
 0x189   : >> { %v6009_v59 = vadd.f32 %v2007_v43, %v1793_v61  ;;  %v1796_v26 = vadd.f32 %v5009_v3, %v5914_v4  ;;  %v2010_v49 = vpop.f32.mrf.mxu0 }
 0x18a   : >> { %v1637_v17 = vpop.f32.mrf.mxu1 }
 0x18b   : >> { %v6012_v40 = vadd.f32 %v5057_v12, %v1796_v26  ;;  %v1794_v8 = vadd.f32 %v1637_v17, %v5917_v1  ;;  %v5060_v42 = vpop.f32.mrf.mxu0 }
 0x18c   : >> { %v5012_v29 = vpop.f32.mrf.mxu1 }
 0x18d   : >> { %v6015_v55 = vadd.f32 %v2010_v49, %v1794_v8  ;;  %v1799_v20 = vadd.f32 %v5012_v29, %v5920_v19  ;;  %v2023_v54 = vpop.f32.mrf.mxu0 }
 0x18e   : >> { %v1650_v63 = vpop.f32.mrf.mxu1 }
 0x18f   : >> { %v6018_v41 = vadd.f32 %v5060_v42, %v1799_v20  ;;  %v1797_v7 = vadd.f32 %v1650_v63, %v5923_v46  ;;  %v5061_v4 = vpop.f32.mrf.mxu0 }
 0x190   : >> { %v5013_v30 = vpop.f32.mrf.mxu1 }
 0x191   : >> { %v6021_v14 = vadd.f32 %v2023_v54, %v1797_v7  ;;  %v1800_v31 = vadd.f32 %v5013_v30, %v5926_v50  ;;  %v2026_v1 = vpop.f32.mrf.mxu0 }
 0x192   : >> { %v1653_v47 = vpop.f32.mrf.mxu1 }
 0x193   : >> { %v6024_v18 = vadd.f32 %v5061_v4, %v1800_v31  ;;  %v1798_v48 = vadd.f32 %v1653_v47, %v5929_v38  ;;  %v5064_v19 = vpop.f32.mrf.mxu0 }
 0x194   : >> { %v5016_v35 = vpop.f32.mrf.mxu1 }
 0x195   : >> { %v6027_v58 = vadd.f32 %v2026_v1, %v1798_v48  ;;  %v1803_v28 = vadd.f32 %v5016_v35, %v5932_v15  ;;  %v2039_v46 = vpop.f32.mrf.mxu0 }
 0x196   : >> { %v1666_v5 = vpop.f32.mrf.mxu1 }
 0x197   : >> { %v6030_v45 = vadd.f32 %v5064_v19, %v1803_v28  ;;  %v1801_v16 = vadd.f32 %v1666_v5, %v5935_v22  ;;  %v5065_v50 = vpop.f32.mrf.mxu0 }
 0x198   : >> { %v5017_v33 = vpop.f32.mrf.mxu1 }
 0x199   : >> { %v6033_v43 = vadd.f32 %v2039_v46, %v1801_v16  ;;  %v1804_v61 = vadd.f32 %v5017_v33, %v5938_v53  ;;  %v2042_v38 = vpop.f32.mrf.mxu0 }
 0x19a   : >> { %v1669_v3 = vpop.f32.mrf.mxu1 }
 0x19b   : >> { %v6036_v12 = vadd.f32 %v5065_v50, %v1804_v61  ;;  %v1802_v26 = vadd.f32 %v1669_v3, %v5941_v6  ;;  %v5068_v15 = vpop.f32.mrf.mxu0 }
 0x19c   : >> { %v5020_v17 = vpop.f32.mrf.mxu1 }
 0x19d   : >> { %v6039_v49 = vadd.f32 %v2042_v38, %v1802_v26  ;;  %v1807_v8 = vadd.f32 %v5020_v17, %v5944_v36  ;;  %v2055_v22 = vpop.f32.mrf.mxu0 }
 0x19e   : >> { %v1682_v29 = vpop.f32.mrf.mxu1 }
 0x19f   : >> { %v6042_v42 = vadd.f32 %v5068_v15, %v1807_v8  ;;  %v1805_v20 = vadd.f32 %v1682_v29, %v5947_v13  ;;  %v5069_v53 = vpop.f32.mrf.mxu0 }
 0x1a0   : >> { %v5021_v63 = vpop.f32.mrf.mxu1 }
 0x1a1   : >> { %v6045_v54 = vadd.f32 %v2055_v22, %v1805_v20  ;;  %v1808_v7 = vadd.f32 %v5021_v63, %v5950_v27  ;;  %v2058_v6 = vpop.f32.mrf.mxu0 }
 0x1a2   : >> { %v1685_v30 = vpop.f32.mrf.mxu1 }
 0x1a3   : >> { %v6048_v4 = vadd.f32 %v5069_v53, %v1808_v7  ;;  %v1806_v31 = vadd.f32 %v1685_v30, %v5953_v10  ;;  %v5072_v36 = vpop.f32.mrf.mxu0 }
 0x1a4   : >> { %v5024_v47 = vpop.f32.mrf.mxu1 }
 0x1a5   : >> { %v6051_v1 = vadd.f32 %v2058_v6, %v1806_v31  ;;  %v1811_v48 = vadd.f32 %v5024_v47, %v5956_v57  ;;  %v2071_v13 = vpop.f32.mrf.mxu0 }
 0x1a6   : >> { %v1698_v35 = vpop.f32.mrf.mxu1 }
 0x1a7   : >> { %v6054_v19 = vadd.f32 %v5072_v36, %v1811_v48  ;;  %v1809_v28 = vadd.f32 %v1698_v35, %v5959_v60  ;;  %v5073_v27 = vpop.f32.mrf.mxu0 }
 0x1a8   : >> { %v5025_v5 = vpop.f32.mrf.mxu1 }
 0x1a9   : >> { %v6057_v46 = vadd.f32 %v2071_v13, %v1809_v28  ;;  %v1812_v16 = vadd.f32 %v5025_v5, %v5962_v25  ;;  %v2074_v10 = vpop.f32.mrf.mxu0 }
 0x1aa   : >> { %v1701_v33 = vpop.f32.mrf.mxu1 }
 0x1ab   : >> { %v6060_v50 = vadd.f32 %v5073_v27, %v1812_v16  ;;  %v1810_v61 = vadd.f32 %v1701_v33, %v5965_v51  ;;  %v5076_v57 = vpop.f32.mrf.mxu0 }
 0x1ac   : >> { %v5028_v3 = vpop.f32.mrf.mxu1 }
 0x1ad   : >> { %6554 = vst [vmem:[#allocation7_spill] sm:$0xff] %v6060_v50  ;;  %v6063_v38 = vadd.f32 %v2074_v10, %v1810_v61  ;;  %v1815_v26 = vadd.f32 %v5028_v3, %v5968_v56  ;;  %v2087_v60 = vpop.f32.mrf.mxu0 }
 0x1ae   : >> { %v1714_v17 = vpop.f32.mrf.mxu1 }
 0x1af   : >> { %6555 = vst [vmem:[#allocation8_spill] sm:$0xff] %v6063_v38  ;;  %v6066_v15 = vadd.f32 %v5076_v57, %v1815_v26  ;;  %v1813_v8 = vadd.f32 %v1714_v17, %v5971_v37  ;;  %v5077_v25 = vpop.f32.mrf.mxu0 }
 0x1b0   : >> { %v5029_v29 = vpop.f32.mrf.mxu1 }
 0x1b1   : >> { %6556 = vst [vmem:[#allocation9_spill] sm:$0xff] %v6066_v15  ;;  %v6069_v22 = vadd.f32 %v2087_v60, %v1813_v8  ;;  %v1816_v20 = vadd.f32 %v5029_v29, %v5974_v9  ;;  %v2090_v51 = vpop.f32.mrf.mxu0 }
 0x1b2   : >> { %v1717_v63 = vpop.f32.mrf.mxu1 }
 0x1b3   : >> { %6557 = vst [vmem:[#allocation10_spill] sm:$0xff] %v6069_v22  ;;  %v6072_v53 = vadd.f32 %v5077_v25, %v1816_v20  ;;  %v1814_v7 = vadd.f32 %v1717_v63, %v5977_v44  ;;  %v5080_v56 = vpop.f32.mrf.mxu0 }
 0x1b4   : >> { %v5032_v30 = vpop.f32.mrf.mxu1 }
 0x1b5   : >> { %6558 = vst [vmem:[#allocation11_spill] sm:$0xff] %v6072_v53  ;;  %v6075_v6 = vadd.f32 %v2090_v51, %v1814_v7  ;;  %v1819_v31 = vadd.f32 %v5032_v30, %v5982_v52  ;;  %v2103_v37 = vpop.f32.mrf.mxu0 }
 0x1b6   : >> { %v1730_v47 = vpop.f32.mrf.mxu1 }
 0x1b7   : >> { %6559 = vst [vmem:[#allocation12_spill] sm:$0xff] %v6075_v6  ;;  %v6078_v36 = vadd.f32 %v5080_v56, %v1819_v31  ;;  %v1817_v48 = vadd.f32 %v1730_v47, %v5985_v62  ;;  %v5081_v9 = vpop.f32.mrf.mxu0 }
 0x1b8   : >> { %v5033_v35 = vpop.f32.mrf.mxu1 }
 0x1b9   : >> { %6560 = vst [vmem:[#allocation13_spill] sm:$0xff] %v6078_v36  ;;  %v6081_v13 = vadd.f32 %v2103_v37, %v1817_v48  ;;  %v1820_v28 = vadd.f32 %v5033_v35, %v5988_v32  ;;  %v2106_v44 = vpop.f32.mrf.mxu0 }
 0x1ba   : >> { %v1733_v5 = vpop.f32.mrf.mxu1 }
 0x1bb   : >> { %6561 = vst [vmem:[#allocation14_spill] sm:$0xff] %v6081_v13  ;;  %v6084_v27 = vadd.f32 %v5081_v9, %v1820_v28  ;;  %v1818_v16 = vadd.f32 %v1733_v5, %v5991_v34  ;;  %v5084_v52 = vpop.f32.mrf.mxu0 }
 0x1bc   : >> { %v5036_v33 = vpop.f32.mrf.mxu1 }
 0x1bd   : >> { %6562 = vst [vmem:[#allocation15_spill] sm:$0xff] %v6084_v27  ;;  %v6087_v10 = vadd.f32 %v2106_v44, %v1818_v16  ;;  %v1823_v61 = vadd.f32 %v5036_v33, %v5994_v24  ;;  %v2119_v62 = vpop.f32.mrf.mxu0 }
 0x1be   : >> { %v1746_v3 = vpop.f32.mrf.mxu1 }
 0x1bf   : >> { %6563 = vst [vmem:[#allocation16_spill] sm:$0xff] %v6087_v10  ;;  %v6090_v57 = vadd.f32 %v5084_v52, %v1823_v61  ;;  %v1821_v26 = vadd.f32 %v1746_v3, %v5997_v11  ;;  %v5085_v32 = vpop.f32.mrf.mxu0 }
 0x1c0   : >> { %v5037_v17 = vpop.f32.mrf.mxu1 }
 0x1c1   : >> { %6564 = vst [vmem:[#allocation17_spill] sm:$0xff] %v6090_v57  ;;  %v6093_v60 = vadd.f32 %v2119_v62, %v1821_v26  ;;  %v1824_v8 = vadd.f32 %v5037_v17, %v6000_v23  ;;  %v2122_v34 = vpop.f32.mrf.mxu0 }
 0x1c2   : >> { %v1749_v29 = vpop.f32.mrf.mxu1 }
 0x1c3   : >> { %6565 = vst [vmem:[#allocation18_spill] sm:$0xff] %v6093_v60  ;;  %v6096_v25 = vadd.f32 %v5085_v32, %v1824_v8  ;;  %v1822_v20 = vadd.f32 %v1749_v29, %v6003_v39  ;;  %v6099_v24 = vpop.f32.mrf.mxu0 }
 0x1c4   : >> { %v5104_v63 = vpop.f32.mrf.mxu1 }
 0x1c5   : >> { %6566 = vst [vmem:[#allocation19_spill] sm:$0xff] %v6096_v25  ;;  %v6101_v51 = vadd.f32 %v2122_v34, %v1822_v20  ;;  %v6103_v30 = vpop.f32.mrf.mxu0 }
 0x1c6   : >> { %v2380_v7 = vpop.f32.mrf.mxu1 }
 0x1c7   : >> { %6567 = vst [vmem:[#allocation20_spill] sm:$0xff] %v6101_v51  ;;  %v6107_v56 = vpop.f32.mrf.mxu0 }
 0x1c8   : >> { %v6105_v11 = vpop.f32.mrf.mxu1 }
 0x1c9   : >> { %v6111_v23 = vpop.f32.mrf.mxu0 }
 0x1ca   : >> { %v6109_v31 = vpop.f32.mrf.mxu1 }
 0x1cb   : >> { %v6115_v37 = vpop.f32.mrf.mxu0 }
 0x1cc   : >> { %v6113_v47 = vpop.f32.mrf.mxu1 }
 0x1cd   : >> { %v6119_v48 = vpop.f32.mrf.mxu0 }
 0x1ce   : >> { %v6117_v39 = vpop.f32.mrf.mxu1 }
 0x1cf   : >> { %v6123_v9 = vpop.f32.mrf.mxu0 }
 0x1d0   : >> { %v6121_v35 = vpop.f32.mrf.mxu1 }
 0x1d1   : >> { %v6127_v5 = vpop.f32.mrf.mxu0 }
 0x1d2   : >> { %v6125_v28 = vpop.f32.mrf.mxu1 }
 0x1d3   : >> { %v6131_v16 = vpop.f32.mrf.mxu0 }
 0x1d4   : >> { %v6129_v44 = vpop.f32.mrf.mxu1 }
 0x1d5   : >> { %v6135_v52 = vpop.f32.mrf.mxu0 }
 0x1d6   : >> { %v6133_v33 = vpop.f32.mrf.mxu1 }
 0x1d7   : >> { %v6139_v3 = vpop.f32.mrf.mxu0 }
 0x1d8   : >> { %v6137_v61 = vpop.f32.mrf.mxu1 }
 0x1d9   : >> { %v6143_v26 = vpop.f32.mrf.mxu0 }
 0x1da   : >> { %v6141_v62 = vpop.f32.mrf.mxu1 }
 0x1db   : >> { %v6147_v32 = vpop.f32.mrf.mxu0 }
 0x1dc   : >> { %v6145_v17 = vpop.f32.mrf.mxu1 }
 0x1dd   : >> { %v6151_v29 = vpop.f32.mrf.mxu0 }
 0x1de   : >> { %v6149_v8 = vpop.f32.mrf.mxu1 }
 0x1df   : >> { %v6155_v20 = vpop.f32.mrf.mxu0 }
 0x1e0   : >> { %v6153_v34 = vpop.f32.mrf.mxu1 }
 0x1e1   : >> { %v6159_v51 = vpop.f32.mrf.mxu0 }
 0x1e2   : >> { %v6157_v0 = vpop.f32.mrf.mxu1 }
 0x1e3   : >> { %v6163_v60 = vpop.f32.mrf.mxu0 }
 0x1e4   : >> { %v6161_v25 = vpop.f32.mrf.mxu1  ;;  %6568 = vst [vmem:[#allocation21_spill] sm:$0xff] %v6163_v60 }
 0x1e5   : >> { %v6167_v10 = vpop.f32.mrf.mxu0 }
 0x1e6   : >> { %v6165_v57 = vpop.f32.mrf.mxu1  ;;  %6569 = vst [vmem:[#allocation22_spill] sm:$0xff] %v6167_v10 }
 0x1e7   : >> { %v6171_v13 = vpop.f32.mrf.mxu0 }
 0x1e8   : >> { %v6169_v27 = vpop.f32.mrf.mxu1  ;;  %6571 = vst [vmem:[#allocation24_spill] sm:$0xff] %v6171_v13 }
 0x1e9   : >> { %6570 = vst [vmem:[#allocation23_spill] sm:$0xff] %v6169_v27  ;;  %v6175_v6 = vpop.f32.mrf.mxu0 }
 0x1ea   : >> { %v6173_v36 = vpop.f32.mrf.mxu1  ;;  %6573 = vst [vmem:[#allocation26_spill] sm:$0xff] %v6175_v6 }
 0x1eb   : >> { %6572 = vst [vmem:[#allocation25_spill] sm:$0xff] %v6173_v36  ;;  %v6179_v22 = vpop.f32.mrf.mxu0 }
 0x1ec   : >> { %v6177_v53 = vpop.f32.mrf.mxu1  ;;  %6575 = vst [vmem:[#allocation28_spill] sm:$0xff] %v6179_v22 }
 0x1ed   : >> { %6574 = vst [vmem:[#allocation27_spill] sm:$0xff] %v6177_v53  ;;  %v6183_v38 = vpop.f32.mrf.mxu0 }
 0x1ee   : >> { %v6181_v15 = vpop.f32.mrf.mxu1  ;;  %6577 = vst [vmem:[#allocation30_spill] sm:$0xff] %v6183_v38 }
 0x1ef   : >> { %6576 = vst [vmem:[#allocation29_spill] sm:$0xff] %v6181_v15  ;;  %v6187_v60 = vpop.f32.mrf.mxu0 }
 0x1f0   : >> { %v6185_v50 = vpop.f32.mrf.mxu1  ;;  %6579 = vst [vmem:[#allocation32_spill] sm:$0xff] %v6187_v60 }
 0x1f1   : >> { %6578 = vst [vmem:[#allocation31_spill] sm:$0xff] %v6185_v50  ;;  %v6191_v27 = vpop.f32.mrf.mxu0 }
 0x1f2   : >> { %v6189_v10 = vpop.f32.mrf.mxu1  ;;  %6581 = vst [vmem:[#allocation34_spill] sm:$0xff] %v6191_v27 }
 0x1f3   : >> { %6580 = vst [vmem:[#allocation33_spill] sm:$0xff] %v6189_v10  ;;  %v6195_v36 = vpop.f32.mrf.mxu0 }
 0x1f4   : >> { %v6193_v13 = vpop.f32.mrf.mxu1  ;;  %6583 = vst [vmem:[#allocation36_spill] sm:$0xff] %v6195_v36 }
 0x1f5   : >> { %6582 = vst [vmem:[#allocation35_spill] sm:$0xff] %v6193_v13  ;;  %v6199_v53 = vpop.f32.mrf.mxu0 }
 0x1f6   : >> { %v6197_v6 = vpop.f32.mrf.mxu1  ;;  %6585 = vst [vmem:[#allocation38_spill] sm:$0xff] %v6199_v53 }
 0x1f7   : >> { %6584 = vst [vmem:[#allocation37_spill] sm:$0xff] %v6197_v6  ;;  %v6203_v38 = vpop.f32.mrf.mxu0  ;;  %v2541_v6 = vadd.f32 %v5104_v63, %v6006_v21 }
 0x1f8   : >> { %v6201_v22 = vpop.f32.mrf.mxu1  ;;  %6587 = vst [vmem:[#allocation40_spill] sm:$0xff] %v6203_v38  ;;  %v2539_v38 = vadd.f32 %v2380_v7, %v6009_v59  ;;  %v2540_v59 = vadd.f32 %v6109_v31, %v6015_v55 }
 0x1f9   : >> { %6586 = vst [vmem:[#allocation39_spill] sm:$0xff] %v6201_v22  ;;  %v6207_v60 = vpop.f32.mrf.mxu0 }
 0x1fa   : >> { %v6205_v50 = vpop.f32.mrf.mxu1  ;;  %6589 = vst [vmem:[#allocation42_spill] sm:$0xff] %v6207_v60  ;;  %v2915_v60 = vadd.f32 %v6099_v24, %v2541_v6 }
 0x1fb   : >> { %6588 = vst [vmem:[#allocation41_spill] sm:$0xff] %v6205_v50  ;;  %v6211_v27 = vpop.f32.mrf.mxu0 }
 0x1fc   : >> { %v6209_v10 = vpop.f32.mrf.mxu1  ;;  %6590 = vst [vmem:[#allocation43_spill] sm:$0xff] %v6211_v27  ;;  %v2542_v27 = vadd.f32 %v6105_v11, %v6012_v40  ;;  %v2545_v11 = vadd.f32 %v6113_v47, %v6018_v41 }
 0x1fd   : >> { %v6215_v36 = vpop.f32.mrf.mxu0 }
 0x1fe   : >> { %v6213_v13 = vpop.f32.mrf.mxu1  ;;  %6592 = vst [vmem:[#allocation45_spill] sm:$0xff] %v6215_v36  ;;  %v2913_v36 = vadd.f32 %v6103_v30, %v2539_v38  ;;  %v2916_v6 = vadd.f32 %v6107_v56, %v2542_v27  ;;  %v2914_v30 = vadd.f32 %v6111_v23, %v2540_v59  ;;  %v2544_v23 = vadd.f32 %v6125_v28, %v6027_v58 }
 0x1ff   : >> { %6591 = vst [vmem:[#allocation44_spill] sm:$0xff] %v6213_v13  ;;  %v6220_v22 = vpop.f32.mrf.mxu0 }
 0x200   : >> { %v6218_v53 = vpop.f32.mrf.mxu1  ;;  %6594 = vst [vmem:[#allocation47_spill] sm:$0xff] %v6220_v22  ;;  %v6237_v22 = vld [vmem:[%s3755_s26] ss:$0 sm:$0xff]  ;;  %s3907_s26 = sadd.s32 (%p425_p9), 8, %s3894_s17 }
 0x201   : >> { %6593 = vst [vmem:[#allocation46_spill] sm:$0xff] %v6218_v53  ;;  %v6225_v50 = vpop.f32.mrf.mxu0  ;;  %v2543_v53 = vadd.f32 %v6117_v39, %v6021_v14  ;;  %v2919_v14 = vadd.f32 %v6115_v37, %v2545_v11  ;;  %v2918_v11 = vadd.f32 %v6127_v5, %v2544_v23 }
 0x202   : >> { %v6223_v15 = vpop.f32.mrf.mxu1  ;;  %6596 = vst [vmem:[#allocation49_spill] sm:$0xff] %v6225_v50 }
 0x203   : >> { %6595 = vst [vmem:[#allocation48_spill] sm:$0xff] %v6223_v15  ;;  %v5248_v63 = vpop.f32.mrf.mxu0  ;;  %v2917_v39 = vadd.f32 %v6119_v48, %v2543_v53 }
 0x204   : >> { %v5200_v21 = vpop.f32.mrf.mxu1 }
 0x205   : >> { %v3288_v7 = vadd.f32 %v5200_v21, %v2915_v60  ;;  %v3500_v15 = vpop.f32.mrf.mxu0  ;;  %v2546_v21 = vadd.f32 %v6121_v35, %v6024_v18 }
 0x206   : >> { %v3127_v50 = vpop.f32.mrf.mxu1 }
 0x207   : >> { %v3661_v24 = vadd.f32 %v5248_v63, %v3288_v7  ;;  %v3286_v40 = vadd.f32 %v3127_v50, %v2913_v36  ;;  %v5249_v38 = vpop.f32.mrf.mxu0  ;;  %v2920_v7 = vadd.f32 %v6123_v9, %v2546_v21  ;;  %v2547_v21 = vadd.f32 %v6133_v33, %v6033_v43 }
 0x208   : >> { %v5201_v13 = vpop.f32.mrf.mxu1 }
 0x209   : >> { %v3765_v55 = vadd.f32 %v6237_v22, %v3661_v24  ;;  %v3659_v60 = vadd.f32 %v3500_v15, %v3286_v40  ;;  %v3289_v31 = vadd.f32 %v5201_v13, %v2916_v6  ;;  %v3503_v56 = vpop.f32.mrf.mxu0  ;;  %v2549_v6 = vadd.f32 %v6129_v44, %v6030_v45 }
 0x20a   : >> { %v3130_v27 = vpop.f32.mrf.mxu1 }
 0x20b   : >> { %v3797_v50 = vmax.f32 %v3765_v55, 0.0  ;;  %v3763_v36 = vadd.f32 %v6237_v22, %v3659_v60  ;;  %v3662_v41 = vadd.f32 %v5249_v38, %v3289_v31  ;;  %v3287_v47 = vadd.f32 %v3130_v27, %v2914_v30  ;;  %v5252_v15 = vpop.f32.mrf.mxu0 }
 0x20c   : >> { %v5204_v63 = vpop.f32.mrf.mxu1  ;;  %v2923_v31 = vadd.f32 %v6131_v16, %v2549_v6  ;;  %v2550_v27 = vadd.f32 %v6137_v61, %v6036_v12  ;;  %v2548_v16 = vadd.f32 %v6141_v62, %v6039_v49 }
 0x20d   : >> { %v3829_v13 = vsel %vm422_vm0, %v3797_v50, %v3765_v55  ;;  %v3795_v18 = vmax.f32 %v3763_v36, 0.0  ;;  %v3766_v35 = vadd.f32 %v6237_v22, %v3662_v41  ;;  %v3660_v59 = vadd.f32 %v3503_v56, %v3287_v47  ;;  %v3516_v48 = vpop.f32.mrf.mxu0 }
 0x20e   : >> { %3861 = vst [vmem:[#allocation2 + $0x48] sm:$0xff] %v3829_v13  ;;  %v3292_v37 = vadd.f32 %v5204_v63, %v2919_v14  ;;  %v3143_v53 = vpop.f32.mrf.mxu1  ;;  %v2924_v13 = vadd.f32 %v6139_v3, %v2550_v27  ;;  %v2551_v3 = vadd.f32 %v6149_v8, %v6045_v54 }
 0x20f   : >> { %v3827_v58 = vsel %vm422_vm0, %v3795_v18, %v3763_v36  ;;  %v3798_v28 = vmax.f32 %v3766_v35, 0.0  ;;  %v3764_v24 = vadd.f32 %v6237_v22, %v3660_v59  ;;  %v3290_v40 = vadd.f32 %v3143_v53, %v2917_v39  ;;  %v5253_v9 = vpop.f32.mrf.mxu0 }
 0x210   : >> { %3859 = vst [vmem:[#allocation2 + $0x28] sm:$0xff] %v3827_v58  ;;  %v3665_v38 = vadd.f32 %v5252_v15, %v3292_v37  ;;  %v5205_v30 = vpop.f32.mrf.mxu1  ;;  %v2921_v15 = vadd.f32 %v6135_v52, %v2547_v21  ;;  %v2553_v18 = vadd.f32 %v6145_v17, %v6042_v42  ;;  %v2922_v52 = vadd.f32 %v6143_v26, %v2548_v16 }
 0x211   : >> { %v3830_v45 = vsel %vm422_vm0, %v3798_v28, %v3766_v35  ;;  %v3796_v44 = vmax.f32 %v3764_v24, 0.0  ;;  %v3663_v55 = vadd.f32 %v3516_v48, %v3290_v40  ;;  %v3293_v60 = vadd.f32 %v5205_v30, %v2920_v7  ;;  %v3519_v50 = vpop.f32.mrf.mxu0 }
 0x212   : >> { %3862 = vst [vmem:[#allocation2 + $0x50] sm:$0xff] %v3830_v45  ;;  %v3769_v5 = vadd.f32 %v6237_v22, %v3665_v38  ;;  %v3146_v56 = vpop.f32.mrf.mxu1  ;;  %v2927_v40 = vadd.f32 %v6147_v32, %v2553_v18  ;;  %v2925_v45 = vadd.f32 %v6151_v29, %v2551_v3  ;;  %v2557_v29 = vadd.f32 %v6161_v25, %v6054_v19 }
 0x213   : >> { %v3828_v36 = vsel %vm422_vm0, %v3796_v44, %v3764_v24  ;;  %v3767_v41 = vadd.f32 %v6237_v22, %v3663_v55  ;;  %v3666_v47 = vadd.f32 %v5253_v9, %v3293_v60  ;;  %v3291_v14 = vadd.f32 %v3146_v56, %v2918_v11  ;;  %v5256_v39 = vpop.f32.mrf.mxu0 }
 0x214   : >> { %3860 = vst [vmem:[#allocation2 + $0x30] sm:$0xff] %v3828_v36  ;;  %v3801_v43 = vmax.f32 %v3769_v5, 0.0  ;;  %v5208_v33 = vpop.f32.mrf.mxu1  ;;  %v2554_v44 = vadd.f32 %v6153_v34, %v6048_v4  ;;  %v2552_v55 = vadd.f32 %v6157_v0, %v6051_v1  ;;  %v2555_v16 = vadd.f32 %v6165_v57, %v6057_v46 }
 0x215   : >> { %v3799_v12 = vmax.f32 %v3767_v41, 0.0  ;;  %v3770_v61 = vadd.f32 %v6237_v22, %v3666_v47  ;;  %v3664_v23 = vadd.f32 %v3519_v50, %v3291_v14  ;;  %v3296_v63 = vadd.f32 %v5208_v33, %v2923_v31  ;;  %v3532_v62 = vpop.f32.mrf.mxu0 }
 0x216   : >> { %v3833_v35 = vsel %vm422_vm0, %v3801_v43, %v3769_v5  ;;  %v3159_v49 = vpop.f32.mrf.mxu1  ;;  %v2928_v47 = vadd.f32 %v6155_v20, %v2554_v44  ;;  %v2926_v14 = vadd.f32 %v6159_v51, %v2552_v55  ;;  %v6599_v51 = vld [vmem:[#allocation23_spill] sm:$0xff] }
 0x217   : >> { %3865 = vst [vmem:[#allocation2 + $0x88] sm:$0xff] %v3833_v35  ;;  %v3831_v59 = vsel %vm422_vm0, %v3799_v12, %v3767_v41  ;;  %v3802_v7 = vmax.f32 %v3770_v61, 0.0  ;;  %v3768_v6 = vadd.f32 %v6237_v22, %v3664_v23  ;;  %v3669_v37 = vadd.f32 %v5256_v39, %v3296_v63  ;;  %v5257_v53 = vpop.f32.mrf.mxu0  ;;  %v6597_v23 = vld [vmem:[#allocation21_spill] sm:$0xff]  ;;  %v6598_v63 = vld [vmem:[#allocation7_spill] sm:$0xff] }
 0x218   : >> { %3863 = vst [vmem:[#allocation2 + $0x68] sm:$0xff] %v3831_v59  ;;  %v3294_v42 = vadd.f32 %v3159_v49, %v2921_v15  ;;  %v5209_v17 = vpop.f32.mrf.mxu1  ;;  %v2931_v20 = vadd.f32 %v6597_v23, %v2557_v29  ;;  %v2558_v15 = vadd.f32 %v6599_v51, %v6598_v63  ;;  %v6600_v59 = vld [vmem:[#allocation22_spill] sm:$0xff]  ;;  %v6614_v63 = vld [vmem:[#allocation33_spill] sm:$0xff] }
 0x219   : >> { %v3834_v48 = vsel %vm422_vm0, %v3802_v7, %v3770_v61  ;;  %v3800_v58 = vmax.f32 %v3768_v6, 0.0  ;;  %v3773_v28 = vadd.f32 %v6237_v22, %v3669_v37  ;;  %v3297_v24 = vadd.f32 %v5209_v17, %v2924_v13  ;;  %v3535_v26 = vpop.f32.mrf.mxu0 }
 0x21a   : >> { %3866 = vst [vmem:[#allocation2 + $0x90] sm:$0xff] %v3834_v48  ;;  %v3667_v11 = vadd.f32 %v3532_v62, %v3294_v42  ;;  %v3162_v38 = vpop.f32.mrf.mxu1  ;;  %v2929_v7 = vadd.f32 %v6600_v59, %v2555_v16  ;;  %v6601_v48 = vld [vmem:[#allocation24_spill] sm:$0xff] }
 0x21b   : >> { %v3832_v54 = vsel %vm422_vm0, %v3800_v58, %v3768_v6  ;;  %v3805_v8 = vmax.f32 %v3773_v28, 0.0  ;;  %v3670_v30 = vadd.f32 %v5257_v53, %v3297_v24  ;;  %v3295_v9 = vadd.f32 %v3162_v38, %v2922_v52  ;;  %v5260_v31 = vpop.f32.mrf.mxu0  ;;  %v6603_v24 = vld [vmem:[#allocation25_spill] sm:$0xff]  ;;  %v6605_v38 = vld [vmem:[#allocation27_spill] sm:$0xff] }
 0x21c   : >> { %3864 = vst [vmem:[#allocation2 + $0x70] sm:$0xff] %v3832_v54  ;;  %v3771_v32 = vadd.f32 %v6237_v22, %v3667_v11  ;;  %v5212_v60 = vpop.f32.mrf.mxu1  ;;  %v2932_v58 = vadd.f32 %v6601_v48, %v2558_v15  ;;  %v6604_v11 = vld [vmem:[#allocation9_spill] sm:$0xff] }
 0x21d   : >> { %v3837_v21 = vsel %vm422_vm0, %v3805_v8, %v3773_v28  ;;  %v3774_v27 = vadd.f32 %v6237_v22, %v3670_v30  ;;  %v3668_v5 = vadd.f32 %v3535_v26, %v3295_v9  ;;  %v3300_v56 = vadd.f32 %v5212_v60, %v2927_v40  ;;  %v3548_v50 = vpop.f32.mrf.mxu0  ;;  %v6602_v28 = vld [vmem:[#allocation8_spill] sm:$0xff]  ;;  %v6607_v60 = vld [vmem:[#allocation29_spill] sm:$0xff] }
 0x21e   : >> { %3869 = vst [vmem:[#allocation2 + $0xc8] sm:$0xff] %v3837_v21  ;;  %v3803_v4 = vmax.f32 %v3771_v32, 0.0  ;;  %v3175_v34 = vpop.f32.mrf.mxu1  ;;  %v2556_v40 = vadd.f32 %v6603_v24, %v6602_v28  ;;  %v2561_v26 = vadd.f32 %v6605_v38, %v6604_v11  ;;  %v6618_v28 = vld [vmem:[#allocation35_spill] sm:$0xff]  ;;  %v6620_v11 = vld [vmem:[#allocation37_spill] sm:$0xff] }
 0x21f   : >> { %v3806_v0 = vmax.f32 %v3774_v27, 0.0  ;;  %v3772_v1 = vadd.f32 %v6237_v22, %v3668_v5  ;;  %v3673_v36 = vadd.f32 %v5260_v31, %v3300_v56  ;;  %v3298_v41 = vadd.f32 %v3175_v34, %v2925_v45  ;;  %v5261_v25 = vpop.f32.mrf.mxu0 }
 0x220   : >> { %v3835_v43 = vsel %vm422_vm0, %v3803_v4, %v3771_v32  ;;  %v5213_v19 = vpop.f32.mrf.mxu1  ;;  %v6606_v32 = vld [vmem:[#allocation10_spill] sm:$0xff] }
 0x221   : >> { %3867 = vst [vmem:[#allocation2 + $0xa8] sm:$0xff] %v3835_v43  ;;  %v3838_v33 = vsel %vm422_vm0, %v3806_v0, %v3774_v27  ;;  %v3804_v39 = vmax.f32 %v3772_v1, 0.0  ;;  %v3777_v12 = vadd.f32 %v6237_v22, %v3673_v36  ;;  %v3671_v61 = vadd.f32 %v3548_v50, %v3298_v41  ;;  %v3551_v13 = vpop.f32.mrf.mxu0  ;;  %v6608_v50 = vld [vmem:[#allocation26_spill] sm:$0xff]  ;;  %v6610_v41 = vld [vmem:[#allocation11_spill] sm:$0xff] }
 0x222   : >> { %3870 = vst [vmem:[#allocation2 + $0xd0] sm:$0xff] %v3838_v33  ;;  %v3301_v46 = vadd.f32 %v5213_v19, %v2928_v47  ;;  %v3178_v57 = vpop.f32.mrf.mxu1  ;;  %v2559_v31 = vadd.f32 %v6607_v60, %v6606_v32  ;;  %v2930_v0 = vadd.f32 %v6608_v50, %v2556_v40  ;;  %v6611_v47 = vld [vmem:[#allocation31_spill] sm:$0xff]  ;;  %v6619_v40 = vld [vmem:[#allocation14_spill] sm:$0xff] }
 0x223   : >> { %v3836_v18 = vsel %vm422_vm0, %v3804_v39, %v3772_v1  ;;  %v3809_v35 = vmax.f32 %v3777_v12, 0.0  ;;  %v3775_v49 = vadd.f32 %v6237_v22, %v3671_v61  ;;  %v3299_v62 = vadd.f32 %v3178_v57, %v2926_v14  ;;  %v5264_v52 = vpop.f32.mrf.mxu0  ;;  %v6609_v1 = vld [vmem:[#allocation28_spill] sm:$0xff]  ;;  %v6612_v61 = vld [vmem:[#allocation30_spill] sm:$0xff]  ;;  %v6622_v32 = vld [vmem:[#allocation39_spill] sm:$0xff] }
 0x224   : >> { %3868 = vst [vmem:[#allocation2 + $0xb0] sm:$0xff] %v3836_v18  ;;  %v3674_v6 = vadd.f32 %v5261_v25, %v3301_v46  ;;  %v5216_v37 = vpop.f32.mrf.mxu1  ;;  %v2935_v36 = vadd.f32 %v6609_v1, %v2561_v26  ;;  %v2562_v14 = vadd.f32 %v6611_v47, %v6610_v41  ;;  %v2933_v23 = vadd.f32 %v6612_v61, %v2559_v31  ;;  %v6626_v41 = vld [vmem:[#allocation41_spill] sm:$0xff] }
 0x225   : >> { %v3841_v3 = vsel %vm422_vm0, %v3809_v35, %v3777_v12  ;;  %v3807_v42 = vmax.f32 %v3775_v49, 0.0  ;;  %v3672_v17 = vadd.f32 %v3551_v13, %v3299_v62  ;;  %v3304_v53 = vadd.f32 %v5216_v37, %v2931_v20  ;;  %v3564_v30 = vpop.f32.mrf.mxu0  ;;  %v6613_v20 = vld [vmem:[#allocation12_spill] sm:$0xff] }
 0x226   : >> { %3873 = vst [vmem:[#allocation2 + $0x108] sm:$0xff] %v3841_v3  ;;  %v3778_v54 = vadd.f32 %v6237_v22, %v3674_v6  ;;  %v3191_v8 = vpop.f32.mrf.mxu1  ;;  %v2560_v51 = vadd.f32 %v6614_v63, %v6613_v20  ;;  %v6615_v62 = vld [vmem:[#allocation32_spill] sm:$0xff]  ;;  %v2563_v38 = vadd.f32 %v6620_v11, %v6619_v40 }
 0x227   : >> { %v3839_v9 = vsel %vm422_vm0, %v3807_v42, %v3775_v49  ;;  %v3776_v45 = vadd.f32 %v6237_v22, %v3672_v17  ;;  %v3677_v44 = vadd.f32 %v5264_v52, %v3304_v53  ;;  %v3302_v55 = vadd.f32 %v3191_v8, %v2929_v7  ;;  %v5265_v5 = vpop.f32.mrf.mxu0  ;;  %v6616_v53 = vld [vmem:[#allocation34_spill] sm:$0xff] }
 0x228   : >> { %3871 = vst [vmem:[#allocation2 + $0xe8] sm:$0xff] %v3839_v9  ;;  %v3810_v21 = vmax.f32 %v3778_v54, 0.0  ;;  %v5217_v27 = vpop.f32.mrf.mxu1  ;;  %v2936_v59 = vadd.f32 %v6615_v62, %v2562_v14  ;;  %v2934_v48 = vadd.f32 %v6616_v53, %v2560_v51  ;;  %v6632_v53 = vld [vmem:[#allocation44_spill] sm:$0xff] }
 0x229   : >> { %v3808_v56 = vmax.f32 %v3776_v45, 0.0  ;;  %v3781_v29 = vadd.f32 %v6237_v22, %v3677_v44  ;;  %v3675_v4 = vadd.f32 %v3564_v30, %v3302_v55  ;;  %v3305_v34 = vadd.f32 %v5217_v27, %v2932_v58  ;;  %v3567_v19 = vpop.f32.mrf.mxu0  ;;  %v6617_v58 = vld [vmem:[#allocation13_spill] sm:$0xff]  ;;  %v6621_v55 = vld [vmem:[#allocation15_spill] sm:$0xff] }
 0x22a   : >> { %v3842_v16 = vsel %vm422_vm0, %v3810_v21, %v3778_v54  ;;  %v3194_v43 = vpop.f32.mrf.mxu1  ;;  %v2565_v24 = vadd.f32 %v6618_v28, %v6617_v58  ;;  %v2566_v60 = vadd.f32 %v6622_v32, %v6621_v55  ;;  %v6633_v58 = vld [vmem:[#allocation19_spill] sm:$0xff]  ;;  %v6634_v28 = vld [vmem:[#allocation46_spill] sm:$0xff] }
 0x22b   : >> { %3874 = vst [vmem:[#allocation2 + $0x110] sm:$0xff] %v3842_v16  ;;  %v3840_v25 = vsel %vm422_vm0, %v3808_v56, %v3776_v45  ;;  %v3813_v33 = vmax.f32 %v3781_v29, 0.0  ;;  %v3779_v39 = vadd.f32 %v6237_v22, %v3675_v4  ;;  %v3678_v12 = vadd.f32 %v5265_v5, %v3305_v34  ;;  %v5268_v57 = vpop.f32.mrf.mxu0  ;;  %v6623_v34 = vld [vmem:[#allocation36_spill] sm:$0xff] }
 0x22c   : >> { %3872 = vst [vmem:[#allocation2 + $0xf0] sm:$0xff] %v3840_v25  ;;  %v3303_v15 = vadd.f32 %v3194_v43, %v2930_v0  ;;  %v5220_v46 = vpop.f32.mrf.mxu1  ;;  %v2939_v50 = vadd.f32 %v6623_v34, %v2565_v24  ;;  %v6624_v0 = vld [vmem:[#allocation38_spill] sm:$0xff]  ;;  %v2570_v24 = vadd.f32 %v6634_v28, %v6633_v58 }
 0x22d   : >> { %v3845_v13 = vsel %vm422_vm0, %v3813_v33, %v3781_v29  ;;  %v3811_v18 = vmax.f32 %v3779_v39, 0.0  ;;  %v3782_v35 = vadd.f32 %v6237_v22, %v3678_v12  ;;  %v3308_v49 = vadd.f32 %v5220_v46, %v2935_v36  ;;  %v3580_v37 = vpop.f32.mrf.mxu0  ;;  %v6625_v36 = vld [vmem:[#allocation16_spill] sm:$0xff]  ;;  %v5391_v28 = vld [vmem:[%s6548_s4 + $0x54] ss:$8 sps:$4 sm:$0xff] (%p425_p9)  }
 0x22e   : >> { %3877 = vst [vmem:[#allocation2 + $0x148] sm:$0xff] %v3845_v13  ;;  %v3676_v7 = vadd.f32 %v3567_v19, %v3303_v15  ;;  %v3207_v6 = vpop.f32.mrf.mxu1  ;;  %v2937_v1 = vadd.f32 %v6624_v0, %v2563_v38  ;;  %v2564_v47 = vadd.f32 %v6626_v41, %v6625_v36  ;;  %v6627_v12 = vld [vmem:[#allocation40_spill] sm:$0xff] }
 0x22f   : >> { %v3843_v52 = vsel %vm422_vm0, %v3811_v18, %v3779_v39  ;;  %v3814_v3 = vmax.f32 %v3782_v35, 0.0  ;;  %v3681_v42 = vadd.f32 %v5268_v57, %v3308_v49  ;;  %v3306_v17 = vadd.f32 %v3207_v6, %v2933_v23  ;;  %v5269_v8 = vpop.f32.mrf.mxu0  ;;  %v6628_v23 = vld [vmem:[#allocation17_spill] sm:$0xff] }
 0x230   : >> { %3875 = vst [vmem:[#allocation2 + $0x128] sm:$0xff] %v3843_v52  ;;  %v3780_v26 = vadd.f32 %v6237_v22, %v3676_v7  ;;  %v5221_v54 = vpop.f32.mrf.mxu1  ;;  %v2940_v61 = vadd.f32 %v6627_v12, %v2566_v60  ;;  %v2569_v20 = vadd.f32 %v6209_v10, %v6628_v23 }
 0x231   : >> { %v3846_v30 = vsel %vm422_vm0, %v3814_v3, %v3782_v35  ;;  %v3785_v9 = vadd.f32 %v6237_v22, %v3681_v42  ;;  %v3679_v45 = vadd.f32 %v3580_v37, %v3306_v17  ;;  %v3309_v44 = vadd.f32 %v5221_v54, %v2936_v59  ;;  %v3583_v27 = vpop.f32.mrf.mxu0  ;;  %v6629_v35 = vld [vmem:[#allocation42_spill] sm:$0xff]  ;;  %v6630_v3 = vld [vmem:[#allocation43_spill] sm:$0xff] }
 0x232   : >> { %3878 = vst [vmem:[#allocation2 + $0x150] sm:$0xff] %v3846_v30  ;;  %v3812_v31 = vmax.f32 %v3780_v26, 0.0  ;;  %v3210_v21 = vpop.f32.mrf.mxu1  ;;  %v2938_v49 = vadd.f32 %v6629_v35, %v2564_v47  ;;  %v2943_v42 = vadd.f32 %v6630_v3, %v2569_v20  ;;  %v6631_v17 = vld [vmem:[#allocation18_spill] sm:$0xff] }
 0x233   : >> { %v3817_v5 = vmax.f32 %v3785_v9, 0.0  ;;  %v3783_v56 = vadd.f32 %v6237_v22, %v3679_v45  ;;  %v3682_v29 = vadd.f32 %v5269_v8, %v3309_v44  ;;  %v3307_v4 = vadd.f32 %v3210_v21, %v2934_v48  ;;  %v5272_v43 = vpop.f32.mrf.mxu0  ;;  %v6636_v45 = vld [vmem:[#allocation48_spill] sm:$0xff] }
 0x234   : >> { %v3844_v14 = vsel %vm422_vm0, %v3812_v31, %v3780_v26  ;;  %v5224_v16 = vpop.f32.mrf.mxu1  ;;  %v2567_v48 = vadd.f32 %v6632_v53, %v6631_v17  ;;  %v5457_v17 = vmov (%p425_p9), 0   ;;  %v5388_v53 = vld [vmem:[%s6548_s4 + $0x64] ss:$8 sps:$4 sm:$0xff] (%p425_p9)  }
 0x235   : >> { %3876 = vst [vmem:[#allocation2 + $0x130] sm:$0xff] %v3844_v14  ;;  %v3849_v19 = vsel %vm422_vm0, %v3817_v5, %v3785_v9  ;;  %v3815_v25 = vmax.f32 %v3783_v56, 0.0  ;;  %v3786_v33 = vadd.f32 %v6237_v22, %v3682_v29  ;;  %v3680_v39 = vadd.f32 %v3583_v27, %v3307_v4  ;;  %v3596_v15 = vpop.f32.mrf.mxu0  ;;  %v6635_v9 = vld [vmem:[#allocation20_spill] sm:$0xff]  ;;  %v6638_v4 = vld [vmem:[#allocation47_spill] sm:$0xff]  ;;  %4075 = vmatprep.mubr.bf16.mxu0 (%p425_p9), %v5457_v17 }
 0x236   : >> { %3881 = vst [vmem:[#allocation2 + $0x188] sm:$0xff] %v3849_v19  ;;  %v3312_v63 = vadd.f32 %v5224_v16, %v2939_v50  ;;  %v3223_v51 = vpop.f32.mrf.mxu1  ;;  %v2568_v44 = vadd.f32 %v6636_v45, %v6635_v9  ;;  %v2944_v34 = vadd.f32 %v6638_v4, %v2570_v24  ;;  %v6639_v16 = vld [vmem:[#allocation49_spill] sm:$0xff]  ;;  %v5410_v4 = vld [vmem:[%s6550_s6 + $0x38] sm:$0xff] (%p425_p9)  }
 0x237   : >> { %v3847_v46 = vsel %vm422_vm0, %v3815_v25, %v3783_v56  ;;  %v3818_v57 = vmax.f32 %v3786_v33, 0.0  ;;  %v3784_v13 = vadd.f32 %v6237_v22, %v3680_v39  ;;  %v3310_v18 = vadd.f32 %v3223_v51, %v2937_v1  ;;  %v5273_v7 = vpop.f32.mrf.mxu0  ;;  %v6637_v56 = vld [vmem:[#allocation45_spill] sm:$0xff] }
 0x238   : >> { %3879 = vst [vmem:[#allocation2 + $0x168] sm:$0xff] %v3847_v46  ;;  %v3685_v62 = vadd.f32 %v5272_v43, %v3312_v63  ;;  %v5225_v59 = vpop.f32.mrf.mxu1  ;;  %v2941_v29 = vadd.f32 %v6637_v56, %v2567_v48  ;;  %v2942_v43 = vadd.f32 %v6639_v16, %v2568_v44  ;;  %v6640_v48 = vlaneseq (%p425_p9)  ;;  %v5400_v56 = vld [vmem:[%s6548_s4 + $0x24] ss:$8 sps:$4 sm:$0xff] (%p425_p9)  }
 0x239   : >> { %v3850_v10 = vsel %vm422_vm0, %v3818_v57, %v3786_v33  ;;  %v3816_v6 = vmax.f32 %v3784_v13, 0.0  ;;  %v3683_v37 = vadd.f32 %v3596_v15, %v3310_v18  ;;  %v3313_v52 = vadd.f32 %v5225_v59, %v2940_v61  ;;  %v3599_v38 = vpop.f32.mrf.mxu0  ;;  %v5414_v16 = vld [vmem:[%s6550_s6 + $0x28] sm:$0xff] (%p425_p9)  }
 0x23a   : >> { %3882 = vst [vmem:[#allocation2 + $0x190] sm:$0xff] %v3850_v10  ;;  %v3789_v40 = vadd.f32 %v6237_v22, %v3685_v62  ;;  %v3226_v11 = vpop.f32.mrf.mxu1  ;;  %v6438_v58 = vshrl.u32 (%p425_p9), %v6640_v48, 7 }
 0x23b   : >> { %v3848_v26 = vsel %vm422_vm0, %v3816_v6, %v3784_v13  ;;  %v3787_v54 = vadd.f32 %v6237_v22, %v3683_v37  ;;  %v3686_v8 = vadd.f32 %v5273_v7, %v3313_v52  ;;  %v3311_v30 = vadd.f32 %v3226_v11, %v2938_v49  ;;  %v5276_v60 = vpop.f32.mrf.mxu0  ;;  %v5393_v11 = vld [vmem:[%s6548_s4 + $0x50] ss:$8 sps:$4 sm:$0xff] (%p425_p9)  }
 0x23c   : >> { %3880 = vst [vmem:[#allocation2 + $0x170] sm:$0xff] %v3848_v26  ;;  %v3821_v55 = vmax.f32 %v3789_v40, 0.0  ;;  %v5228_v32 = vpop.f32.mrf.mxu1  ;;  %v3904_v24 = vadd.s32 (%p425_p9), 8, %v6438_v58  ;;  %v5394_v26 = vld [vmem:[%s6548_s4 + $0x44] ss:$8 sps:$4 sm:$0xff] (%p425_p9)  }
 0x23d   : >> { %v3819_v31 = vmax.f32 %v3787_v54, 0.0  ;;  %v3790_v21 = vadd.f32 %v6237_v22, %v3686_v8  ;;  %v3684_v27 = vadd.f32 %v3599_v38, %v3311_v30  ;;  %v3316_v5 = vadd.f32 %v5228_v32, %v2943_v42  ;;  %v3612_v1 = vpop.f32.mrf.mxu0  ;;  %v5387_v42 = vld [vmem:[%s6548_s4 + $0x70] ss:$8 sps:$4 sm:$0xff] (%p425_p9)   ;;  %v5396_v8 = vld [vmem:[%s6548_s4 + $0x40] ss:$8 sps:$4 sm:$0xff] (%p425_p9)  }
 0x23e   : >> { %v3853_v50 = vsel %vm422_vm0, %v3821_v55, %v3789_v40  ;;  %v3239_v0 = vpop.f32.mrf.mxu1  ;;  %v3905_v40 = vadd.s32 (%p425_p9), 16, %v6438_v58  ;;  %v3906_v38 = vadd.s32 (%p425_p9), 24, %v6438_v58  ;;  %v5397_v30 = vld [vmem:[%s6548_s4 + $0x34] ss:$8 sps:$4 sm:$0xff] (%p425_p9)  }
 0x23f   : >> { %3885 = vst [vmem:[#allocation2 + $0x1c8] sm:$0xff] %v3853_v50  ;;  %v3851_v36 = vsel %vm422_vm0, %v3819_v31, %v3787_v54  ;;  %v3822_v41 = vmax.f32 %v3790_v21, 0.0  ;;  %v3788_v47 = vadd.f32 %v6237_v22, %v3684_v27  ;;  %v3689_v14 = vadd.f32 %v5276_v60, %v3316_v5  ;;  %v5277_v33 = vpop.f32.mrf.mxu0  ;;  %v5399_v27 = vld [vmem:[%s6548_s4 + $0x30] ss:$8 sps:$4 sm:$0xff] (%p425_p9)  }
 0x240   : >> { %3883 = vst [vmem:[#allocation2 + $0x1a8] sm:$0xff] %v3851_v36  ;;  %v3314_v19 = vadd.f32 %v3239_v0, %v2941_v29  ;;  %v5229_v25 = vpop.f32.mrf.mxu1  ;;  %v3908_v54 = vstv (%p425_p9), %s3907_s26  ;;  %v5411_v50 = vld [vmem:[%s6550_s6 + $0x70] sm:$0xff] (%p425_p9)  }
 0x241   : >> { %v3854_v39 = vsel %vm422_vm0, %v3822_v41, %v3790_v21  ;;  %v3820_v12 = vmax.f32 %v3788_v47, 0.0  ;;  %v3793_v61 = vadd.f32 %v6237_v22, %v3689_v14  ;;  %v3317_v23 = vadd.f32 %v5229_v25, %v2944_v34  ;;  %v3615_v18 = vpop.f32.mrf.mxu0  ;;  %v5409_v21 = vld [vmem:[%s6550_s6 + $0x78] sm:$0xff] (%p425_p9)   ;;  %v5412_v0 = vld [vmem:[%s6550_s6 + $0x30] sm:$0xff] (%p425_p9)   ;;  %v5413_v41 = vld [vmem:[%s6550_s6 + $0x68] sm:$0xff] (%p425_p9)  }
 0x242   : >> { %3886 = vst [vmem:[#allocation2 + $0x1d0] sm:$0xff] %v3854_v39  ;;  %v3687_v20 = vadd.f32 %v3612_v1, %v3314_v19  ;;  %v3242_v63 = vpop.f32.mrf.mxu1  ;;  %vm3909_vm1 = vcmp.eq.s32.totalorder (%p425_p9), %v6438_v58, %v3908_v54  ;;  %vm3910_vm2 = vcmp.eq.s32.totalorder (%p425_p9), %v3904_v24, %v3908_v54  ;;  %vm3911_vm3 = vcmp.eq.s32.totalorder (%p425_p9), %v3905_v40, %v3908_v54  ;;  %v5402_v1 = vld [vmem:[%s6548_s4 + $0x20] ss:$8 sps:$4 sm:$0xff] (%p425_p9)  }
 0x243   : >> { %v3852_v51 = vsel %vm422_vm0, %v3820_v12, %v3788_v47  ;;  %v3825_v15 = vmax.f32 %v3793_v61, 0.0  ;;  %v3690_v46 = vadd.f32 %v5277_v33, %v3317_v23  ;;  %v3315_v57 = vadd.f32 %v3242_v63, %v2942_v43  ;;  %4824 = vmatprep.subr.bf16.mxu1 (%p425_p9), %v5409_v21  ;;  %v5403_v47 = vld [vmem:[%s6548_s4 + $0x14] ss:$8 sps:$4 sm:$0xff] (%p425_p9)   ;;  %v5405_v43 = vld [vmem:[%s6548_s4 + $0x10] ss:$8 sps:$4 sm:$0xff] (%p425_p9)   ;;  %v5415_v25 = vld [vmem:[%s6550_s6 + $0x60] sm:$0xff] (%p425_p9)  }
 0x244   : >> { %3884 = vst [vmem:[#allocation2 + $0x1b0] sm:$0xff] %v3852_v51  ;;  %v3791_v13 = vadd.f32 %v6237_v22, %v3687_v20  ;;  %vm3912_vm4 = vcmp.eq.s32.totalorder (%p425_p9), %v3906_v38, %v3908_v54  ;;  %4825 = vmatpush3.bf16.msra.mxu1 (%p425_p9), %v5410_v4  ;;  %v5406_v33 = vld [vmem:[%s6548_s4 + $0x4] ss:$8 sps:$4 sm:$0xff] (%p425_p9)   ;;  %v5408_v20 = vld [vmem:[%s6548_s4] ss:$8 sps:$4 sm:$0xff] (%p425_p9)   ;;  %v5418_v51 = vld [vmem:[%s6550_s6 + $0x18] sm:$0xff] (%p425_p9)  }
 0x245   : >> { %v3857_v35 = vsel %vm422_vm0, %v3825_v15, %v3793_v61  ;;  %v3794_v49 = vadd.f32 %v6237_v22, %v3690_v46  ;;  %v3688_v62 = vadd.f32 %v3615_v18, %v3315_v57  ;;  %4826 = vmatprep.subr.bf16.mxu1 (%p425_p9), %v5411_v50  ;;  %v5416_v12 = vld [vmem:[%s6550_s6 + $0x20] sm:$0xff] (%p425_p9)   ;;  %v5417_v61 = vld [vmem:[%s6550_s6 + $0x58] sm:$0xff] (%p425_p9)   ;;  %v5419_v46 = vld [vmem:[%s6550_s6 + $0x50] sm:$0xff] (%p425_p9)  }
 0x246   : >> { %3889 = vst [vmem:[#allocation2 + $0x208] sm:$0xff] %v3857_v35  ;;  %v3823_v59 = vmax.f32 %v3791_v13, 0.0  ;;  %v5421_v18 = vld [vmem:[%s6550_s6 + $0x48] sm:$0xff] (%p425_p9)  }
 0x247   : >> { %v3826_v7 = vmax.f32 %v3794_v49, 0.0  ;;  %v3792_v10 = vadd.f32 %v6237_v22, %v3688_v62  ;;  %v5385_v22 = vld [vmem:[%s6548_s4 + $0x74] ss:$8 sps:$4 sm:$0xff] (%p425_p9)   ;;  %v5422_v35 = vld [vmem:[%s6550_s6 + $0x8] sm:$0xff] (%p425_p9)   ;;  %v5424_v62 = vld [vmem:[%s6550_s6] sm:$0xff] (%p425_p9)  }
 0x248   : >> { %v3855_v6 = vsel %vm422_vm0, %v3823_v59, %v3791_v13  ;;  %427 = sbr.rel (!%p425_p9) target bundleno = 63 (0x3f), region = 98  ;;  %4043 = vmatprep.subr.bf16.mxu0 (%p425_p9), %v5385_v22  ;;  %4827 = vmatpush3.bf16.msra.mxu1 (%p425_p9), %v5412_v0  ;;  %v5420_v13 = vld [vmem:[%s6550_s6 + $0x10] sm:$0xff] (%p425_p9)   ;;  %v4035_v59 = vsub.s32 (%p425_p9), 0, %v6438_v58 }
 0x249   : >> { %3887 = vst [vmem:[#allocation2 + $0x1e8] sm:$0xff] %v3855_v6  ;;  %v3858_v37 = vsel %vm422_vm0, %v3826_v7, %v3794_v49  ;;  %v3824_v52 = vmax.f32 %v3792_v10, 0.0  ;;  %4044 = vmatpush1.bf16.msra.mxu0 (%p425_p9), %v5387_v42  ;;  %4828 = vmatprep.subr.bf16.mxu1 (%p425_p9), %v5413_v41  ;;  %v5423_v49 = vld [vmem:[%s6550_s6 + $0x40] sm:$0xff] (%p425_p9)  }
 0x24a   : >> { %3890 = vst [vmem:[#allocation2 + $0x210] sm:$0xff] %v3858_v37  ;;  %4045 = vmatprep.subr.bf16.mxu0 (%p425_p9), %v5388_v53  ;;  %v3951_v7 = vld [vmem:[%s6549_s5] sm:$0x3] (%p425_p9) }
 0x24b   : >> { %v3856_v3 = vsel %vm422_vm0, %v3824_v52, %v3792_v10  ;;  %v4039_v10 = vsub.s32 (%p425_p9), 1, %v6438_v58  ;;  %v4036_v6 = vrot.slane (%p425_p9), %v3951_v7, %v4035_v59  ;;  %v4120_v58 = vld [vmem:[%s6551_s7] sm:$0x1] (%p425_p9) }
 0x24c   : >> { %3888 = vst [vmem:[#allocation2 + $0x1f0] sm:$0xff] %v3856_v3  ;;  %4829 = vmatpush3.bf16.msra.mxu1 (%p425_p9), %v5414_v16 }
 0x24d   : > { %4046 = vmatpush1.bf16.msra.mxu0 %v5390_v2  ;;  %4830 = vmatprep.subr.bf16.mxu1 %v5415_v25  ;;  %v4040_v37 = vrot.slane %v3951_v7, %v4039_v10 }
 0x24e   : > { %4047 = vmatprep.subr.bf16.mxu0 %v5391_v28 }
 0x250   : > { %4831 = vmatpush3.bf16.msra.mxu1 %v5416_v12 }
 0x251   : > { %4048 = vmatpush1.bf16.msra.mxu0 %v5393_v11  ;;  %4832 = vmatprep.subr.bf16.mxu1 %v5417_v61 }
 0x252   : > { %4049 = vmatprep.subr.bf16.mxu0 %v5394_v26 }
 0x253   : > { %v4568_v9 = vld [vmem:[%s4319_s9 + $0x20] sm:$0xff]  ;;  %v4569_v45 = vld [vmem:[%s4319_s9 + $0x28] sm:$0xff]  ;;  %v4570_v44 = vld [vmem:[%s4319_s9 + $0x30] sm:$0xff] }
 0x254   : > { %v4571_v55 = vld [vmem:[%s4319_s9 + $0x38] sm:$0xff]  ;;  %v3921_v32 = vsel %vm3909_vm1, %v4568_v9, 0.0  ;;  %v3922_v60 = vsel %vm3910_vm2, %v4569_v45, 0.0  ;;  %v3923_v31 = vsel %vm3911_vm3, %v4570_v44, 0.0  ;;  %4833 = vmatpush3.bf16.msra.mxu1 %v5418_v51 }
 0x255   : > { %v3925_v5 = vadd.f32 %v3922_v60, %v3921_v32  ;;  %v3924_v29 = vsel %vm3912_vm4, %v4571_v55, 0.0  ;;  %4050 = vmatpush1.bf16.msra.mxu0 %v5396_v8  ;;  %4834 = vmatprep.subr.bf16.mxu1 %v5419_v46 }
 0x256   : > { %4051 = vmatprep.subr.bf16.mxu0 %v5397_v30 }
 0x257   : > { %v3926_v34 = vadd.f32 %v3925_v5, %v3923_v31 }
 0x258   : > { %4835 = vmatpush3.bf16.msra.mxu1 %v5420_v13 }
 0x259   : > { %v3927_v36 = vadd.f32 %v3926_v34, %v3924_v29  ;;  %4052 = vmatpush1.bf16.msra.mxu0 %v5399_v27  ;;  %4836 = vmatprep.subr.bf16.mxu1 %v5421_v18 }
 0x25a   : > { %4053 = vmatprep.subr.bf16.mxu0 %v5400_v56 }
 0x25b   : > { %v3928_v14 = vrot.slane %v3927_v36, 4 }
 0x25c   : > { %4837 = vmatpush3.bf16.msra.mxu1 %v5422_v35 }
 0x25d   : > { %v3929_v19 = vadd.f32 %v3928_v14, %v3927_v36  ;;  %4054 = vmatpush1.bf16.msra.mxu0 %v5402_v1  ;;  %4838 = vmatprep.subr.bf16.mxu1 %v5423_v49 }
 0x25e   : > { %4055 = vmatprep.subr.bf16.mxu0 %v5403_v47 }
 0x25f   : > { %v3930_v39 = vrot.slane %v3929_v19, 2 }
 0x260   : > { %4839 = vmatpush3.bf16.msra.mxu1 %v5424_v62 }
 0x261   : > { %v3931_v23 = vadd.f32 %v3930_v39, %v3929_v19  ;;  %4056 = vmatpush1.bf16.msra.mxu0 %v5405_v43 }
 0x262   : > { %4057 = vmatprep.subr.bf16.mxu0 %v5406_v33 }
 0x263   : > { %v3932_v63 = vrot.slane %v3931_v23, 1 }
 0x265   : > { %v3933_v15 = vadd.f32 %v3932_v63, %v3931_v23  ;;  %4058 = vmatpush1.bf16.msra.mxu0 %v5408_v20 }
 0x267   : > { %v3934_v57 = vpack.c.bf16 %v3933_v15, %v3933_v15 }
 0x269   : > { %4076 = vmatmul.mubr.bf16.vlgmr.msra.gmra.mxu0 %v3934_v57 }
 0x329   : > { %v4077_v52 = vpop.f32.mrf.mxu0 }
 0x32a   : > { %v4078_v3 = vadd.f32 %v4077_v52, %v4036_v6 }
 0x32b   : > { %v4079_v22 = vpop.f32.mrf.mxu0 }
 0x32c   : > { %v4080_v42 = vadd.f32 %v4079_v22, %v4040_v37  ;;  %v4084_v17 = vmax.f32 %v4078_v3, 0.0 }
 0x32d   : > { %v4081_v53 = vpop.f32.mrf.mxu0 }
 0x32e   : > { %v4085_v2 = vmax.f32 %v4080_v42, 0.0  ;;  %v4086_v24 = vpack.c.bf16 %v4084_v17, %v4084_v17 }
 0x32f   : > { %v4082_v48 = vpop.f32.mrf.mxu0 }
 0x330   : > { %v4087_v28 = vpack.c.bf16 %v4085_v2, %v4085_v2 }
 0x332   : > { %4249 = vmatprep.mubr.bf16.mxu1 %v4087_v28 }
 0x333   : > { %4250 = vmatmul.mubr.bf16.vlgmr.msra.gmra.mxu1 %v4086_v24 }
 0x3f3   : > { %v4840_v40 = vpop.f32.mrf.mxu1 }
 0x3f5   : > { %v4841_v11 = vpop.f32.mrf.mxu1 }
 0x3f6   : > { %v4842_v38 = vadd.f32 %v4841_v11, %v4840_v40 }
 0x3f7   : > { %v4843_v26 = vpop.f32.mrf.mxu1 }
 0x3f8   : > { %v4252_v54 = vadd.f32 %v4842_v38, %v4120_v58 }
 0x3f9   : > { %v4844_v8 = vpop.f32.mrf.mxu1 }
 0x3fa   : > { %4257 = vst [vmem:[%s281_s15] sm:$0x1] %v4252_v54 }
 0x3fb PF: > { %s24_s10 = sadd.s32 1, %s5449_s10  }
 0x3fc   : > { %p21_p10 = scmp.ge.s32.totalorder %s24_s10, 4  }
 0x3fe   :  { %23 = sbr.rel (!%p21_p10) target bundleno = 16 (0x10), region = 109 }

</bundles_post_ra>
